<compile_context>
chip_gen: v6e
topology: v6e:2x2x1
jax: 0.10.0
libtpu: 0.0.40
codegen_flags: <defaults>
</compile_context>

<pallas_src>
import functools
import math

import jax
import jax.numpy as jnp
from jax.experimental import pallas as pl
from jax.experimental.pallas import tpu as pltpu


# ----------------------------- packed-vector index map -----------------------------
# Order of the (N_VEC, 1, D) vector stack (LayerNorm params and D-width biases).
V_BZ, V_BX = 0, 1
V_E_LN1_G, V_E_LN1_B, V_E_LN2_G, V_E_LN2_B = 2, 3, 4, 5
V_E_BO, V_E_B2 = 6, 7
V_D_LNQ_G, V_D_LNQ_B, V_D_LNK_G, V_D_LNK_B = 8, 9, 10, 11
V_D_LN2_G, V_D_LN2_B = 12, 13
V_D_BO, V_D_B2 = 14, 15
V_ON_G, V_ON_B = 16, 17
N_VEC = 18


# ----------------------------- fused forward kernel -----------------------------

def _swintrack_kernel(
    # per-batch inputs
    z_ref, x_ref,
    # packed weights (all constant index_map, VMEM resident)
    wemb_ref,      # (2*Cin, 1, D)   fused backbone+projection rows (z branch, x branch)
    pos_ref,       # (Lz+Lx, D)      concat(z_pos, x_pos), done host-side
    vec_ref,       # (N_VEC, 1, D)   LN params + D-width biases (see V_* indices)
    qkvw_ref,      # (2*3*H, D, hd)  per-head Q/K/V weights, (blk*3 + proj)*H + h
    qkvb_ref,      # (2*3*H, 1, hd)  per-head Q/K/V biases
    wo_ref,        # (2*H, hd, D)    per-head output-projection weights, blk*H + h
    w1_ref,        # (2, D, mlp_h)   MLP first matmul  (0 = encoder, 1 = decoder)
    b1_ref,        # (2, 1, mlp_h)
    w2_ref,        # (2, mlp_h, D)   MLP second matmul
    wh_ref,        # (D, 128)        fused (cls | bbox | zero-pad) head weights
    bh_ref,        # (1, 128)
    # output
    out_ref,       # (1, Lx, 128)
    *, num_heads, eps, mm_dtype):
    f32 = jnp.float32
    Lz = z_ref.shape[1]
    Cin = z_ref.shape[2]
    D = pos_ref.shape[-1]
    H = num_heads
    hd = D // H

    def mm(a, b):
        # (M, K) @ (K, N) -> f32 (M, N); bf16 MXU inputs, f32 accumulation.
        return jnp.dot(a.astype(mm_dtype), b.astype(mm_dtype),
                       preferred_element_type=f32)

    def mm_nt(a, b):
        # (M, K) x (N, K) -> (M, N), contraction on last dims (no explicit .T).
        return jax.lax.dot_general(
            a.astype(mm_dtype), b.astype(mm_dtype),
            (((1,), (1,)), ((), ())), preferred_element_type=f32)

    def vec(i):
        return vec_ref[i].astype(f32)          # (1, D), leading-axis index

    def ln(t, gi, bi):
        mean = jnp.mean(t, axis=-1, keepdims=True)
        var = jnp.mean((t - mean) ** 2, axis=-1, keepdims=True)
        tn = (t - mean) * jax.lax.rsqrt(var + eps)
        return tn * vec(gi) + vec(bi)

    def embed(t, branch, bias_i):
        # Folded backbone + input projection.  K = Cin (=3) -> run on the VPU as
        # Cin broadcast FMAs instead of an almost-empty MXU pass.
        out = t[:, 0:1].astype(f32) * wemb_ref[branch * Cin + 0].astype(f32)
        for c in range(1, Cin):
            out = out + t[:, c:c + 1].astype(f32) * wemb_ref[branch * Cin + c].astype(f32)
        return out + vec(bias_i)               # (L, D)

    def mha(q_in, kv_in, q_pos, k_pos, blk, bo_i):
        # Head-major weights: the per-head loop indexes the LEADING axis of the
        # weight stacks -- no sub-128-lane slicing of activations.
        Lq = q_in.shape[0]
        scale = 1.0 / math.sqrt(hd)
        qsrc = q_in + q_pos                    # pos enc added to Q/K inputs only
        ksrc = kv_in + k_pos
        out = jnp.zeros((Lq, D), f32)
        for h in range(H):                     # static unroll; H is tiny
            iq = (blk * 3 + 0) * H + h
            ik = (blk * 3 + 1) * H + h
            iv = (blk * 3 + 2) * H + h
            q_h = mm(qsrc, qkvw_ref[iq]) + qkvb_ref[iq].astype(f32)     # (Lq, hd)
            k_h = mm(ksrc, qkvw_ref[ik]) + qkvb_ref[ik].astype(f32)     # (Lk, hd)
            v_h = mm(kv_in, qkvw_ref[iv]) + qkvb_ref[iv].astype(f32)    # (Lk, hd)
            s = mm_nt(q_h, k_h) * scale                                  # (Lq, Lk)
            s = s - jnp.max(s, axis=-1, keepdims=True)
            p = jnp.exp(s)
            p = p * pl.reciprocal(jnp.sum(p, axis=-1, keepdims=True), approx=True)
            oh = mm(p, v_h)                                              # (Lq, hd)
            # concat-over-heads followed by Wo == sum_h oh @ Wo[h*hd:(h+1)*hd, :]
            out = out + mm(oh, wo_ref[blk * H + h])
        return out + vec(bo_i)

    # ---- initialize(z) / _get_search_feat(x): folded backbone + projection ----
    z_feat = embed(z_ref[0], 0, V_BZ)                               # (Lz, D)
    x_feat = embed(x_ref[0], 1, V_BX)                               # (Lx, D)

    pos = pos_ref[...].astype(f32)                                  # (Lz+Lx, D)
    x_pos = pos[Lz:]                                                # sublane-aligned slice
    tok = jnp.concatenate([z_feat, x_feat], axis=0)                 # (L, D), VMEM only

    # ---- encoder: pre-norm self-attention + MLP over concat([z; x]) ----
    t1 = ln(tok, V_E_LN1_G, V_E_LN1_B)
    tok = tok + mha(t1, t1, pos, pos, 0, V_E_BO)
    t2 = ln(tok, V_E_LN2_G, V_E_LN2_B)
    # TODO(synk): PyTorch nn.GELU default is the exact erf form; tanh approx used here.
    hmid = jax.nn.gelu(mm(t2, w1_ref[0]) + b1_ref[0].astype(f32), approximate=True)
    tok = tok + mm(hmid, w2_ref[0]) + vec(V_E_B2)

    x_tok = tok[Lz:]                                                # (Lx, D)

    # ---- decoder: cross-attention (q = search tokens, kv = concat) + MLP ----
    qn = ln(x_tok, V_D_LNQ_G, V_D_LNQ_B)
    kvn = ln(tok, V_D_LNK_G, V_D_LNK_B)
    dfeat = x_tok + mha(qn, kvn, x_pos, pos, 1, V_D_BO)
    d2 = ln(dfeat, V_D_LN2_G, V_D_LN2_B)
    hmid = jax.nn.gelu(mm(d2, w1_ref[1]) + b1_ref[1].astype(f32), approximate=True)
    dfeat = dfeat + mm(hmid, w2_ref[1]) + vec(V_D_B2)

    # ---- out_norm + fused lane-dense (cls | bbox | pad) head, single 128-lane store ----
    dn = ln(dfeat, V_ON_G, V_ON_B)
    head = jax.nn.sigmoid(mm(dn, wh_ref[...]) + bh_ref[...].astype(f32))   # (Lx, 128)
    out_ref[0] = head.astype(out_ref.dtype)


# ----------------------------- parameter init -----------------------------

def _lin_init(key, k_in, k_out, std=0.02):
    return {"w": jax.random.normal(key, (k_in, k_out), jnp.float32) * std,
            "b": jnp.zeros((1, k_out), jnp.float32)}


def _attn_init(key, d, std=0.02):
    ks = jax.random.split(key, 4)
    return {
        "wq": jax.random.normal(ks[0], (d, d), jnp.float32) * std,
        "bq": jnp.zeros((1, d), jnp.float32),
        "wk": jax.random.normal(ks[1], (d, d), jnp.float32) * std,
        "bk": jnp.zeros((1, d), jnp.float32),
        "wv": jax.random.normal(ks[2], (d, d), jnp.float32) * std,
        "bv": jnp.zeros((1, d), jnp.float32),
        "wo": jax.random.normal(ks[3], (d, d), jnp.float32) * std,
        "bo": jnp.zeros((1, d), jnp.float32),
    }


def _ln_init(d):
    return jnp.ones((1, d), jnp.float32), jnp.zeros((1, d), jnp.float32)


def init_params(key, *, c_in=3, c_b=8, dim=32, mlp_hidden=64,
                l_z=16, l_x=64, num_classes=1):
    keys = jax.random.split(key, 16)
    enc_ln1 = _ln_init(dim)
    enc_ln2 = _ln_init(dim)
    dec_lnq = _ln_init(dim)
    dec_lnk = _ln_init(dim)
    dec_ln2 = _ln_init(dim)
    out_ln = _ln_init(dim)
    params = {
        "backbone": _lin_init(keys[0], c_in, c_b),
        "z_proj": _lin_init(keys[1], c_b, dim),
        "x_proj": _lin_init(keys[2], c_b, dim),
        "z_pos": jax.random.normal(keys[3], (l_z, dim), jnp.float32) * 0.02,
        "x_pos": jax.random.normal(keys[4], (l_x, dim), jnp.float32) * 0.02,
        "encoder": {
            "ln1_g": enc_ln1[0], "ln1_b": enc_ln1[1],
            "attn": _attn_init(keys[5], dim),
            "ln2_g": enc_ln2[0], "ln2_b": enc_ln2[1],
            "mlp1": _lin_init(keys[6], dim, mlp_hidden),
            "mlp2": _lin_init(keys[7], mlp_hidden, dim),
        },
        "decoder": {
            "lnq_g": dec_lnq[0], "lnq_b": dec_lnq[1],
            "lnk_g": dec_lnk[0], "lnk_b": dec_lnk[1],
            "attn": _attn_init(keys[8], dim),
            "ln2_g": dec_ln2[0], "ln2_b": dec_ln2[1],
            "mlp1": _lin_init(keys[9], dim, mlp_hidden),
            "mlp2": _lin_init(keys[10], mlp_hidden, dim),
        },
        "out_norm_g": out_ln[0], "out_norm_b": out_ln[1],
        "head_cls": _lin_init(keys[11], dim, num_classes),
        "head_bbox": _lin_init(keys[12], dim, 4),
    }
    return params


# ----------------------------- forward pass (one pallas_call) -----------------------------

def swintrack_forward(params, z, x, *, h_x, w_x, num_heads=2,
                      mm_dtype=jnp.bfloat16, eps=1e-5, out_lanes=128):
    """z: (B, L_z, 3), x: (B, L_x, 3) -> {'class_score': (B,C,H,W), 'bbox': (B,H,W,4)}"""
    B, Lz, Cin = z.shape
    _, Lx, _ = x.shape
    D = params["z_proj"]["w"].shape[1]
    mlp_h = params["encoder"]["mlp1"]["w"].shape[1]
    num_classes = params["head_cls"]["w"].shape[1]
    H = num_heads
    hd = D // H
    n_out = num_classes + 4
    assert n_out <= out_lanes

    enc, dec = params["encoder"], params["decoder"]
    ea, da = enc["attn"], dec["attn"]

    # Fold backbone into the per-branch input projections (host-side, once, tiny):
    #   (t @ Wb + bb) @ Wp + bp  ==  t @ (Wb Wp) + (bb Wp + bp)
    wb, bb = params["backbone"]["w"], params["backbone"]["b"]
    wz = wb @ params["z_proj"]["w"]
    bz = bb @ params["z_proj"]["w"] + params["z_proj"]["b"]
    wx = wb @ params["x_proj"]["w"]
    bx = bb @ params["x_proj"]["w"] + params["x_proj"]["b"]
    wemb = jnp.concatenate([wz, wx], axis=0).reshape(2 * Cin, 1, D)

    # Positional encodings: concat once host-side (one operand, no in-kernel concat).
    pos_all = jnp.concatenate([params["z_pos"], params["x_pos"]], axis=0)   # (Lz+Lx, D)

    # Pack all D-width LN params / biases into one (N_VEC, 1, D) stack.
    vec_rows = [None] * N_VEC
    vec_rows[V_BZ], vec_rows[V_BX] = bz, bx
    vec_rows[V_E_LN1_G], vec_rows[V_E_LN1_B] = enc["ln1_g"], enc["ln1_b"]
    vec_rows[V_E_LN2_G], vec_rows[V_E_LN2_B] = enc["ln2_g"], enc["ln2_b"]
    vec_rows[V_E_BO], vec_rows[V_E_B2] = ea["bo"], enc["mlp2"]["b"]
    vec_rows[V_D_LNQ_G], vec_rows[V_D_LNQ_B] = dec["lnq_g"], dec["lnq_b"]
    vec_rows[V_D_LNK_G], vec_rows[V_D_LNK_B] = dec["lnk_g"], dec["lnk_b"]
    vec_rows[V_D_LN2_G], vec_rows[V_D_LN2_B] = dec["ln2_g"], dec["ln2_b"]
    vec_rows[V_D_BO], vec_rows[V_D_B2] = da["bo"], dec["mlp2"]["b"]
    vec_rows[V_ON_G], vec_rows[V_ON_B] = params["out_norm_g"], params["out_norm_b"]
    vecs = jnp.stack(vec_rows, axis=0)                                      # (N_VEC, 1, D)

    # Head-major attention weight stacks (leading-axis head selection in the kernel).
    def split_w(w):   # (D, D) -> (H, D, hd): head h = W[:, h*hd:(h+1)*hd]
        return w.reshape(D, H, hd).transpose(1, 0, 2)

    def split_b(b):   # (1, D) -> (H, 1, hd)
        return b.reshape(H, 1, hd)

    def split_wo(w):  # (D, D) -> (H, hd, D): head h = W[h*hd:(h+1)*hd, :]
        return w.reshape(H, hd, D)

    qkv_w = jnp.concatenate([split_w(ea["wq"]), split_w(ea["wk"]), split_w(ea["wv"]),
                             split_w(da["wq"]), split_w(da["wk"]), split_w(da["wv"])],
                            axis=0)                                         # (2*3*H, D, hd)
    qkv_b = jnp.concatenate([split_b(ea["bq"]), split_b(ea["bk"]), split_b(ea["bv"]),
                             split_b(da["bq"]), split_b(da["bk"]), split_b(da["bv"])],
                            axis=0)                                         # (2*3*H, 1, hd)
    wo_stack = jnp.concatenate([split_wo(ea["wo"]), split_wo(da["wo"])], axis=0)  # (2*H, hd, D)

    # MLP weight stacks (0 = encoder, 1 = decoder).
    w1 = jnp.stack([enc["mlp1"]["w"], dec["mlp1"]["w"]], axis=0)            # (2, D, mlp_h)
    b1 = jnp.stack([enc["mlp1"]["b"], dec["mlp1"]["b"]], axis=0)            # (2, 1, mlp_h)
    w2 = jnp.stack([enc["mlp2"]["w"], dec["mlp2"]["w"]], axis=0)            # (2, mlp_h, D)

    # Fuse the two heads (cls | bbox) and zero-pad to a lane-dense 128-wide output.
    wh = jnp.concatenate([params["head_cls"]["w"], params["head_bbox"]["w"]], axis=1)
    bh = jnp.concatenate([params["head_cls"]["b"], params["head_bbox"]["b"]], axis=1)
    wh_pad = jnp.zeros((D, out_lanes), jnp.float32).at[:, :n_out].set(wh)
    bh_pad = jnp.zeros((1, out_lanes), jnp.float32).at[:, :n_out].set(bh)

    broadcast = (wemb, pos_all, vecs, qkv_w, qkv_b, wo_stack, w1, b1, w2, wh_pad, bh_pad)

    def _bcast_spec(a):
        nd = a.ndim
        return pl.BlockSpec(a.shape, lambda b, _nd=nd: (0,) * _nd)

    in_specs = (
        [pl.BlockSpec((1, Lz, Cin), lambda b: (b, 0, 0)),
         pl.BlockSpec((1, Lx, Cin), lambda b: (b, 0, 0))]
        + [_bcast_spec(a) for a in broadcast]
    )

    # Advisory cost estimate (helps XLA schedule neighbouring HLO around the call).
    L = Lz + Lx
    flops = 2 * B * (
        L * Cin * D                                      # fused embed
        + 4 * L * D * D + 2 * L * L * D                  # encoder attention
        + 2 * L * D * mlp_h                              # encoder MLP
        + (2 * L + 2 * Lx) * D * D + 2 * Lx * L * D      # decoder cross-attention
        + 2 * Lx * D * mlp_h                             # decoder MLP
        + Lx * D * out_lanes                             # fused head
    )
    transcendentals = B * (L * L + Lx * L                # softmax exps
                           + (L + Lx) * mlp_h            # gelu
                           + Lx * out_lanes              # sigmoid
                           + 7 * L)                      # rsqrt in LayerNorms
    weight_bytes = sum(int(a.size) * a.dtype.itemsize for a in broadcast)
    bytes_accessed = (int(z.size) * z.dtype.itemsize + int(x.size) * x.dtype.itemsize
                      + weight_bytes + B * Lx * out_lanes * 4)

    out = pl.pallas_call(
        functools.partial(_swintrack_kernel, num_heads=num_heads, eps=eps,
                          mm_dtype=mm_dtype),
        out_shape=jax.ShapeDtypeStruct((B, Lx, out_lanes), x.dtype),
        grid=(B,),
        in_specs=in_specs,
        out_specs=pl.BlockSpec((1, Lx, out_lanes), lambda b: (b, 0, 0)),
        compiler_params=pltpu.CompilerParams(
            dimension_semantics=("parallel",)),
        cost_estimate=pl.CostEstimate(flops=int(flops),
                                      transcendentals=int(transcendentals),
                                      bytes_accessed=int(bytes_accessed)),
    )(z, x, *broadcast)

    cls = out[..., :num_classes]                 # (B, Lx, num_classes)
    bbox = out[..., num_classes:n_out]           # (B, Lx, 4)
    class_score = cls.reshape(B, h_x, w_x, num_classes).transpose(0, 3, 1, 2)
    bbox = bbox.reshape(B, h_x, w_x, 4)
    return {"class_score": class_score, "bbox": bbox}


# ----------------------------- main -----------------------------

if __name__ == "__main__":
    B = 2
    H_z = W_z = 4
    H_x = W_x = 8
    L_z, L_x = H_z * W_z, H_x * W_x

    root = jax.random.PRNGKey(0)
    k_params, k_z, k_x = jax.random.split(root, 3)

    params = init_params(k_params, l_z=L_z, l_x=L_x)
    z = jax.random.normal(k_z, (B, L_z, 3), jnp.float32)
    x = jax.random.normal(k_x, (B, L_x, 3), jnp.float32)

    out = swintrack_forward(params, z, x, h_x=H_x, w_x=W_x, num_heads=2)
    out = jax.block_until_ready(out)

    assert out["class_score"].shape == (B, 1, H_x, W_x)
    assert out["bbox"].shape == (B, H_x, W_x, 4)
    assert bool(jnp.all(jnp.isfinite(out["class_score"])))
    assert bool(jnp.all(jnp.isfinite(out["bbox"])))
    print("KERNEL_OK")
</pallas_src>

<mosaic_0001>
module attributes {stable_mosaic.version = 11 : i64} {
  func.func @_swintrack_kernel(%arg0: i32, %arg1: memref<1x16x3xf32, #tpu.memory_space<vmem>>, %arg2: memref<1x64x3xf32, #tpu.memory_space<vmem>>, %arg3: memref<6x1x32xf32, #tpu.memory_space<vmem>>, %arg4: memref<80x32xf32, #tpu.memory_space<vmem>>, %arg5: memref<18x1x32xf32, #tpu.memory_space<vmem>>, %arg6: memref<12x32x16xf32, #tpu.memory_space<vmem>>, %arg7: memref<12x1x16xf32, #tpu.memory_space<vmem>>, %arg8: memref<4x16x32xf32, #tpu.memory_space<vmem>>, %arg9: memref<2x32x64xf32, #tpu.memory_space<vmem>>, %arg10: memref<2x1x64xf32, #tpu.memory_space<vmem>>, %arg11: memref<2x64x32xf32, #tpu.memory_space<vmem>>, %arg12: memref<32x128xf32, #tpu.memory_space<vmem>>, %arg13: memref<1x128xf32, #tpu.memory_space<vmem>>, %arg14: memref<1x64x128xf32, #tpu.memory_space<vmem>>) attributes {dimension_semantics = [#tpu.dimension_semantics<parallel>], iteration_bounds = array<i64: 2>, scalar_prefetch = 0 : i64, scratch_operands = 0 : i64, tpu.core_type = #tpu.core_type<tc>, window_params = [{transform_indices = @transform_0, window_bounds = array<i64: 1, 16, 3>}, {transform_indices = @transform_1, window_bounds = array<i64: 1, 64, 3>}, {pipeline_mode = #tpu.pipeline_mode<synchronous>, transform_indices = @transform_2, window_bounds = array<i64: 6, 1, 32>}, {pipeline_mode = #tpu.pipeline_mode<synchronous>, transform_indices = @transform_3, window_bounds = array<i64: 80, 32>}, {pipeline_mode = #tpu.pipeline_mode<synchronous>, transform_indices = @transform_4, window_bounds = array<i64: 18, 1, 32>}, {pipeline_mode = #tpu.pipeline_mode<synchronous>, transform_indices = @transform_5, window_bounds = array<i64: 12, 32, 16>}, {pipeline_mode = #tpu.pipeline_mode<synchronous>, transform_indices = @transform_6, window_bounds = array<i64: 12, 1, 16>}, {pipeline_mode = #tpu.pipeline_mode<synchronous>, transform_indices = @transform_7, window_bounds = array<i64: 4, 16, 32>}, {pipeline_mode = #tpu.pipeline_mode<synchronous>, transform_indices = @transform_8, window_bounds = array<i64: 2, 32, 64>}, {pipeline_mode = #tpu.pipeline_mode<synchronous>, transform_indices = @transform_9, window_bounds = array<i64: 2, 1, 64>}, {pipeline_mode = #tpu.pipeline_mode<synchronous>, transform_indices = @transform_10, window_bounds = array<i64: 2, 64, 32>}, {pipeline_mode = #tpu.pipeline_mode<synchronous>, transform_indices = @transform_11, window_bounds = array<i64: 32, 128>}, {pipeline_mode = #tpu.pipeline_mode<synchronous>, transform_indices = @transform_12, window_bounds = array<i64: 1, 128>}, {transform_indices = @transform_13, window_bounds = array<i64: 1, 64, 128>}]} {
    %c0 = arith.constant 0 : index
    %c0_0 = arith.constant 0 : index
    %c0_1 = arith.constant 0 : index
    %0 = vector.load %arg1[%c0, %c0_0, %c0_1] : memref<1x16x3xf32, #tpu.memory_space<vmem>>, vector<1x16x3xf32>
    %1 = vector.shape_cast %0 : vector<1x16x3xf32> to vector<16x3xf32>
    %2 = vector.extract_strided_slice %1 {offsets = [0, 0], sizes = [16, 1], strides = [1, 1]} : vector<16x3xf32> to vector<16x1xf32>
    %c0_2 = arith.constant 0 : index
    %c0_3 = arith.constant 0 : index
    %c0_4 = arith.constant 0 : index
    %3 = vector.load %arg3[%c0_2, %c0_3, %c0_4] : memref<6x1x32xf32, #tpu.memory_space<vmem>>, vector<1x1x32xf32>
    %4 = vector.shape_cast %3 : vector<1x1x32xf32> to vector<1x32xf32>
    %5 = vector.broadcast %2 : vector<16x1xf32> to vector<16x32xf32>
    %6 = vector.broadcast %4 : vector<1x32xf32> to vector<16x32xf32>
    %7 = arith.mulf %5, %6 : vector<16x32xf32>
    %8 = vector.extract_strided_slice %1 {offsets = [0, 1], sizes = [16, 1], strides = [1, 1]} : vector<16x3xf32> to vector<16x1xf32>
    %c1 = arith.constant 1 : index
    %c0_5 = arith.constant 0 : index
    %c0_6 = arith.constant 0 : index
    %9 = vector.load %arg3[%c1, %c0_5, %c0_6] : memref<6x1x32xf32, #tpu.memory_space<vmem>>, vector<1x1x32xf32>
    %10 = vector.shape_cast %9 : vector<1x1x32xf32> to vector<1x32xf32>
    %11 = vector.broadcast %8 : vector<16x1xf32> to vector<16x32xf32>
    %12 = vector.broadcast %10 : vector<1x32xf32> to vector<16x32xf32>
    %13 = arith.mulf %11, %12 : vector<16x32xf32>
    %14 = arith.addf %7, %13 : vector<16x32xf32>
    %15 = vector.extract_strided_slice %1 {offsets = [0, 2], sizes = [16, 1], strides = [1, 1]} : vector<16x3xf32> to vector<16x1xf32>
    %c2 = arith.constant 2 : index
    %c0_7 = arith.constant 0 : index
    %c0_8 = arith.constant 0 : index
    %16 = vector.load %arg3[%c2, %c0_7, %c0_8] : memref<6x1x32xf32, #tpu.memory_space<vmem>>, vector<1x1x32xf32>
    %17 = vector.shape_cast %16 : vector<1x1x32xf32> to vector<1x32xf32>
    %18 = vector.broadcast %15 : vector<16x1xf32> to vector<16x32xf32>
    %19 = vector.broadcast %17 : vector<1x32xf32> to vector<16x32xf32>
    %20 = arith.mulf %18, %19 : vector<16x32xf32>
    %21 = arith.addf %14, %20 : vector<16x32xf32>
    %c0_9 = arith.constant 0 : index
    %c0_10 = arith.constant 0 : index
    %c0_11 = arith.constant 0 : index
    %22 = vector.load %arg5[%c0_9, %c0_10, %c0_11] : memref<18x1x32xf32, #tpu.memory_space<vmem>>, vector<1x1x32xf32>
    %23 = vector.shape_cast %22 : vector<1x1x32xf32> to vector<1x32xf32>
    %24 = vector.broadcast %23 : vector<1x32xf32> to vector<16x32xf32>
    %25 = arith.addf %21, %24 : vector<16x32xf32>
    %c0_12 = arith.constant 0 : index
    %c0_13 = arith.constant 0 : index
    %c0_14 = arith.constant 0 : index
    %26 = vector.load %arg2[%c0_12, %c0_13, %c0_14] : memref<1x64x3xf32, #tpu.memory_space<vmem>>, vector<1x64x3xf32>
    %27 = vector.shape_cast %26 : vector<1x64x3xf32> to vector<64x3xf32>
    %28 = vector.extract_strided_slice %27 {offsets = [0, 0], sizes = [64, 1], strides = [1, 1]} : vector<64x3xf32> to vector<64x1xf32>
    %c3 = arith.constant 3 : index
    %c0_15 = arith.constant 0 : index
    %c0_16 = arith.constant 0 : index
    %29 = vector.load %arg3[%c3, %c0_15, %c0_16] : memref<6x1x32xf32, #tpu.memory_space<vmem>>, vector<1x1x32xf32>
    %30 = vector.shape_cast %29 : vector<1x1x32xf32> to vector<1x32xf32>
    %31 = vector.broadcast %28 : vector<64x1xf32> to vector<64x32xf32>
    %32 = vector.broadcast %30 : vector<1x32xf32> to vector<64x32xf32>
    %33 = arith.mulf %31, %32 : vector<64x32xf32>
    %34 = vector.extract_strided_slice %27 {offsets = [0, 1], sizes = [64, 1], strides = [1, 1]} : vector<64x3xf32> to vector<64x1xf32>
    %c4 = arith.constant 4 : index
    %c0_17 = arith.constant 0 : index
    %c0_18 = arith.constant 0 : index
    %35 = vector.load %arg3[%c4, %c0_17, %c0_18] : memref<6x1x32xf32, #tpu.memory_space<vmem>>, vector<1x1x32xf32>
    %36 = vector.shape_cast %35 : vector<1x1x32xf32> to vector<1x32xf32>
    %37 = vector.broadcast %34 : vector<64x1xf32> to vector<64x32xf32>
    %38 = vector.broadcast %36 : vector<1x32xf32> to vector<64x32xf32>
    %39 = arith.mulf %37, %38 : vector<64x32xf32>
    %40 = arith.addf %33, %39 : vector<64x32xf32>
    %41 = vector.extract_strided_slice %27 {offsets = [0, 2], sizes = [64, 1], strides = [1, 1]} : vector<64x3xf32> to vector<64x1xf32>
    %c5 = arith.constant 5 : index
    %c0_19 = arith.constant 0 : index
    %c0_20 = arith.constant 0 : index
    %42 = vector.load %arg3[%c5, %c0_19, %c0_20] : memref<6x1x32xf32, #tpu.memory_space<vmem>>, vector<1x1x32xf32>
    %43 = vector.shape_cast %42 : vector<1x1x32xf32> to vector<1x32xf32>
    %44 = vector.broadcast %41 : vector<64x1xf32> to vector<64x32xf32>
    %45 = vector.broadcast %43 : vector<1x32xf32> to vector<64x32xf32>
    %46 = arith.mulf %44, %45 : vector<64x32xf32>
    %47 = arith.addf %40, %46 : vector<64x32xf32>
    %c1_21 = arith.constant 1 : index
    %c0_22 = arith.constant 0 : index
    %c0_23 = arith.constant 0 : index
    %48 = vector.load %arg5[%c1_21, %c0_22, %c0_23] : memref<18x1x32xf32, #tpu.memory_space<vmem>>, vector<1x1x32xf32>
    %49 = vector.shape_cast %48 : vector<1x1x32xf32> to vector<1x32xf32>
    %50 = vector.broadcast %49 : vector<1x32xf32> to vector<64x32xf32>
    %51 = arith.addf %47, %50 : vector<64x32xf32>
    %c0_24 = arith.constant 0 : index
    %c0_25 = arith.constant 0 : index
    %52 = vector.load %arg4[%c0_24, %c0_25] : memref<80x32xf32, #tpu.memory_space<vmem>>, vector<80x32xf32>
    %53 = vector.extract_strided_slice %52 {offsets = [16, 0], sizes = [64, 32], strides = [1, 1]} : vector<80x32xf32> to vector<64x32xf32>
    %54 = tpu.concatenate %25, %51 in 0 : vector<16x32xf32>, vector<64x32xf32> -> vector<80x32xf32>
    %cst = arith.constant dense<0.000000e+00> : vector<80xf32>
    %55 = vector.multi_reduction <add>, %54, %cst [1] : vector<80x32xf32> to vector<80xf32>
    %56 = vector.shape_cast %55 : vector<80xf32> to vector<80x1xf32>
    %cst_26 = arith.constant 3.200000e+01 : f32
    %57 = vector.broadcast %cst_26 : f32 to vector<80x1xf32>
    %58 = arith.divf %56, %57 : vector<80x1xf32>
    %59 = vector.broadcast %58 : vector<80x1xf32> to vector<80x32xf32>
    %60 = arith.subf %54, %59 : vector<80x32xf32>
    %61 = arith.mulf %60, %60 : vector<80x32xf32>
    %cst_27 = arith.constant dense<0.000000e+00> : vector<80xf32>
    %62 = vector.multi_reduction <add>, %61, %cst_27 [1] : vector<80x32xf32> to vector<80xf32>
    %63 = vector.shape_cast %62 : vector<80xf32> to vector<80x1xf32>
    %cst_28 = arith.constant 3.200000e+01 : f32
    %64 = vector.broadcast %cst_28 : f32 to vector<80x1xf32>
    %65 = arith.divf %63, %64 : vector<80x1xf32>
    %66 = vector.broadcast %58 : vector<80x1xf32> to vector<80x32xf32>
    %67 = arith.subf %54, %66 : vector<80x32xf32>
    %cst_29 = arith.constant 9.99999974E-6 : f32
    %68 = vector.broadcast %cst_29 : f32 to vector<80x1xf32>
    %69 = arith.addf %65, %68 : vector<80x1xf32>
    %70 = math.rsqrt %69 : vector<80x1xf32>
    %71 = vector.broadcast %70 : vector<80x1xf32> to vector<80x32xf32>
    %72 = arith.mulf %67, %71 : vector<80x32xf32>
    %c2_30 = arith.constant 2 : index
    %c0_31 = arith.constant 0 : index
    %c0_32 = arith.constant 0 : index
    %73 = vector.load %arg5[%c2_30, %c0_31, %c0_32] : memref<18x1x32xf32, #tpu.memory_space<vmem>>, vector<1x1x32xf32>
    %74 = vector.shape_cast %73 : vector<1x1x32xf32> to vector<1x32xf32>
    %75 = vector.broadcast %74 : vector<1x32xf32> to vector<80x32xf32>
    %76 = arith.mulf %72, %75 : vector<80x32xf32>
    %c3_33 = arith.constant 3 : index
    %c0_34 = arith.constant 0 : index
    %c0_35 = arith.constant 0 : index
    %77 = vector.load %arg5[%c3_33, %c0_34, %c0_35] : memref<18x1x32xf32, #tpu.memory_space<vmem>>, vector<1x1x32xf32>
    %78 = vector.shape_cast %77 : vector<1x1x32xf32> to vector<1x32xf32>
    %79 = vector.broadcast %78 : vector<1x32xf32> to vector<80x32xf32>
    %80 = arith.addf %76, %79 : vector<80x32xf32>
    %81 = arith.addf %80, %52 : vector<80x32xf32>
    %82 = arith.addf %80, %52 : vector<80x32xf32>
    %cst_36 = arith.constant 0.000000e+00 : f32
    %83 = vector.broadcast %cst_36 : f32 to vector<80x32xf32>
    %c0_37 = arith.constant 0 : index
    %c0_38 = arith.constant 0 : index
    %c0_39 = arith.constant 0 : index
    %84 = vector.load %arg6[%c0_37, %c0_38, %c0_39] : memref<12x32x16xf32, #tpu.memory_space<vmem>>, vector<1x32x16xf32>
    %85 = vector.shape_cast %84 : vector<1x32x16xf32> to vector<32x16xf32>
    %86 = arith.truncf %81 : vector<80x32xf32> to vector<80x32xbf16>
    %87 = arith.truncf %85 : vector<32x16xf32> to vector<32x16xbf16>
    %cst_40 = arith.constant dense<0.000000e+00> : vector<80x16xf32>
    %88 = tpu.matmul %86, %87, %cst_40 {dimension_numbers = #tpu.dot_dimension_numbers<[1], [0], [0], [1], [0, 0, 1, 1], [], []>} : vector<80x32xbf16>, vector<32x16xbf16>, vector<80x16xf32> -> vector<80x16xf32>
    %c0_41 = arith.constant 0 : index
    %c0_42 = arith.constant 0 : index
    %c0_43 = arith.constant 0 : index
    %89 = vector.load %arg7[%c0_41, %c0_42, %c0_43] : memref<12x1x16xf32, #tpu.memory_space<vmem>>, vector<1x1x16xf32>
    %90 = vector.shape_cast %89 : vector<1x1x16xf32> to vector<1x16xf32>
    %91 = vector.broadcast %90 : vector<1x16xf32> to vector<80x16xf32>
    %92 = arith.addf %88, %91 : vector<80x16xf32>
    %c2_44 = arith.constant 2 : index
    %c0_45 = arith.constant 0 : index
    %c0_46 = arith.constant 0 : index
    %93 = vector.load %arg6[%c2_44, %c0_45, %c0_46] : memref<12x32x16xf32, #tpu.memory_space<vmem>>, vector<1x32x16xf32>
    %94 = vector.shape_cast %93 : vector<1x32x16xf32> to vector<32x16xf32>
    %95 = arith.truncf %82 : vector<80x32xf32> to vector<80x32xbf16>
    %96 = arith.truncf %94 : vector<32x16xf32> to vector<32x16xbf16>
    %cst_47 = arith.constant dense<0.000000e+00> : vector<80x16xf32>
    %97 = tpu.matmul %95, %96, %cst_47 {dimension_numbers = #tpu.dot_dimension_numbers<[1], [0], [0], [1], [0, 0, 1, 1], [], []>} : vector<80x32xbf16>, vector<32x16xbf16>, vector<80x16xf32> -> vector<80x16xf32>
    %c2_48 = arith.constant 2 : index
    %c0_49 = arith.constant 0 : index
    %c0_50 = arith.constant 0 : index
    %98 = vector.load %arg7[%c2_48, %c0_49, %c0_50] : memref<12x1x16xf32, #tpu.memory_space<vmem>>, vector<1x1x16xf32>
    %99 = vector.shape_cast %98 : vector<1x1x16xf32> to vector<1x16xf32>
    %100 = vector.broadcast %99 : vector<1x16xf32> to vector<80x16xf32>
    %101 = arith.addf %97, %100 : vector<80x16xf32>
    %c4_51 = arith.constant 4 : index
    %c0_52 = arith.constant 0 : index
    %c0_53 = arith.constant 0 : index
    %102 = vector.load %arg6[%c4_51, %c0_52, %c0_53] : memref<12x32x16xf32, #tpu.memory_space<vmem>>, vector<1x32x16xf32>
    %103 = vector.shape_cast %102 : vector<1x32x16xf32> to vector<32x16xf32>
    %104 = arith.truncf %80 : vector<80x32xf32> to vector<80x32xbf16>
    %105 = arith.truncf %103 : vector<32x16xf32> to vector<32x16xbf16>
    %cst_54 = arith.constant dense<0.000000e+00> : vector<80x16xf32>
    %106 = tpu.matmul %104, %105, %cst_54 {dimension_numbers = #tpu.dot_dimension_numbers<[1], [0], [0], [1], [0, 0, 1, 1], [], []>} : vector<80x32xbf16>, vector<32x16xbf16>, vector<80x16xf32> -> vector<80x16xf32>
    %c4_55 = arith.constant 4 : index
    %c0_56 = arith.constant 0 : index
    %c0_57 = arith.constant 0 : index
    %107 = vector.load %arg7[%c4_55, %c0_56, %c0_57] : memref<12x1x16xf32, #tpu.memory_space<vmem>>, vector<1x1x16xf32>
    %108 = vector.shape_cast %107 : vector<1x1x16xf32> to vector<1x16xf32>
    %109 = vector.broadcast %108 : vector<1x16xf32> to vector<80x16xf32>
    %110 = arith.addf %106, %109 : vector<80x16xf32>
    %111 = arith.truncf %92 : vector<80x16xf32> to vector<80x16xbf16>
    %112 = arith.truncf %101 : vector<80x16xf32> to vector<80x16xbf16>
    %cst_58 = arith.constant dense<0.000000e+00> : vector<80x80xf32>
    %113 = tpu.matmul %111, %112, %cst_58 {dimension_numbers = #tpu.dot_dimension_numbers<[1], [1], [0], [0], [0, 0, 1, 0], [], []>} : vector<80x16xbf16>, vector<80x16xbf16>, vector<80x80xf32> -> vector<80x80xf32>
    %cst_59 = arith.constant 2.500000e-01 : f32
    %114 = vector.broadcast %cst_59 : f32 to vector<80x80xf32>
    %115 = arith.mulf %113, %114 : vector<80x80xf32>
    %cst_60 = arith.constant dense<0xFF800000> : vector<80xf32>
    %116 = vector.multi_reduction <maximumf>, %115, %cst_60 [1] : vector<80x80xf32> to vector<80xf32>
    %117 = vector.shape_cast %116 : vector<80xf32> to vector<80x1xf32>
    %118 = vector.broadcast %117 : vector<80x1xf32> to vector<80x80xf32>
    %119 = arith.subf %115, %118 : vector<80x80xf32>
    %120 = math.exp %119 : vector<80x80xf32>
    %cst_61 = arith.constant dense<0.000000e+00> : vector<80xf32>
    %121 = vector.multi_reduction <add>, %120, %cst_61 [1] : vector<80x80xf32> to vector<80xf32>
    %122 = vector.shape_cast %121 : vector<80xf32> to vector<80x1xf32>
    %123 = tpu.reciprocal %122 {approx = true} : vector<80x1xf32> -> vector<80x1xf32>
    %124 = vector.broadcast %123 : vector<80x1xf32> to vector<80x80xf32>
    %125 = arith.mulf %120, %124 : vector<80x80xf32>
    %126 = arith.truncf %125 : vector<80x80xf32> to vector<80x80xbf16>
    %127 = arith.truncf %110 : vector<80x16xf32> to vector<80x16xbf16>
    %cst_62 = arith.constant dense<0.000000e+00> : vector<80x16xf32>
    %128 = tpu.matmul %126, %127, %cst_62 {dimension_numbers = #tpu.dot_dimension_numbers<[1], [0], [0], [1], [0, 0, 1, 1], [], []>} : vector<80x80xbf16>, vector<80x16xbf16>, vector<80x16xf32> -> vector<80x16xf32>
    %c0_63 = arith.constant 0 : index
    %c0_64 = arith.constant 0 : index
    %c0_65 = arith.constant 0 : index
    %129 = vector.load %arg8[%c0_63, %c0_64, %c0_65] : memref<4x16x32xf32, #tpu.memory_space<vmem>>, vector<1x16x32xf32>
    %130 = vector.shape_cast %129 : vector<1x16x32xf32> to vector<16x32xf32>
    %131 = arith.truncf %128 : vector<80x16xf32> to vector<80x16xbf16>
    %132 = arith.truncf %130 : vector<16x32xf32> to vector<16x32xbf16>
    %cst_66 = arith.constant dense<0.000000e+00> : vector<80x32xf32>
    %133 = tpu.matmul %131, %132, %cst_66 {dimension_numbers = #tpu.dot_dimension_numbers<[1], [0], [0], [1], [0, 0, 1, 1], [], []>} : vector<80x16xbf16>, vector<16x32xbf16>, vector<80x32xf32> -> vector<80x32xf32>
    %134 = arith.addf %83, %133 : vector<80x32xf32>
    %c1_67 = arith.constant 1 : index
    %c0_68 = arith.constant 0 : index
    %c0_69 = arith.constant 0 : index
    %135 = vector.load %arg6[%c1_67, %c0_68, %c0_69] : memref<12x32x16xf32, #tpu.memory_space<vmem>>, vector<1x32x16xf32>
    %136 = vector.shape_cast %135 : vector<1x32x16xf32> to vector<32x16xf32>
    %137 = arith.truncf %81 : vector<80x32xf32> to vector<80x32xbf16>
    %138 = arith.truncf %136 : vector<32x16xf32> to vector<32x16xbf16>
    %cst_70 = arith.constant dense<0.000000e+00> : vector<80x16xf32>
    %139 = tpu.matmul %137, %138, %cst_70 {dimension_numbers = #tpu.dot_dimension_numbers<[1], [0], [0], [1], [0, 0, 1, 1], [], []>} : vector<80x32xbf16>, vector<32x16xbf16>, vector<80x16xf32> -> vector<80x16xf32>
    %c1_71 = arith.constant 1 : index
    %c0_72 = arith.constant 0 : index
    %c0_73 = arith.constant 0 : index
    %140 = vector.load %arg7[%c1_71, %c0_72, %c0_73] : memref<12x1x16xf32, #tpu.memory_space<vmem>>, vector<1x1x16xf32>
    %141 = vector.shape_cast %140 : vector<1x1x16xf32> to vector<1x16xf32>
    %142 = vector.broadcast %141 : vector<1x16xf32> to vector<80x16xf32>
    %143 = arith.addf %139, %142 : vector<80x16xf32>
    %c3_74 = arith.constant 3 : index
    %c0_75 = arith.constant 0 : index
    %c0_76 = arith.constant 0 : index
    %144 = vector.load %arg6[%c3_74, %c0_75, %c0_76] : memref<12x32x16xf32, #tpu.memory_space<vmem>>, vector<1x32x16xf32>
    %145 = vector.shape_cast %144 : vector<1x32x16xf32> to vector<32x16xf32>
    %146 = arith.truncf %82 : vector<80x32xf32> to vector<80x32xbf16>
    %147 = arith.truncf %145 : vector<32x16xf32> to vector<32x16xbf16>
    %cst_77 = arith.constant dense<0.000000e+00> : vector<80x16xf32>
    %148 = tpu.matmul %146, %147, %cst_77 {dimension_numbers = #tpu.dot_dimension_numbers<[1], [0], [0], [1], [0, 0, 1, 1], [], []>} : vector<80x32xbf16>, vector<32x16xbf16>, vector<80x16xf32> -> vector<80x16xf32>
    %c3_78 = arith.constant 3 : index
    %c0_79 = arith.constant 0 : index
    %c0_80 = arith.constant 0 : index
    %149 = vector.load %arg7[%c3_78, %c0_79, %c0_80] : memref<12x1x16xf32, #tpu.memory_space<vmem>>, vector<1x1x16xf32>
    %150 = vector.shape_cast %149 : vector<1x1x16xf32> to vector<1x16xf32>
    %151 = vector.broadcast %150 : vector<1x16xf32> to vector<80x16xf32>
    %152 = arith.addf %148, %151 : vector<80x16xf32>
    %c5_81 = arith.constant 5 : index
    %c0_82 = arith.constant 0 : index
    %c0_83 = arith.constant 0 : index
    %153 = vector.load %arg6[%c5_81, %c0_82, %c0_83] : memref<12x32x16xf32, #tpu.memory_space<vmem>>, vector<1x32x16xf32>
    %154 = vector.shape_cast %153 : vector<1x32x16xf32> to vector<32x16xf32>
    %155 = arith.truncf %80 : vector<80x32xf32> to vector<80x32xbf16>
    %156 = arith.truncf %154 : vector<32x16xf32> to vector<32x16xbf16>
    %cst_84 = arith.constant dense<0.000000e+00> : vector<80x16xf32>
    %157 = tpu.matmul %155, %156, %cst_84 {dimension_numbers = #tpu.dot_dimension_numbers<[1], [0], [0], [1], [0, 0, 1, 1], [], []>} : vector<80x32xbf16>, vector<32x16xbf16>, vector<80x16xf32> -> vector<80x16xf32>
    %c5_85 = arith.constant 5 : index
    %c0_86 = arith.constant 0 : index
    %c0_87 = arith.constant 0 : index
    %158 = vector.load %arg7[%c5_85, %c0_86, %c0_87] : memref<12x1x16xf32, #tpu.memory_space<vmem>>, vector<1x1x16xf32>
    %159 = vector.shape_cast %158 : vector<1x1x16xf32> to vector<1x16xf32>
    %160 = vector.broadcast %159 : vector<1x16xf32> to vector<80x16xf32>
    %161 = arith.addf %157, %160 : vector<80x16xf32>
    %162 = arith.truncf %143 : vector<80x16xf32> to vector<80x16xbf16>
    %163 = arith.truncf %152 : vector<80x16xf32> to vector<80x16xbf16>
    %cst_88 = arith.constant dense<0.000000e+00> : vector<80x80xf32>
    %164 = tpu.matmul %162, %163, %cst_88 {dimension_numbers = #tpu.dot_dimension_numbers<[1], [1], [0], [0], [0, 0, 1, 0], [], []>} : vector<80x16xbf16>, vector<80x16xbf16>, vector<80x80xf32> -> vector<80x80xf32>
    %cst_89 = arith.constant 2.500000e-01 : f32
    %165 = vector.broadcast %cst_89 : f32 to vector<80x80xf32>
    %166 = arith.mulf %164, %165 : vector<80x80xf32>
    %cst_90 = arith.constant dense<0xFF800000> : vector<80xf32>
    %167 = vector.multi_reduction <maximumf>, %166, %cst_90 [1] : vector<80x80xf32> to vector<80xf32>
    %168 = vector.shape_cast %167 : vector<80xf32> to vector<80x1xf32>
    %169 = vector.broadcast %168 : vector<80x1xf32> to vector<80x80xf32>
    %170 = arith.subf %166, %169 : vector<80x80xf32>
    %171 = math.exp %170 : vector<80x80xf32>
    %cst_91 = arith.constant dense<0.000000e+00> : vector<80xf32>
    %172 = vector.multi_reduction <add>, %171, %cst_91 [1] : vector<80x80xf32> to vector<80xf32>
    %173 = vector.shape_cast %172 : vector<80xf32> to vector<80x1xf32>
    %174 = tpu.reciprocal %173 {approx = true} : vector<80x1xf32> -> vector<80x1xf32>
    %175 = vector.broadcast %174 : vector<80x1xf32> to vector<80x80xf32>
    %176 = arith.mulf %171, %175 : vector<80x80xf32>
    %177 = arith.truncf %176 : vector<80x80xf32> to vector<80x80xbf16>
    %178 = arith.truncf %161 : vector<80x16xf32> to vector<80x16xbf16>
    %cst_92 = arith.constant dense<0.000000e+00> : vector<80x16xf32>
    %179 = tpu.matmul %177, %178, %cst_92 {dimension_numbers = #tpu.dot_dimension_numbers<[1], [0], [0], [1], [0, 0, 1, 1], [], []>} : vector<80x80xbf16>, vector<80x16xbf16>, vector<80x16xf32> -> vector<80x16xf32>
    %c1_93 = arith.constant 1 : index
    %c0_94 = arith.constant 0 : index
    %c0_95 = arith.constant 0 : index
    %180 = vector.load %arg8[%c1_93, %c0_94, %c0_95] : memref<4x16x32xf32, #tpu.memory_space<vmem>>, vector<1x16x32xf32>
    %181 = vector.shape_cast %180 : vector<1x16x32xf32> to vector<16x32xf32>
    %182 = arith.truncf %179 : vector<80x16xf32> to vector<80x16xbf16>
    %183 = arith.truncf %181 : vector<16x32xf32> to vector<16x32xbf16>
    %cst_96 = arith.constant dense<0.000000e+00> : vector<80x32xf32>
    %184 = tpu.matmul %182, %183, %cst_96 {dimension_numbers = #tpu.dot_dimension_numbers<[1], [0], [0], [1], [0, 0, 1, 1], [], []>} : vector<80x16xbf16>, vector<16x32xbf16>, vector<80x32xf32> -> vector<80x32xf32>
    %185 = arith.addf %134, %184 : vector<80x32xf32>
    %c6 = arith.constant 6 : index
    %c0_97 = arith.constant 0 : index
    %c0_98 = arith.constant 0 : index
    %186 = vector.load %arg5[%c6, %c0_97, %c0_98] : memref<18x1x32xf32, #tpu.memory_space<vmem>>, vector<1x1x32xf32>
    %187 = vector.shape_cast %186 : vector<1x1x32xf32> to vector<1x32xf32>
    %188 = vector.broadcast %187 : vector<1x32xf32> to vector<80x32xf32>
    %189 = arith.addf %185, %188 : vector<80x32xf32>
    %190 = arith.addf %54, %189 : vector<80x32xf32>
    %cst_99 = arith.constant dense<0.000000e+00> : vector<80xf32>
    %191 = vector.multi_reduction <add>, %190, %cst_99 [1] : vector<80x32xf32> to vector<80xf32>
    %192 = vector.shape_cast %191 : vector<80xf32> to vector<80x1xf32>
    %cst_100 = arith.constant 3.200000e+01 : f32
    %193 = vector.broadcast %cst_100 : f32 to vector<80x1xf32>
    %194 = arith.divf %192, %193 : vector<80x1xf32>
    %195 = vector.broadcast %194 : vector<80x1xf32> to vector<80x32xf32>
    %196 = arith.subf %190, %195 : vector<80x32xf32>
    %197 = arith.mulf %196, %196 : vector<80x32xf32>
    %cst_101 = arith.constant dense<0.000000e+00> : vector<80xf32>
    %198 = vector.multi_reduction <add>, %197, %cst_101 [1] : vector<80x32xf32> to vector<80xf32>
    %199 = vector.shape_cast %198 : vector<80xf32> to vector<80x1xf32>
    %cst_102 = arith.constant 3.200000e+01 : f32
    %200 = vector.broadcast %cst_102 : f32 to vector<80x1xf32>
    %201 = arith.divf %199, %200 : vector<80x1xf32>
    %202 = vector.broadcast %194 : vector<80x1xf32> to vector<80x32xf32>
    %203 = arith.subf %190, %202 : vector<80x32xf32>
    %cst_103 = arith.constant 9.99999974E-6 : f32
    %204 = vector.broadcast %cst_103 : f32 to vector<80x1xf32>
    %205 = arith.addf %201, %204 : vector<80x1xf32>
    %206 = math.rsqrt %205 : vector<80x1xf32>
    %207 = vector.broadcast %206 : vector<80x1xf32> to vector<80x32xf32>
    %208 = arith.mulf %203, %207 : vector<80x32xf32>
    %c4_104 = arith.constant 4 : index
    %c0_105 = arith.constant 0 : index
    %c0_106 = arith.constant 0 : index
    %209 = vector.load %arg5[%c4_104, %c0_105, %c0_106] : memref<18x1x32xf32, #tpu.memory_space<vmem>>, vector<1x1x32xf32>
    %210 = vector.shape_cast %209 : vector<1x1x32xf32> to vector<1x32xf32>
    %211 = vector.broadcast %210 : vector<1x32xf32> to vector<80x32xf32>
    %212 = arith.mulf %208, %211 : vector<80x32xf32>
    %c5_107 = arith.constant 5 : index
    %c0_108 = arith.constant 0 : index
    %c0_109 = arith.constant 0 : index
    %213 = vector.load %arg5[%c5_107, %c0_108, %c0_109] : memref<18x1x32xf32, #tpu.memory_space<vmem>>, vector<1x1x32xf32>
    %214 = vector.shape_cast %213 : vector<1x1x32xf32> to vector<1x32xf32>
    %215 = vector.broadcast %214 : vector<1x32xf32> to vector<80x32xf32>
    %216 = arith.addf %212, %215 : vector<80x32xf32>
    %c0_110 = arith.constant 0 : index
    %c0_111 = arith.constant 0 : index
    %c0_112 = arith.constant 0 : index
    %217 = vector.load %arg9[%c0_110, %c0_111, %c0_112] : memref<2x32x64xf32, #tpu.memory_space<vmem>>, vector<1x32x64xf32>
    %218 = vector.shape_cast %217 : vector<1x32x64xf32> to vector<32x64xf32>
    %219 = arith.truncf %216 : vector<80x32xf32> to vector<80x32xbf16>
    %220 = arith.truncf %218 : vector<32x64xf32> to vector<32x64xbf16>
    %cst_113 = arith.constant dense<0.000000e+00> : vector<80x64xf32>
    %221 = tpu.matmul %219, %220, %cst_113 {dimension_numbers = #tpu.dot_dimension_numbers<[1], [0], [0], [1], [0, 0, 1, 1], [], []>} : vector<80x32xbf16>, vector<32x64xbf16>, vector<80x64xf32> -> vector<80x64xf32>
    %c0_114 = arith.constant 0 : index
    %c0_115 = arith.constant 0 : index
    %c0_116 = arith.constant 0 : index
    %222 = vector.load %arg10[%c0_114, %c0_115, %c0_116] : memref<2x1x64xf32, #tpu.memory_space<vmem>>, vector<1x1x64xf32>
    %223 = vector.shape_cast %222 : vector<1x1x64xf32> to vector<1x64xf32>
    %224 = vector.broadcast %223 : vector<1x64xf32> to vector<80x64xf32>
    %225 = arith.addf %221, %224 : vector<80x64xf32>
    %226 = arith.mulf %225, %225 : vector<80x64xf32>
    %227 = arith.mulf %225, %226 : vector<80x64xf32>
    %cst_117 = arith.constant 4.471500e-02 : f32
    %228 = vector.broadcast %cst_117 : f32 to vector<80x64xf32>
    %229 = arith.mulf %228, %227 : vector<80x64xf32>
    %230 = arith.addf %225, %229 : vector<80x64xf32>
    %cst_118 = arith.constant 0.797884583 : f32
    %231 = vector.broadcast %cst_118 : f32 to vector<80x64xf32>
    %232 = arith.mulf %231, %230 : vector<80x64xf32>
    %233 = math.tanh %232 : vector<80x64xf32>
    %cst_119 = arith.constant 1.000000e+00 : f32
    %234 = vector.broadcast %cst_119 : f32 to vector<80x64xf32>
    %235 = arith.addf %234, %233 : vector<80x64xf32>
    %cst_120 = arith.constant 5.000000e-01 : f32
    %236 = vector.broadcast %cst_120 : f32 to vector<80x64xf32>
    %237 = arith.mulf %236, %235 : vector<80x64xf32>
    %238 = arith.mulf %225, %237 : vector<80x64xf32>
    %c0_121 = arith.constant 0 : index
    %c0_122 = arith.constant 0 : index
    %c0_123 = arith.constant 0 : index
    %239 = vector.load %arg11[%c0_121, %c0_122, %c0_123] : memref<2x64x32xf32, #tpu.memory_space<vmem>>, vector<1x64x32xf32>
    %240 = vector.shape_cast %239 : vector<1x64x32xf32> to vector<64x32xf32>
    %241 = arith.truncf %238 : vector<80x64xf32> to vector<80x64xbf16>
    %242 = arith.truncf %240 : vector<64x32xf32> to vector<64x32xbf16>
    %cst_124 = arith.constant dense<0.000000e+00> : vector<80x32xf32>
    %243 = tpu.matmul %241, %242, %cst_124 {dimension_numbers = #tpu.dot_dimension_numbers<[1], [0], [0], [1], [0, 0, 1, 1], [], []>} : vector<80x64xbf16>, vector<64x32xbf16>, vector<80x32xf32> -> vector<80x32xf32>
    %244 = arith.addf %190, %243 : vector<80x32xf32>
    %c7 = arith.constant 7 : index
    %c0_125 = arith.constant 0 : index
    %c0_126 = arith.constant 0 : index
    %245 = vector.load %arg5[%c7, %c0_125, %c0_126] : memref<18x1x32xf32, #tpu.memory_space<vmem>>, vector<1x1x32xf32>
    %246 = vector.shape_cast %245 : vector<1x1x32xf32> to vector<1x32xf32>
    %247 = vector.broadcast %246 : vector<1x32xf32> to vector<80x32xf32>
    %248 = arith.addf %244, %247 : vector<80x32xf32>
    %249 = vector.extract_strided_slice %248 {offsets = [16, 0], sizes = [64, 32], strides = [1, 1]} : vector<80x32xf32> to vector<64x32xf32>
    %cst_127 = arith.constant dense<0.000000e+00> : vector<64xf32>
    %250 = vector.multi_reduction <add>, %249, %cst_127 [1] : vector<64x32xf32> to vector<64xf32>
    %251 = vector.shape_cast %250 : vector<64xf32> to vector<64x1xf32>
    %cst_128 = arith.constant 3.200000e+01 : f32
    %252 = vector.broadcast %cst_128 : f32 to vector<64x1xf32>
    %253 = arith.divf %251, %252 : vector<64x1xf32>
    %254 = vector.broadcast %253 : vector<64x1xf32> to vector<64x32xf32>
    %255 = arith.subf %249, %254 : vector<64x32xf32>
    %256 = arith.mulf %255, %255 : vector<64x32xf32>
    %cst_129 = arith.constant dense<0.000000e+00> : vector<64xf32>
    %257 = vector.multi_reduction <add>, %256, %cst_129 [1] : vector<64x32xf32> to vector<64xf32>
    %258 = vector.shape_cast %257 : vector<64xf32> to vector<64x1xf32>
    %cst_130 = arith.constant 3.200000e+01 : f32
    %259 = vector.broadcast %cst_130 : f32 to vector<64x1xf32>
    %260 = arith.divf %258, %259 : vector<64x1xf32>
    %261 = vector.broadcast %253 : vector<64x1xf32> to vector<64x32xf32>
    %262 = arith.subf %249, %261 : vector<64x32xf32>
    %cst_131 = arith.constant 9.99999974E-6 : f32
    %263 = vector.broadcast %cst_131 : f32 to vector<64x1xf32>
    %264 = arith.addf %260, %263 : vector<64x1xf32>
    %265 = math.rsqrt %264 : vector<64x1xf32>
    %266 = vector.broadcast %265 : vector<64x1xf32> to vector<64x32xf32>
    %267 = arith.mulf %262, %266 : vector<64x32xf32>
    %c8 = arith.constant 8 : index
    %c0_132 = arith.constant 0 : index
    %c0_133 = arith.constant 0 : index
    %268 = vector.load %arg5[%c8, %c0_132, %c0_133] : memref<18x1x32xf32, #tpu.memory_space<vmem>>, vector<1x1x32xf32>
    %269 = vector.shape_cast %268 : vector<1x1x32xf32> to vector<1x32xf32>
    %270 = vector.broadcast %269 : vector<1x32xf32> to vector<64x32xf32>
    %271 = arith.mulf %267, %270 : vector<64x32xf32>
    %c9 = arith.constant 9 : index
    %c0_134 = arith.constant 0 : index
    %c0_135 = arith.constant 0 : index
    %272 = vector.load %arg5[%c9, %c0_134, %c0_135] : memref<18x1x32xf32, #tpu.memory_space<vmem>>, vector<1x1x32xf32>
    %273 = vector.shape_cast %272 : vector<1x1x32xf32> to vector<1x32xf32>
    %274 = vector.broadcast %273 : vector<1x32xf32> to vector<64x32xf32>
    %275 = arith.addf %271, %274 : vector<64x32xf32>
    %cst_136 = arith.constant dense<0.000000e+00> : vector<80xf32>
    %276 = vector.multi_reduction <add>, %248, %cst_136 [1] : vector<80x32xf32> to vector<80xf32>
    %277 = vector.shape_cast %276 : vector<80xf32> to vector<80x1xf32>
    %cst_137 = arith.constant 3.200000e+01 : f32
    %278 = vector.broadcast %cst_137 : f32 to vector<80x1xf32>
    %279 = arith.divf %277, %278 : vector<80x1xf32>
    %280 = vector.broadcast %279 : vector<80x1xf32> to vector<80x32xf32>
    %281 = arith.subf %248, %280 : vector<80x32xf32>
    %282 = arith.mulf %281, %281 : vector<80x32xf32>
    %cst_138 = arith.constant dense<0.000000e+00> : vector<80xf32>
    %283 = vector.multi_reduction <add>, %282, %cst_138 [1] : vector<80x32xf32> to vector<80xf32>
    %284 = vector.shape_cast %283 : vector<80xf32> to vector<80x1xf32>
    %cst_139 = arith.constant 3.200000e+01 : f32
    %285 = vector.broadcast %cst_139 : f32 to vector<80x1xf32>
    %286 = arith.divf %284, %285 : vector<80x1xf32>
    %287 = vector.broadcast %279 : vector<80x1xf32> to vector<80x32xf32>
    %288 = arith.subf %248, %287 : vector<80x32xf32>
    %cst_140 = arith.constant 9.99999974E-6 : f32
    %289 = vector.broadcast %cst_140 : f32 to vector<80x1xf32>
    %290 = arith.addf %286, %289 : vector<80x1xf32>
    %291 = math.rsqrt %290 : vector<80x1xf32>
    %292 = vector.broadcast %291 : vector<80x1xf32> to vector<80x32xf32>
    %293 = arith.mulf %288, %292 : vector<80x32xf32>
    %c10 = arith.constant 10 : index
    %c0_141 = arith.constant 0 : index
    %c0_142 = arith.constant 0 : index
    %294 = vector.load %arg5[%c10, %c0_141, %c0_142] : memref<18x1x32xf32, #tpu.memory_space<vmem>>, vector<1x1x32xf32>
    %295 = vector.shape_cast %294 : vector<1x1x32xf32> to vector<1x32xf32>
    %296 = vector.broadcast %295 : vector<1x32xf32> to vector<80x32xf32>
    %297 = arith.mulf %293, %296 : vector<80x32xf32>
    %c11 = arith.constant 11 : index
    %c0_143 = arith.constant 0 : index
    %c0_144 = arith.constant 0 : index
    %298 = vector.load %arg5[%c11, %c0_143, %c0_144] : memref<18x1x32xf32, #tpu.memory_space<vmem>>, vector<1x1x32xf32>
    %299 = vector.shape_cast %298 : vector<1x1x32xf32> to vector<1x32xf32>
    %300 = vector.broadcast %299 : vector<1x32xf32> to vector<80x32xf32>
    %301 = arith.addf %297, %300 : vector<80x32xf32>
    %302 = arith.addf %275, %53 : vector<64x32xf32>
    %303 = arith.addf %301, %52 : vector<80x32xf32>
    %cst_145 = arith.constant 0.000000e+00 : f32
    %304 = vector.broadcast %cst_145 : f32 to vector<64x32xf32>
    %c6_146 = arith.constant 6 : index
    %c0_147 = arith.constant 0 : index
    %c0_148 = arith.constant 0 : index
    %305 = vector.load %arg6[%c6_146, %c0_147, %c0_148] : memref<12x32x16xf32, #tpu.memory_space<vmem>>, vector<1x32x16xf32>
    %306 = vector.shape_cast %305 : vector<1x32x16xf32> to vector<32x16xf32>
    %307 = arith.truncf %302 : vector<64x32xf32> to vector<64x32xbf16>
    %308 = arith.truncf %306 : vector<32x16xf32> to vector<32x16xbf16>
    %cst_149 = arith.constant dense<0.000000e+00> : vector<64x16xf32>
    %309 = tpu.matmul %307, %308, %cst_149 {dimension_numbers = #tpu.dot_dimension_numbers<[1], [0], [0], [1], [0, 0, 1, 1], [], []>} : vector<64x32xbf16>, vector<32x16xbf16>, vector<64x16xf32> -> vector<64x16xf32>
    %c6_150 = arith.constant 6 : index
    %c0_151 = arith.constant 0 : index
    %c0_152 = arith.constant 0 : index
    %310 = vector.load %arg7[%c6_150, %c0_151, %c0_152] : memref<12x1x16xf32, #tpu.memory_space<vmem>>, vector<1x1x16xf32>
    %311 = vector.shape_cast %310 : vector<1x1x16xf32> to vector<1x16xf32>
    %312 = vector.broadcast %311 : vector<1x16xf32> to vector<64x16xf32>
    %313 = arith.addf %309, %312 : vector<64x16xf32>
    %c8_153 = arith.constant 8 : index
    %c0_154 = arith.constant 0 : index
    %c0_155 = arith.constant 0 : index
    %314 = vector.load %arg6[%c8_153, %c0_154, %c0_155] : memref<12x32x16xf32, #tpu.memory_space<vmem>>, vector<1x32x16xf32>
    %315 = vector.shape_cast %314 : vector<1x32x16xf32> to vector<32x16xf32>
    %316 = arith.truncf %303 : vector<80x32xf32> to vector<80x32xbf16>
    %317 = arith.truncf %315 : vector<32x16xf32> to vector<32x16xbf16>
    %cst_156 = arith.constant dense<0.000000e+00> : vector<80x16xf32>
    %318 = tpu.matmul %316, %317, %cst_156 {dimension_numbers = #tpu.dot_dimension_numbers<[1], [0], [0], [1], [0, 0, 1, 1], [], []>} : vector<80x32xbf16>, vector<32x16xbf16>, vector<80x16xf32> -> vector<80x16xf32>
    %c8_157 = arith.constant 8 : index
    %c0_158 = arith.constant 0 : index
    %c0_159 = arith.constant 0 : index
    %319 = vector.load %arg7[%c8_157, %c0_158, %c0_159] : memref<12x1x16xf32, #tpu.memory_space<vmem>>, vector<1x1x16xf32>
    %320 = vector.shape_cast %319 : vector<1x1x16xf32> to vector<1x16xf32>
    %321 = vector.broadcast %320 : vector<1x16xf32> to vector<80x16xf32>
    %322 = arith.addf %318, %321 : vector<80x16xf32>
    %c10_160 = arith.constant 10 : index
    %c0_161 = arith.constant 0 : index
    %c0_162 = arith.constant 0 : index
    %323 = vector.load %arg6[%c10_160, %c0_161, %c0_162] : memref<12x32x16xf32, #tpu.memory_space<vmem>>, vector<1x32x16xf32>
    %324 = vector.shape_cast %323 : vector<1x32x16xf32> to vector<32x16xf32>
    %325 = arith.truncf %301 : vector<80x32xf32> to vector<80x32xbf16>
    %326 = arith.truncf %324 : vector<32x16xf32> to vector<32x16xbf16>
    %cst_163 = arith.constant dense<0.000000e+00> : vector<80x16xf32>
    %327 = tpu.matmul %325, %326, %cst_163 {dimension_numbers = #tpu.dot_dimension_numbers<[1], [0], [0], [1], [0, 0, 1, 1], [], []>} : vector<80x32xbf16>, vector<32x16xbf16>, vector<80x16xf32> -> vector<80x16xf32>
    %c10_164 = arith.constant 10 : index
    %c0_165 = arith.constant 0 : index
    %c0_166 = arith.constant 0 : index
    %328 = vector.load %arg7[%c10_164, %c0_165, %c0_166] : memref<12x1x16xf32, #tpu.memory_space<vmem>>, vector<1x1x16xf32>
    %329 = vector.shape_cast %328 : vector<1x1x16xf32> to vector<1x16xf32>
    %330 = vector.broadcast %329 : vector<1x16xf32> to vector<80x16xf32>
    %331 = arith.addf %327, %330 : vector<80x16xf32>
    %332 = arith.truncf %313 : vector<64x16xf32> to vector<64x16xbf16>
    %333 = arith.truncf %322 : vector<80x16xf32> to vector<80x16xbf16>
    %cst_167 = arith.constant dense<0.000000e+00> : vector<64x80xf32>
    %334 = tpu.matmul %332, %333, %cst_167 {dimension_numbers = #tpu.dot_dimension_numbers<[1], [1], [0], [0], [0, 0, 1, 0], [], []>} : vector<64x16xbf16>, vector<80x16xbf16>, vector<64x80xf32> -> vector<64x80xf32>
    %cst_168 = arith.constant 2.500000e-01 : f32
    %335 = vector.broadcast %cst_168 : f32 to vector<64x80xf32>
    %336 = arith.mulf %334, %335 : vector<64x80xf32>
    %cst_169 = arith.constant dense<0xFF800000> : vector<64xf32>
    %337 = vector.multi_reduction <maximumf>, %336, %cst_169 [1] : vector<64x80xf32> to vector<64xf32>
    %338 = vector.shape_cast %337 : vector<64xf32> to vector<64x1xf32>
    %339 = vector.broadcast %338 : vector<64x1xf32> to vector<64x80xf32>
    %340 = arith.subf %336, %339 : vector<64x80xf32>
    %341 = math.exp %340 : vector<64x80xf32>
    %cst_170 = arith.constant dense<0.000000e+00> : vector<64xf32>
    %342 = vector.multi_reduction <add>, %341, %cst_170 [1] : vector<64x80xf32> to vector<64xf32>
    %343 = vector.shape_cast %342 : vector<64xf32> to vector<64x1xf32>
    %344 = tpu.reciprocal %343 {approx = true} : vector<64x1xf32> -> vector<64x1xf32>
    %345 = vector.broadcast %344 : vector<64x1xf32> to vector<64x80xf32>
    %346 = arith.mulf %341, %345 : vector<64x80xf32>
    %347 = arith.truncf %346 : vector<64x80xf32> to vector<64x80xbf16>
    %348 = arith.truncf %331 : vector<80x16xf32> to vector<80x16xbf16>
    %cst_171 = arith.constant dense<0.000000e+00> : vector<64x16xf32>
    %349 = tpu.matmul %347, %348, %cst_171 {dimension_numbers = #tpu.dot_dimension_numbers<[1], [0], [0], [1], [0, 0, 1, 1], [], []>} : vector<64x80xbf16>, vector<80x16xbf16>, vector<64x16xf32> -> vector<64x16xf32>
    %c2_172 = arith.constant 2 : index
    %c0_173 = arith.constant 0 : index
    %c0_174 = arith.constant 0 : index
    %350 = vector.load %arg8[%c2_172, %c0_173, %c0_174] : memref<4x16x32xf32, #tpu.memory_space<vmem>>, vector<1x16x32xf32>
    %351 = vector.shape_cast %350 : vector<1x16x32xf32> to vector<16x32xf32>
    %352 = arith.truncf %349 : vector<64x16xf32> to vector<64x16xbf16>
    %353 = arith.truncf %351 : vector<16x32xf32> to vector<16x32xbf16>
    %cst_175 = arith.constant dense<0.000000e+00> : vector<64x32xf32>
    %354 = tpu.matmul %352, %353, %cst_175 {dimension_numbers = #tpu.dot_dimension_numbers<[1], [0], [0], [1], [0, 0, 1, 1], [], []>} : vector<64x16xbf16>, vector<16x32xbf16>, vector<64x32xf32> -> vector<64x32xf32>
    %355 = arith.addf %304, %354 : vector<64x32xf32>
    %c7_176 = arith.constant 7 : index
    %c0_177 = arith.constant 0 : index
    %c0_178 = arith.constant 0 : index
    %356 = vector.load %arg6[%c7_176, %c0_177, %c0_178] : memref<12x32x16xf32, #tpu.memory_space<vmem>>, vector<1x32x16xf32>
    %357 = vector.shape_cast %356 : vector<1x32x16xf32> to vector<32x16xf32>
    %358 = arith.truncf %302 : vector<64x32xf32> to vector<64x32xbf16>
    %359 = arith.truncf %357 : vector<32x16xf32> to vector<32x16xbf16>
    %cst_179 = arith.constant dense<0.000000e+00> : vector<64x16xf32>
    %360 = tpu.matmul %358, %359, %cst_179 {dimension_numbers = #tpu.dot_dimension_numbers<[1], [0], [0], [1], [0, 0, 1, 1], [], []>} : vector<64x32xbf16>, vector<32x16xbf16>, vector<64x16xf32> -> vector<64x16xf32>
    %c7_180 = arith.constant 7 : index
    %c0_181 = arith.constant 0 : index
    %c0_182 = arith.constant 0 : index
    %361 = vector.load %arg7[%c7_180, %c0_181, %c0_182] : memref<12x1x16xf32, #tpu.memory_space<vmem>>, vector<1x1x16xf32>
    %362 = vector.shape_cast %361 : vector<1x1x16xf32> to vector<1x16xf32>
    %363 = vector.broadcast %362 : vector<1x16xf32> to vector<64x16xf32>
    %364 = arith.addf %360, %363 : vector<64x16xf32>
    %c9_183 = arith.constant 9 : index
    %c0_184 = arith.constant 0 : index
    %c0_185 = arith.constant 0 : index
    %365 = vector.load %arg6[%c9_183, %c0_184, %c0_185] : memref<12x32x16xf32, #tpu.memory_space<vmem>>, vector<1x32x16xf32>
    %366 = vector.shape_cast %365 : vector<1x32x16xf32> to vector<32x16xf32>
    %367 = arith.truncf %303 : vector<80x32xf32> to vector<80x32xbf16>
    %368 = arith.truncf %366 : vector<32x16xf32> to vector<32x16xbf16>
    %cst_186 = arith.constant dense<0.000000e+00> : vector<80x16xf32>
    %369 = tpu.matmul %367, %368, %cst_186 {dimension_numbers = #tpu.dot_dimension_numbers<[1], [0], [0], [1], [0, 0, 1, 1], [], []>} : vector<80x32xbf16>, vector<32x16xbf16>, vector<80x16xf32> -> vector<80x16xf32>
    %c9_187 = arith.constant 9 : index
    %c0_188 = arith.constant 0 : index
    %c0_189 = arith.constant 0 : index
    %370 = vector.load %arg7[%c9_187, %c0_188, %c0_189] : memref<12x1x16xf32, #tpu.memory_space<vmem>>, vector<1x1x16xf32>
    %371 = vector.shape_cast %370 : vector<1x1x16xf32> to vector<1x16xf32>
    %372 = vector.broadcast %371 : vector<1x16xf32> to vector<80x16xf32>
    %373 = arith.addf %369, %372 : vector<80x16xf32>
    %c11_190 = arith.constant 11 : index
    %c0_191 = arith.constant 0 : index
    %c0_192 = arith.constant 0 : index
    %374 = vector.load %arg6[%c11_190, %c0_191, %c0_192] : memref<12x32x16xf32, #tpu.memory_space<vmem>>, vector<1x32x16xf32>
    %375 = vector.shape_cast %374 : vector<1x32x16xf32> to vector<32x16xf32>
    %376 = arith.truncf %301 : vector<80x32xf32> to vector<80x32xbf16>
    %377 = arith.truncf %375 : vector<32x16xf32> to vector<32x16xbf16>
    %cst_193 = arith.constant dense<0.000000e+00> : vector<80x16xf32>
    %378 = tpu.matmul %376, %377, %cst_193 {dimension_numbers = #tpu.dot_dimension_numbers<[1], [0], [0], [1], [0, 0, 1, 1], [], []>} : vector<80x32xbf16>, vector<32x16xbf16>, vector<80x16xf32> -> vector<80x16xf32>
    %c11_194 = arith.constant 11 : index
    %c0_195 = arith.constant 0 : index
    %c0_196 = arith.constant 0 : index
    %379 = vector.load %arg7[%c11_194, %c0_195, %c0_196] : memref<12x1x16xf32, #tpu.memory_space<vmem>>, vector<1x1x16xf32>
    %380 = vector.shape_cast %379 : vector<1x1x16xf32> to vector<1x16xf32>
    %381 = vector.broadcast %380 : vector<1x16xf32> to vector<80x16xf32>
    %382 = arith.addf %378, %381 : vector<80x16xf32>
    %383 = arith.truncf %364 : vector<64x16xf32> to vector<64x16xbf16>
    %384 = arith.truncf %373 : vector<80x16xf32> to vector<80x16xbf16>
    %cst_197 = arith.constant dense<0.000000e+00> : vector<64x80xf32>
    %385 = tpu.matmul %383, %384, %cst_197 {dimension_numbers = #tpu.dot_dimension_numbers<[1], [1], [0], [0], [0, 0, 1, 0], [], []>} : vector<64x16xbf16>, vector<80x16xbf16>, vector<64x80xf32> -> vector<64x80xf32>
    %cst_198 = arith.constant 2.500000e-01 : f32
    %386 = vector.broadcast %cst_198 : f32 to vector<64x80xf32>
    %387 = arith.mulf %385, %386 : vector<64x80xf32>
    %cst_199 = arith.constant dense<0xFF800000> : vector<64xf32>
    %388 = vector.multi_reduction <maximumf>, %387, %cst_199 [1] : vector<64x80xf32> to vector<64xf32>
    %389 = vector.shape_cast %388 : vector<64xf32> to vector<64x1xf32>
    %390 = vector.broadcast %389 : vector<64x1xf32> to vector<64x80xf32>
    %391 = arith.subf %387, %390 : vector<64x80xf32>
    %392 = math.exp %391 : vector<64x80xf32>
    %cst_200 = arith.constant dense<0.000000e+00> : vector<64xf32>
    %393 = vector.multi_reduction <add>, %392, %cst_200 [1] : vector<64x80xf32> to vector<64xf32>
    %394 = vector.shape_cast %393 : vector<64xf32> to vector<64x1xf32>
    %395 = tpu.reciprocal %394 {approx = true} : vector<64x1xf32> -> vector<64x1xf32>
    %396 = vector.broadcast %395 : vector<64x1xf32> to vector<64x80xf32>
    %397 = arith.mulf %392, %396 : vector<64x80xf32>
    %398 = arith.truncf %397 : vector<64x80xf32> to vector<64x80xbf16>
    %399 = arith.truncf %382 : vector<80x16xf32> to vector<80x16xbf16>
    %cst_201 = arith.constant dense<0.000000e+00> : vector<64x16xf32>
    %400 = tpu.matmul %398, %399, %cst_201 {dimension_numbers = #tpu.dot_dimension_numbers<[1], [0], [0], [1], [0, 0, 1, 1], [], []>} : vector<64x80xbf16>, vector<80x16xbf16>, vector<64x16xf32> -> vector<64x16xf32>
    %c3_202 = arith.constant 3 : index
    %c0_203 = arith.constant 0 : index
    %c0_204 = arith.constant 0 : index
    %401 = vector.load %arg8[%c3_202, %c0_203, %c0_204] : memref<4x16x32xf32, #tpu.memory_space<vmem>>, vector<1x16x32xf32>
    %402 = vector.shape_cast %401 : vector<1x16x32xf32> to vector<16x32xf32>
    %403 = arith.truncf %400 : vector<64x16xf32> to vector<64x16xbf16>
    %404 = arith.truncf %402 : vector<16x32xf32> to vector<16x32xbf16>
    %cst_205 = arith.constant dense<0.000000e+00> : vector<64x32xf32>
    %405 = tpu.matmul %403, %404, %cst_205 {dimension_numbers = #tpu.dot_dimension_numbers<[1], [0], [0], [1], [0, 0, 1, 1], [], []>} : vector<64x16xbf16>, vector<16x32xbf16>, vector<64x32xf32> -> vector<64x32xf32>
    %406 = arith.addf %355, %405 : vector<64x32xf32>
    %c14 = arith.constant 14 : index
    %c0_206 = arith.constant 0 : index
    %c0_207 = arith.constant 0 : index
    %407 = vector.load %arg5[%c14, %c0_206, %c0_207] : memref<18x1x32xf32, #tpu.memory_space<vmem>>, vector<1x1x32xf32>
    %408 = vector.shape_cast %407 : vector<1x1x32xf32> to vector<1x32xf32>
    %409 = vector.broadcast %408 : vector<1x32xf32> to vector<64x32xf32>
    %410 = arith.addf %406, %409 : vector<64x32xf32>
    %411 = arith.addf %249, %410 : vector<64x32xf32>
    %cst_208 = arith.constant dense<0.000000e+00> : vector<64xf32>
    %412 = vector.multi_reduction <add>, %411, %cst_208 [1] : vector<64x32xf32> to vector<64xf32>
    %413 = vector.shape_cast %412 : vector<64xf32> to vector<64x1xf32>
    %cst_209 = arith.constant 3.200000e+01 : f32
    %414 = vector.broadcast %cst_209 : f32 to vector<64x1xf32>
    %415 = arith.divf %413, %414 : vector<64x1xf32>
    %416 = vector.broadcast %415 : vector<64x1xf32> to vector<64x32xf32>
    %417 = arith.subf %411, %416 : vector<64x32xf32>
    %418 = arith.mulf %417, %417 : vector<64x32xf32>
    %cst_210 = arith.constant dense<0.000000e+00> : vector<64xf32>
    %419 = vector.multi_reduction <add>, %418, %cst_210 [1] : vector<64x32xf32> to vector<64xf32>
    %420 = vector.shape_cast %419 : vector<64xf32> to vector<64x1xf32>
    %cst_211 = arith.constant 3.200000e+01 : f32
    %421 = vector.broadcast %cst_211 : f32 to vector<64x1xf32>
    %422 = arith.divf %420, %421 : vector<64x1xf32>
    %423 = vector.broadcast %415 : vector<64x1xf32> to vector<64x32xf32>
    %424 = arith.subf %411, %423 : vector<64x32xf32>
    %cst_212 = arith.constant 9.99999974E-6 : f32
    %425 = vector.broadcast %cst_212 : f32 to vector<64x1xf32>
    %426 = arith.addf %422, %425 : vector<64x1xf32>
    %427 = math.rsqrt %426 : vector<64x1xf32>
    %428 = vector.broadcast %427 : vector<64x1xf32> to vector<64x32xf32>
    %429 = arith.mulf %424, %428 : vector<64x32xf32>
    %c12 = arith.constant 12 : index
    %c0_213 = arith.constant 0 : index
    %c0_214 = arith.constant 0 : index
    %430 = vector.load %arg5[%c12, %c0_213, %c0_214] : memref<18x1x32xf32, #tpu.memory_space<vmem>>, vector<1x1x32xf32>
    %431 = vector.shape_cast %430 : vector<1x1x32xf32> to vector<1x32xf32>
    %432 = vector.broadcast %431 : vector<1x32xf32> to vector<64x32xf32>
    %433 = arith.mulf %429, %432 : vector<64x32xf32>
    %c13 = arith.constant 13 : index
    %c0_215 = arith.constant 0 : index
    %c0_216 = arith.constant 0 : index
    %434 = vector.load %arg5[%c13, %c0_215, %c0_216] : memref<18x1x32xf32, #tpu.memory_space<vmem>>, vector<1x1x32xf32>
    %435 = vector.shape_cast %434 : vector<1x1x32xf32> to vector<1x32xf32>
    %436 = vector.broadcast %435 : vector<1x32xf32> to vector<64x32xf32>
    %437 = arith.addf %433, %436 : vector<64x32xf32>
    %c1_217 = arith.constant 1 : index
    %c0_218 = arith.constant 0 : index
    %c0_219 = arith.constant 0 : index
    %438 = vector.load %arg9[%c1_217, %c0_218, %c0_219] : memref<2x32x64xf32, #tpu.memory_space<vmem>>, vector<1x32x64xf32>
    %439 = vector.shape_cast %438 : vector<1x32x64xf32> to vector<32x64xf32>
    %440 = arith.truncf %437 : vector<64x32xf32> to vector<64x32xbf16>
    %441 = arith.truncf %439 : vector<32x64xf32> to vector<32x64xbf16>
    %cst_220 = arith.constant dense<0.000000e+00> : vector<64x64xf32>
    %442 = tpu.matmul %440, %441, %cst_220 {dimension_numbers = #tpu.dot_dimension_numbers<[1], [0], [0], [1], [0, 0, 1, 1], [], []>} : vector<64x32xbf16>, vector<32x64xbf16>, vector<64x64xf32> -> vector<64x64xf32>
    %c1_221 = arith.constant 1 : index
    %c0_222 = arith.constant 0 : index
    %c0_223 = arith.constant 0 : index
    %443 = vector.load %arg10[%c1_221, %c0_222, %c0_223] : memref<2x1x64xf32, #tpu.memory_space<vmem>>, vector<1x1x64xf32>
    %444 = vector.shape_cast %443 : vector<1x1x64xf32> to vector<1x64xf32>
    %445 = vector.broadcast %444 : vector<1x64xf32> to vector<64x64xf32>
    %446 = arith.addf %442, %445 : vector<64x64xf32>
    %447 = arith.mulf %446, %446 : vector<64x64xf32>
    %448 = arith.mulf %446, %447 : vector<64x64xf32>
    %cst_224 = arith.constant 4.471500e-02 : f32
    %449 = vector.broadcast %cst_224 : f32 to vector<64x64xf32>
    %450 = arith.mulf %449, %448 : vector<64x64xf32>
    %451 = arith.addf %446, %450 : vector<64x64xf32>
    %cst_225 = arith.constant 0.797884583 : f32
    %452 = vector.broadcast %cst_225 : f32 to vector<64x64xf32>
    %453 = arith.mulf %452, %451 : vector<64x64xf32>
    %454 = math.tanh %453 : vector<64x64xf32>
    %cst_226 = arith.constant 1.000000e+00 : f32
    %455 = vector.broadcast %cst_226 : f32 to vector<64x64xf32>
    %456 = arith.addf %455, %454 : vector<64x64xf32>
    %cst_227 = arith.constant 5.000000e-01 : f32
    %457 = vector.broadcast %cst_227 : f32 to vector<64x64xf32>
    %458 = arith.mulf %457, %456 : vector<64x64xf32>
    %459 = arith.mulf %446, %458 : vector<64x64xf32>
    %c1_228 = arith.constant 1 : index
    %c0_229 = arith.constant 0 : index
    %c0_230 = arith.constant 0 : index
    %460 = vector.load %arg11[%c1_228, %c0_229, %c0_230] : memref<2x64x32xf32, #tpu.memory_space<vmem>>, vector<1x64x32xf32>
    %461 = vector.shape_cast %460 : vector<1x64x32xf32> to vector<64x32xf32>
    %462 = arith.truncf %459 : vector<64x64xf32> to vector<64x64xbf16>
    %463 = arith.truncf %461 : vector<64x32xf32> to vector<64x32xbf16>
    %cst_231 = arith.constant dense<0.000000e+00> : vector<64x32xf32>
    %464 = tpu.matmul %462, %463, %cst_231 {dimension_numbers = #tpu.dot_dimension_numbers<[1], [0], [0], [1], [0, 0, 1, 1], [], []>} : vector<64x64xbf16>, vector<64x32xbf16>, vector<64x32xf32> -> vector<64x32xf32>
    %465 = arith.addf %411, %464 : vector<64x32xf32>
    %c15 = arith.constant 15 : index
    %c0_232 = arith.constant 0 : index
    %c0_233 = arith.constant 0 : index
    %466 = vector.load %arg5[%c15, %c0_232, %c0_233] : memref<18x1x32xf32, #tpu.memory_space<vmem>>, vector<1x1x32xf32>
    %467 = vector.shape_cast %466 : vector<1x1x32xf32> to vector<1x32xf32>
    %468 = vector.broadcast %467 : vector<1x32xf32> to vector<64x32xf32>
    %469 = arith.addf %465, %468 : vector<64x32xf32>
    %cst_234 = arith.constant dense<0.000000e+00> : vector<64xf32>
    %470 = vector.multi_reduction <add>, %469, %cst_234 [1] : vector<64x32xf32> to vector<64xf32>
    %471 = vector.shape_cast %470 : vector<64xf32> to vector<64x1xf32>
    %cst_235 = arith.constant 3.200000e+01 : f32
    %472 = vector.broadcast %cst_235 : f32 to vector<64x1xf32>
    %473 = arith.divf %471, %472 : vector<64x1xf32>
    %474 = vector.broadcast %473 : vector<64x1xf32> to vector<64x32xf32>
    %475 = arith.subf %469, %474 : vector<64x32xf32>
    %476 = arith.mulf %475, %475 : vector<64x32xf32>
    %cst_236 = arith.constant dense<0.000000e+00> : vector<64xf32>
    %477 = vector.multi_reduction <add>, %476, %cst_236 [1] : vector<64x32xf32> to vector<64xf32>
    %478 = vector.shape_cast %477 : vector<64xf32> to vector<64x1xf32>
    %cst_237 = arith.constant 3.200000e+01 : f32
    %479 = vector.broadcast %cst_237 : f32 to vector<64x1xf32>
    %480 = arith.divf %478, %479 : vector<64x1xf32>
    %481 = vector.broadcast %473 : vector<64x1xf32> to vector<64x32xf32>
    %482 = arith.subf %469, %481 : vector<64x32xf32>
    %cst_238 = arith.constant 9.99999974E-6 : f32
    %483 = vector.broadcast %cst_238 : f32 to vector<64x1xf32>
    %484 = arith.addf %480, %483 : vector<64x1xf32>
    %485 = math.rsqrt %484 : vector<64x1xf32>
    %486 = vector.broadcast %485 : vector<64x1xf32> to vector<64x32xf32>
    %487 = arith.mulf %482, %486 : vector<64x32xf32>
    %c16 = arith.constant 16 : index
    %c0_239 = arith.constant 0 : index
    %c0_240 = arith.constant 0 : index
    %488 = vector.load %arg5[%c16, %c0_239, %c0_240] : memref<18x1x32xf32, #tpu.memory_space<vmem>>, vector<1x1x32xf32>
    %489 = vector.shape_cast %488 : vector<1x1x32xf32> to vector<1x32xf32>
    %490 = vector.broadcast %489 : vector<1x32xf32> to vector<64x32xf32>
    %491 = arith.mulf %487, %490 : vector<64x32xf32>
    %c17 = arith.constant 17 : index
    %c0_241 = arith.constant 0 : index
    %c0_242 = arith.constant 0 : index
    %492 = vector.load %arg5[%c17, %c0_241, %c0_242] : memref<18x1x32xf32, #tpu.memory_space<vmem>>, vector<1x1x32xf32>
    %493 = vector.shape_cast %492 : vector<1x1x32xf32> to vector<1x32xf32>
    %494 = vector.broadcast %493 : vector<1x32xf32> to vector<64x32xf32>
    %495 = arith.addf %491, %494 : vector<64x32xf32>
    %c0_243 = arith.constant 0 : index
    %c0_244 = arith.constant 0 : index
    %496 = vector.load %arg12[%c0_243, %c0_244] : memref<32x128xf32, #tpu.memory_space<vmem>>, vector<32x128xf32>
    %497 = arith.truncf %495 : vector<64x32xf32> to vector<64x32xbf16>
    %498 = arith.truncf %496 : vector<32x128xf32> to vector<32x128xbf16>
    %cst_245 = arith.constant dense<0.000000e+00> : vector<64x128xf32>
    %499 = tpu.matmul %497, %498, %cst_245 {dimension_numbers = #tpu.dot_dimension_numbers<[1], [0], [0], [1], [0, 0, 1, 1], [], []>} : vector<64x32xbf16>, vector<32x128xbf16>, vector<64x128xf32> -> vector<64x128xf32>
    %c0_246 = arith.constant 0 : index
    %c0_247 = arith.constant 0 : index
    %500 = vector.load %arg13[%c0_246, %c0_247] : memref<1x128xf32, #tpu.memory_space<vmem>>, vector<1x128xf32>
    %501 = vector.broadcast %500 : vector<1x128xf32> to vector<64x128xf32>
    %502 = arith.addf %499, %501 : vector<64x128xf32>
    %503 = arith.negf %502 : vector<64x128xf32>
    %504 = math.exp %503 : vector<64x128xf32>
    %cst_248 = arith.constant 1.000000e+00 : f32
    %505 = vector.broadcast %cst_248 : f32 to vector<64x128xf32>
    %506 = arith.addf %505, %504 : vector<64x128xf32>
    %507 = arith.divf %505, %506 : vector<64x128xf32>
    %c0_249 = arith.constant 0 : index
    %c0_250 = arith.constant 0 : index
    %c0_251 = arith.constant 0 : index
    %508 = vector.load %arg14[%c0_249, %c0_250, %c0_251] : memref<1x64x128xf32, #tpu.memory_space<vmem>>, vector<1x64x128xf32>
    %509 = vector.shape_cast %508 : vector<1x64x128xf32> to vector<64x128xf32>
    %510 = vector.shape_cast %507 : vector<64x128xf32> to vector<1x64x128xf32>
    tpu.vector_store %arg14[%c0_249, %c0_250, %c0_251], %510 {strides = array<i32>} : memref<1x64x128xf32, #tpu.memory_space<vmem>>, vector<1x64x128xf32>,
    return
  }
  func.func @transform_0(%arg0: i32) -> (i32, i32, i32) {
    %c0_i32 = arith.constant 0 : i32
    %c0_i32_0 = arith.constant 0 : i32
    %c0_i32_1 = arith.constant 0 : i32
    return %arg0, %c0_i32, %c0_i32_0 : i32, i32, i32
  }
  func.func @transform_1(%arg0: i32) -> (i32, i32, i32) {
    %c0_i32 = arith.constant 0 : i32
    %c0_i32_0 = arith.constant 0 : i32
    %c0_i32_1 = arith.constant 0 : i32
    return %arg0, %c0_i32, %c0_i32_0 : i32, i32, i32
  }
  func.func @transform_2(%arg0: i32) -> (i32, i32, i32) {
    %c0_i32 = arith.constant 0 : i32
    %c0_i32_0 = arith.constant 0 : i32
    %c0_i32_1 = arith.constant 0 : i32
    %c0_i32_2 = arith.constant 0 : i32
    return %c0_i32, %c0_i32_0, %c0_i32_1 : i32, i32, i32
  }
  func.func @transform_3(%arg0: i32) -> (i32, i32) {
    %c0_i32 = arith.constant 0 : i32
    %c0_i32_0 = arith.constant 0 : i32
    %c0_i32_1 = arith.constant 0 : i32
    return %c0_i32, %c0_i32_0 : i32, i32
  }
  func.func @transform_4(%arg0: i32) -> (i32, i32, i32) {
    %c0_i32 = arith.constant 0 : i32
    %c0_i32_0 = arith.constant 0 : i32
    %c0_i32_1 = arith.constant 0 : i32
    %c0_i32_2 = arith.constant 0 : i32
    return %c0_i32, %c0_i32_0, %c0_i32_1 : i32, i32, i32
  }
  func.func @transform_5(%arg0: i32) -> (i32, i32, i32) {
    %c0_i32 = arith.constant 0 : i32
    %c0_i32_0 = arith.constant 0 : i32
    %c0_i32_1 = arith.constant 0 : i32
    %c0_i32_2 = arith.constant 0 : i32
    return %c0_i32, %c0_i32_0, %c0_i32_1 : i32, i32, i32
  }
  func.func @transform_6(%arg0: i32) -> (i32, i32, i32) {
    %c0_i32 = arith.constant 0 : i32
    %c0_i32_0 = arith.constant 0 : i32
    %c0_i32_1 = arith.constant 0 : i32
    %c0_i32_2 = arith.constant 0 : i32
    return %c0_i32, %c0_i32_0, %c0_i32_1 : i32, i32, i32
  }
  func.func @transform_7(%arg0: i32) -> (i32, i32, i32) {
    %c0_i32 = arith.constant 0 : i32
    %c0_i32_0 = arith.constant 0 : i32
    %c0_i32_1 = arith.constant 0 : i32
    %c0_i32_2 = arith.constant 0 : i32
    return %c0_i32, %c0_i32_0, %c0_i32_1 : i32, i32, i32
  }
  func.func @transform_8(%arg0: i32) -> (i32, i32, i32) {
    %c0_i32 = arith.constant 0 : i32
    %c0_i32_0 = arith.constant 0 : i32
    %c0_i32_1 = arith.constant 0 : i32
    %c0_i32_2 = arith.constant 0 : i32
    return %c0_i32, %c0_i32_0, %c0_i32_1 : i32, i32, i32
  }
  func.func @transform_9(%arg0: i32) -> (i32, i32, i32) {
    %c0_i32 = arith.constant 0 : i32
    %c0_i32_0 = arith.constant 0 : i32
    %c0_i32_1 = arith.constant 0 : i32
    %c0_i32_2 = arith.constant 0 : i32
    return %c0_i32, %c0_i32_0, %c0_i32_1 : i32, i32, i32
  }
  func.func @transform_10(%arg0: i32) -> (i32, i32, i32) {
    %c0_i32 = arith.constant 0 : i32
    %c0_i32_0 = arith.constant 0 : i32
    %c0_i32_1 = arith.constant 0 : i32
    %c0_i32_2 = arith.constant 0 : i32
    return %c0_i32, %c0_i32_0, %c0_i32_1 : i32, i32, i32
  }
  func.func @transform_11(%arg0: i32) -> (i32, i32) {
    %c0_i32 = arith.constant 0 : i32
    %c0_i32_0 = arith.constant 0 : i32
    %c0_i32_1 = arith.constant 0 : i32
    return %c0_i32, %c0_i32_0 : i32, i32
  }
  func.func @transform_12(%arg0: i32) -> (i32, i32) {
    %c0_i32 = arith.constant 0 : i32
    %c0_i32_0 = arith.constant 0 : i32
    %c0_i32_1 = arith.constant 0 : i32
    return %c0_i32, %c0_i32_0 : i32, i32
  }
  func.func @transform_13(%arg0: i32) -> (i32, i32, i32) {
    %c0_i32 = arith.constant 0 : i32
    %c0_i32_0 = arith.constant 0 : i32
    %c0_i32_1 = arith.constant 0 : i32
    return %arg0, %c0_i32, %c0_i32_0 : i32, i32, i32
  }
}

</mosaic_0001>

<bundles_post_ra>
// kernel: tpu_custom_call.1
= control target key start
LH: loop header
LB: loop body
LE: loop exit
PB: predicated region body
PF: predicated region fallthrough
CT: control target
= control target key end

     0   :  { %s9187_s0 = inlined_call_operand.vmem [shape: f32[2,16,3], index: 0, kind: input, shape index: {}]   ;;  %s9188_s1 = inlined_call_operand.vmem [shape: f32[2,64,3], index: 1, kind: input, shape index: {}]   ;;  %s9189_s2 = inlined_call_operand.vmem [shape: f32[6,1,32], index: 2, kind: input, shape index: {}]   ;;  %s9190_s3 = inlined_call_operand.vmem [shape: f32[80,32], index: 3, kind: input, shape index: {}]   ;;  %s9191_s4 = inlined_call_operand.vmem [shape: f32[18,1,32], index: 4, kind: input, shape index: {}]   ;;  %s9192_s5 = inlined_call_operand.vmem [shape: f32[12,32,16], index: 5, kind: input, shape index: {}]   ;;  %s9193_s6 = inlined_call_operand.vmem [shape: f32[12,1,16], index: 6, kind: input, shape index: {}]   ;;  %s9194_s7 = inlined_call_operand.vmem [shape: f32[4,16,32], index: 7, kind: input, shape index: {}]   ;;  %s9195_s8 = inlined_call_operand.vmem [shape: f32[2,32,64], index: 8, kind: input, shape index: {}]   ;;  %s9196_s9 = inlined_call_operand.vmem [shape: f32[2,1,64], index: 9, kind: input, shape index: {}]   ;;  %s9197_s10 = inlined_call_operand.vmem [shape: f32[2,64,32], index: 10, kind: input, shape index: {}]   ;;  %s9198_s11 = inlined_call_operand.vmem [shape: f32[32,128], index: 11, kind: input, shape index: {}]   ;;  %s9199_s12 = inlined_call_operand.vmem [shape: f32[1,128], index: 12, kind: input, shape index: {}]   ;;  %s9200_s13 = inlined_call_operand.hbm [shape: f32[2,64,128], index: 13, kind: output, shape index: {}]  }
   0x1   :  { %9201 = sst [smem:[#allocation6_spill]] %s9187_s0 }
   0x2   :  { %9202 = sst [smem:[#allocation7_spill]] %s9188_s1 }
   0x3   :  { %18 = vsyncpa [#allocation3], 0 }
   0x4   :  { %20 = vsyncpa [#allocation3 + $0x1], 0  ;;  %s6850_s25 = smov 0   ;;  %s6852_s26 = smov 0  }
   0x5   :  { %s6854_s27 = smov 0   ;;  %s6856_s28 = smov 0  }
   0x6 LB: > { %s6871_s29 = sadd.s32 4294967295, %s6770_s28   ;;  %s5197_s30 = sadd.s32 4294967294, %s6770_s28   ;;  %s6770_s28 = sphi %s6856_s28, %s9212_s28   ;;  %s6766_s27 = sphi %s6854_s27, %s9211_s27   ;;  %s6762_s26 = sphi %s6852_s26, %s9210_s26   ;;  %s6758_s25 = sphi %s6850_s25, %s9209_s25  }
   0x7   : > { %s6875_s14 = sadd.s32 1, %s6770_s28   ;;  %s316_s15 = sadd.s32 1, %s6766_s27 }
   0x8   : > { %s313_s16 = ssub.s32 %s6770_s28, %s6875_s14  ;;  %p326_p0 = scmp.ne.s32.totalorder %s6766_s27, %s6762_s26 }
   0x9   : > { %p314_p1 = scmp.eq.s32.totalorder %s313_s16, 0  ;;  %p327_p2 = scmp.eq.s32.totalorder %s6871_s29, 1 }
   0xa   : > { %p332_p3 = scmp.ne.s32.totalorder %s6762_s26, %s6758_s25  ;;  %p333_p4 = scmp.eq.s32.totalorder %s5197_s30, 1 }
   0xb   : > { %s6886_s17 = scalar_select %p314_p1, %s6766_s27, %s316_s15  }
   0xc   : > { %p6888_p5 = por %p327_p2, %p326_p0  ;;  %p6892_p6 = por %p333_p4, %p332_p3 }
   0xd   : > { %9203 = sst [smem:[#allocation5_spill]] %s6886_s17  ;;  %p5200_p7 = scmp.ge.s32.totalorder %s6770_s28, 1 }
   0xe   : > { %p400_p8 = scmp.lt.s32.totalorder %s6770_s28, 3 }
  0x10   : > { %p401_p9 = pnand %p5200_p7, %p400_p8 }
  0x11   : > { %p449_p10 = scmp.lt.s32.totalorder (!%p401_p9), %s6871_s29, 1  ;;  %s9206_s1 = sld [smem:[#allocation7_spill]] (!%p401_p9) }
  0x12   : > { %404 = sbr.rel (%p401_p9) target bundleno = 6929 (0x1b11), region = 72  ;;  %s9207_s0 = sld [smem:[#allocation6_spill]] (!%p401_p9) }
  0x13   : > { %s446_s15 = sand.u32 (!%p401_p9), 1, %s6762_s26  }
  0x14   : > { %s5201_s16 = sshll.u32 (!%p401_p9), %s446_s15, 6 }
  0x17   : > { %v6772_v0 = vmov 2   ;;  %v6773_v1 = vmov 1   ;;  %s450_s20 = scalar_select %p449_p10, %s6871_s29, 1  ;;  %v6774_v6 = vmov 0   ;;  %v6919_v19 = vld [vmem:[%s9189_s2 + $0x4] ss:$0 sm:$0xff] }
  0x18   : > { %6380 = vset.pattern.permute.xlu0 %v6772_v0  ;;  %6379 = vset.pattern.permute.xlu1 %v6773_v1  ;;  %v6924_v20 = vld [vmem:[%s9189_s2 + $0x3] ss:$0 sm:$0xff]  ;;  %v6929_v21 = vld [vmem:[%s9189_s2 + $0x5] ss:$0 sm:$0xff]  ;;  %v5210_v27 = vld [vmem:[%s9189_s2 + $0x2] ss:$0 sm:$0xff] }
  0x19   : > { %s5489_s21 = sshll.u32 %s450_s20, 6  ;;  %s5488_s22 = sshll.u32 %s450_s20, 4  ;;  %v5206_v29 = vld [vmem:[%s9189_s2] ss:$0 sm:$0xff]  ;;  %v5208_v31 = vld [vmem:[%s9189_s2 + $0x1] ss:$0 sm:$0xff] }
  0x1a   : > { %s6903_s30 = scalar_lea.vmem %s9206_s1, %s5489_s21  ;;  %s453_s17 = scalar_lea.vmem %s9207_s0, %s5488_s22  ;;  %v6946_v32 = vld [vmem:[%s9191_s4 + $0x1] ss:$0 sm:$0xff]  ;;  %vm732_vm0 = vcmask 261120   ;;  %v5211_v48 = vld [vmem:[%s9191_s4] ss:$0 sm:$0xff]  ;;  %vm6776_vm1 = vmmov 0  }
  0x1b   : > { %v536_v2 = vld [vmem:[%s6903_s30 + $0x30] sm:$0xff]  ;;  %v537_v3 = vld [vmem:[%s6903_s30 + $0x38] sm:$0xff]  ;;  %v460_v4 = vld [vmem:[%s453_s17] sm:$0xff]  ;;  %vm1222_vm2 = vcmask 130048   ;;  %vm1336_vm3 = vcmask 654336   ;;  %vm2740_vm4 = vcmask 523264  }
  0x1c   : > { %677 = vperm.xlu0 %6380, %v536_v2   ;;  %621 = vperm.xlu1 %6379, %v536_v2   ;;  %v530_v5 = vld [vmem:[%s6903_s30] sm:$0xff]  ;;  %v461_v7 = vld [vmem:[%s453_s17 + $0x8] sm:$0xff]  ;;  %v533_v9 = vld [vmem:[%s6903_s30 + $0x18] sm:$0xff]  ;;  %s448_s17 = scalar_lea.vmem [#allocation2], %s5201_s16  ;;  %s5490_s20 = sshll.u32 %s6871_s29, 10 }
  0x1d   : > { %v531_v8 = vld [vmem:[%s6903_s30 + $0x8] sm:$0xff]  ;;  %v532_v11 = vld [vmem:[%s6903_s30 + $0x10] sm:$0xff]  ;;  %v534_v12 = vld [vmem:[%s6903_s30 + $0x20] sm:$0xff]  ;;  %s5123_s21 = sshll.u32 %s448_s17, 4  ;;  %s9141_s24 = scalar_lea.hbm %s9200_s13, %s5490_s20  ;;  %s9143_s21 = int_to_ptr.vmem [resolvable:$true] %s5123_s21 }
  0x1e   : > { %v535_v10 = vld [vmem:[%s6903_s30 + $0x28] sm:$0xff]  ;;  %s9147_s30 = scalar_lea.sflag [#allocation3], %s446_s15  ;;  %s6710_s29 = scalar_lea.vmem %s9143_s21, 1024 }
  0x1f   : > { %p6711_p11 = scmp.ne.s32.totalorder %s9143_s21, %s6710_s29  ;;  %s6777_s16 = smov [#allocation2]  }
  0x20   : > { %625 = vperm.xlu1 %6379, %v537_v3   ;;  %504 = vperm.xlu0 %6380, %v460_v4   ;;  %s6714_s22 = sshll.u32 %s6777_s16, 4  ;;  %s6715_s22 = int_to_ptr.vmem [resolvable:$false] %s6714_s22 }
  0x21   : > { %p6712_p12 = pnand %p6711_p11, %p6888_p5  ;;  %s6716_s20 = scalar_lea.vmem %s6715_s22, 2048 }
  0x22   : > { %p6717_p0 = scmp.lt.s32.totalorder %s9143_s21, %s6715_s22  ;;  %p6718_p1 = scmp.lt.s32.totalorder %s6716_s20, %s6710_s29 }
  0x23   : > { %p6713_p13 = pneg %p6712_p12 }
  0x24   : > { %6381 = vset.pattern.permute.xlu1 %v6772_v0  ;;  %653 = vperm.xlu0 %6380, %v530_v5   ;;  %p6719_p2 = por %p6718_p1, %p6717_p0 }
  0x25   : > { %681 = vperm.xlu1 %6381, %v537_v3  }
  0x26   : > { %p6720_p3 = pnand %p6719_p2, %p6713_p13 }
  0x28   : > { %6387 = vset.pattern.permute.xlu0 %v6774_v6 }
  0x29   : > { %6382 = vset.pattern.permute.xlu1 %v6774_v6  ;;  %572 = vperm.xlu0 %6387, %v536_v2  }
  0x2a   : > { %465 = vperm.xlu1 %6382, %v460_v4  }
  0x2d   : > { %577 = vperm.xlu0 %6387, %v537_v3  }
  0x2e   : > { %6383 = vset.pattern.permute.xlu1 %v6773_v1 }
  0x2f   : > { %484 = vperm.xlu1 %6383, %v460_v4  }
  0x31   : > { %470 = vperm.xlu0 %6387, %v461_v7  }
  0x33   : > { %488 = vperm.xlu1 %6383, %v461_v7  }
  0x35   : > { %547 = vperm.xlu0 %6387, %v531_v8  }
  0x37   : > { %6384 = vset.pattern.permute.xlu1 %v6772_v0 }
  0x38   : > { %508 = vperm.xlu1 %6384, %v461_v7  }
  0x39   : > { %557 = vperm.xlu0 %6387, %v533_v9  }
  0x3c   : > { %6385 = vset.pattern.permute.xlu1 %v6774_v6 }
  0x3d   : > { %542 = vperm.xlu1 %6385, %v530_v5   ;;  %567 = vperm.xlu0 %6387, %v535_v10  }
  0x41   : > { %6386 = vset.pattern.permute.xlu1 %v6773_v1  ;;  %6393 = vset.pattern.permute.xlu0 %v6772_v0 }
  0x42   : > { %597 = vperm.xlu1 %6386, %v530_v5   ;;  %661 = vperm.xlu0 %6393, %v532_v11  }
  0x46   : > { %601 = vperm.xlu1 %6386, %v531_v8   ;;  %669 = vperm.xlu0 %6393, %v534_v12  }
  0x4a   : > { %6388 = vset.pattern.permute.xlu1 %v6772_v0 }
  0x4b   : > { %657 = vperm.xlu1 %6388, %v531_v8  }
  0x4f   : > { %6389 = vset.pattern.permute.xlu1 %v6774_v6 }
  0x50   : > { %552 = vperm.xlu1 %6389, %v532_v11  }
  0x54   : > { %6390 = vset.pattern.permute.xlu1 %v6773_v1 }
  0x55   : > { %605 = vperm.xlu1 %6390, %v532_v11  }
  0x59   : > { %609 = vperm.xlu1 %6390, %v533_v9  }
  0x5d   : > { %6391 = vset.pattern.permute.xlu1 %v6772_v0 }
  0x5e   : > { %665 = vperm.xlu1 %6391, %v533_v9  }
  0x62   : > { %6392 = vset.pattern.permute.xlu1 %v6774_v6 }
  0x63   : > { %562 = vperm.xlu1 %6392, %v534_v12  }
  0x67   : > { %6394 = vset.pattern.permute.xlu1 %v6773_v1 }
  0x68   : > { %613 = vperm.xlu1 %6394, %v534_v12  }
  0x6c   : > { %617 = vperm.xlu1 %6394, %v535_v10  }
  0x70   : > { %6395 = vset.pattern.permute.xlu1 %v6772_v0 }
  0x71   : > { %673 = vperm.xlu1 %6395, %v535_v10  }
  0x97   : > { %v622_v13 = vpop.permute.xlu1 %621  ;;  %v678_v14 = vpop.permute.xlu0 %677 }
  0x98   : > { %v640_v23 = vmul.f32 %v6919_v19, %v622_v13  ;;  %v696_v24 = vmul.f32 %v6929_v21, %v678_v14 }
  0x9b   : > { %v626_v15 = vpop.permute.xlu1 %625  ;;  %v505_v16 = vpop.permute.xlu0 %504 }
  0x9c   : > { %v641_v33 = vmul.f32 %v6919_v19, %v626_v15  ;;  %v517_v36 = vmul.f32 %v5210_v27, %v505_v16 }
  0x9f   : > { %v654_v17 = vpop.permute.xlu0 %653 }
  0xa0   : > { %v682_v18 = vpop.permute.xlu1 %681  ;;  %v690_v3 = vmul.f32 %v6929_v21, %v654_v17 }
  0xa1   : > { %v697_v37 = vmul.f32 %v6929_v21, %v682_v18 }
  0xa4   : > { %v573_v22 = vpop.permute.xlu0 %572 }
  0xa5   : > { %v592_v25 = vmul.f32 %v6924_v20, %v573_v22  ;;  %v466_v26 = vpop.permute.xlu1 %465 }
  0xa6   : > { %v479_v39 = vmul.f32 %v5206_v29, %v466_v26 }
  0xa7   : > { %v648_v28 = vadd.f32 %v640_v23, %v592_v25 }
  0xa8   : > { %v578_v30 = vpop.permute.xlu0 %577 }
  0xa9   : > { %v704_v34 = vadd.f32 %v696_v24, %v648_v28  ;;  %v593_v35 = vmul.f32 %v6924_v20, %v578_v30 }
  0xaa   : > { %v485_v38 = vpop.permute.xlu1 %484 }
  0xab   : > { %v649_v40 = vadd.f32 %v641_v33, %v593_v35  ;;  %v497_v41 = vmul.f32 %v5208_v31, %v485_v38  ;;  %v6952_v42 = vadd.f32 %v6946_v32, %v704_v34 }
  0xac   : > { %v471_v45 = vpop.permute.xlu0 %470 }
  0xad   : > { %v705_v43 = vadd.f32 %v697_v37, %v649_v40  ;;  %v499_v44 = vadd.f32 %v497_v41, %v479_v39  ;;  %v757_v46 = vsel %vm732_vm0, %v6952_v42, 0.0  ;;  %v480_v51 = vmul.f32 %v5206_v29, %v471_v45 }
  0xae   : > { %758 = vadd.xlane.f32.xlu1 %v757_v46  ;;  %v489_v47 = vpop.permute.xlu1 %488 }
  0xaf   : > { %v519_v49 = vadd.f32 %v517_v36, %v499_v44  ;;  %v6960_v50 = vadd.f32 %v6946_v32, %v705_v43  ;;  %v498_v52 = vmul.f32 %v5208_v31, %v489_v47 }
  0xb0   : > { %v548_v2 = vpop.permute.xlu0 %547 }
  0xb1   : > { %v760_v53 = vsel %vm732_vm0, %v6960_v50, 0.0  ;;  %v6964_v54 = vadd.f32 %v5211_v48, %v519_v49  ;;  %v500_v56 = vadd.f32 %v498_v52, %v480_v51  ;;  %v587_v7 = vmul.f32 %v6924_v20, %v548_v2 }
  0xb2   : > { %761 = vadd.xlane.f32.xlu0 %v760_v53 }
  0xb3   : > { %v509_v55 = vpop.permute.xlu1 %508  ;;  %v733_v58 = vsel %vm732_vm0, %v6964_v54, 0.0 }
  0xb4   : > { %v518_v57 = vmul.f32 %v5210_v27, %v509_v55  ;;  %v558_v9 = vpop.permute.xlu0 %557 }
  0xb5   : > { %v589_v34 = vmul.f32 %v6924_v20, %v558_v9 }
  0xb6   : > { %v520_v59 = vadd.f32 %v518_v57, %v500_v56  ;;  %734 = vadd.xlane.f32.xlu0 %v733_v58 }
  0xb8   : > { %v543_v60 = vpop.permute.xlu1 %542  ;;  %v6968_v61 = vadd.f32 %v5211_v48, %v520_v59  ;;  %v568_v16 = vpop.permute.xlu0 %567 }
  0xb9   : > { %v586_v0 = vmul.f32 %v6924_v20, %v543_v60  ;;  %v591_v56 = vmul.f32 %v6924_v20, %v568_v16 }
  0xba   : > { %v736_v62 = vsel %vm732_vm0, %v6968_v61, 0.0 }
  0xbb   : > { %737 = vadd.xlane.f32.xlu1 %v736_v62 }
  0xbd   : > { %v598_v63 = vpop.permute.xlu1 %597  ;;  %v662_v23 = vpop.permute.xlu0 %661 }
  0xbe   : > { %v634_v1 = vmul.f32 %v6919_v19, %v598_v63  ;;  %v692_v27 = vmul.f32 %v6929_v21, %v662_v23 }
  0xc0   : > { %v642_v4 = vadd.f32 %v634_v1, %v586_v0 }
  0xc1   : > { %v602_v5 = vpop.permute.xlu1 %601  ;;  %v670_v44 = vpop.permute.xlu0 %669 }
  0xc2   : > { %v698_v6 = vadd.f32 %v690_v3, %v642_v4  ;;  %v635_v8 = vmul.f32 %v6919_v19, %v602_v5  ;;  %v694_v48 = vmul.f32 %v6929_v21, %v670_v44 }
  0xc4   : > { %v6978_v10 = vadd.f32 %v6946_v32, %v698_v6  ;;  %v643_v13 = vadd.f32 %v635_v8, %v587_v7 }
  0xc6   : > { %v658_v11 = vpop.permute.xlu1 %657  ;;  %v739_v12 = vsel %vm732_vm0, %v6978_v10, 0.0 }
  0xc7   : > { %v691_v14 = vmul.f32 %v6929_v21, %v658_v11  ;;  %740 = vadd.xlane.f32.xlu0 %v739_v12 }
  0xc9   : > { %v699_v15 = vadd.f32 %v691_v14, %v643_v13 }
  0xcb   : > { %v553_v17 = vpop.permute.xlu1 %552  ;;  %v6984_v18 = vadd.f32 %v6946_v32, %v699_v15 }
  0xcc   : > { %v588_v25 = vmul.f32 %v6924_v20, %v553_v17 }
  0xcd   : > { %v742_v22 = vsel %vm732_vm0, %v6984_v18, 0.0 }
  0xce   : > { %743 = vadd.xlane.f32.xlu1 %v742_v22 }
  0xd0   : > { %v606_v24 = vpop.permute.xlu1 %605 }
  0xd1   : > { %v636_v26 = vmul.f32 %v6919_v19, %v606_v24 }
  0xd3   : > { %v644_v28 = vadd.f32 %v636_v26, %v588_v25 }
  0xd4   : > { %v610_v29 = vpop.permute.xlu1 %609 }
  0xd5   : > { %v700_v30 = vadd.f32 %v692_v27, %v644_v28  ;;  %v637_v31 = vmul.f32 %v6919_v19, %v610_v29 }
  0xd7   : > { %v6993_v33 = vadd.f32 %v6946_v32, %v700_v30  ;;  %v645_v37 = vadd.f32 %v637_v31, %v589_v34  ;;  %v6775_v30 = vmov 0.0  }
  0xd8   : > { %6319 = vmatprep.subr.bf16.mxu1 %v6775_v30  ;;  %5707 = vmatprep.subr.bf16.mxu0 %v6775_v30 }
  0xd9   : > { %v666_v35 = vpop.permute.xlu1 %665  ;;  %v745_v36 = vsel %vm732_vm0, %v6993_v33, 0.0  ;;  %5727 = vmatprep.mubr.msk.bf16.mxu1 %vm6776_vm1, %v6775_v30  ;;  %5711 = vmatprep.mubr.msk.bf16.mxu0 %vm6776_vm1, %v6775_v30 }
  0xda   : > { %v693_v38 = vmul.f32 %v6929_v21, %v666_v35  ;;  %746 = vadd.xlane.f32.xlu0 %v745_v36  ;;  %v912_v35 = vld [vmem:[%s9192_s5 + $0x10] sm:$0xff]  ;;  %v913_v36 = vld [vmem:[%s9192_s5 + $0x18] sm:$0xff] }
  0xdc   : > { %v701_v39 = vadd.f32 %v693_v38, %v645_v37  ;;  %v920_v37 = vpack.c.bf16 %v913_v36, %v912_v35 }
  0xde   : > { %v563_v40 = vpop.permute.xlu1 %562  ;;  %v7000_v41 = vadd.f32 %v6946_v32, %v701_v39  ;;  %6321 = vmatpush3.bf16.msra.mxu1 %v920_v37  ;;  %5708 = vmatpush3.bf16.msra.mxu0 %v920_v37  ;;  %v910_v39 = vld [vmem:[%s9192_s5] sm:$0xff] }
  0xdf   : > { %v590_v46 = vmul.f32 %v6924_v20, %v563_v40  ;;  %6320 = vmatprep.subr.bf16.mxu1 %v6775_v30  ;;  %v911_v40 = vld [vmem:[%s9192_s5 + $0x8] sm:$0xff]  ;;  %5709 = vmatprep.subr.bf16.mxu0 %v6775_v30 }
  0xe0   : > { %v748_v43 = vsel %vm732_vm0, %v7000_v41, 0.0  ;;  %v919_v44 = vpack.c.bf16 %v911_v40, %v910_v39  ;;  %v5233_v40 = vld [vmem:[%s9192_s5 + $0x58] sm:$0xff] }
  0xe1   : > { %749 = vadd.xlane.f32.xlu1 %v748_v43 }
  0xe2   : > { %6322 = vmatpush3.bf16.msra.mxu1 %v919_v44  ;;  %5710 = vmatpush3.bf16.msra.mxu0 %v919_v44 }
  0xe3   : > { %v614_v45 = vpop.permute.xlu1 %613  ;;  %5731 = vmatprep.subr.bf16.mxu1 %v6775_v30  ;;  %5755 = vmatprep.subr.bf16.mxu0 %v6775_v30 }
  0xe4   : > { %v638_v47 = vmul.f32 %v6919_v19, %v614_v45 }
  0xe6   : > { %v646_v49 = vadd.f32 %v638_v47, %v590_v46 }
  0xe7   : > { %v618_v51 = vpop.permute.xlu1 %617 }
  0xe8   : > { %v702_v52 = vadd.f32 %v694_v48, %v646_v49  ;;  %v639_v53 = vmul.f32 %v6919_v19, %v618_v51 }
  0xea   : > { %v7009_v55 = vadd.f32 %v6946_v32, %v702_v52  ;;  %v647_v59 = vadd.f32 %v639_v53, %v591_v56 }
  0xec   : > { %v674_v57 = vpop.permute.xlu1 %673  ;;  %v751_v58 = vsel %vm732_vm0, %v7009_v55, 0.0 }
  0xed   : > { %v695_v60 = vmul.f32 %v6929_v21, %v674_v57  ;;  %752 = vadd.xlane.f32.xlu0 %v751_v58 }
  0xef   : > { %v703_v62 = vadd.f32 %v695_v60, %v647_v59 }
  0xf1   : > { %v7016_v63 = vadd.f32 %v6946_v32, %v703_v62 }
  0xf3   : > { %v754_v19 = vsel %vm732_vm0, %v7016_v63, 0.0 }
  0xf4   : > { %755 = vadd.xlane.f32.xlu1 %v754_v19 }
 0x137   : > { %v759_v0 = vpop.xlane.xlu1 %758 }
 0x138   : > { %v772_v1 = vmul.f32 0.03125, %v759_v0 }
 0x13a   : > { %v7021_v20 = vsub.f32 %v6952_v42, %v772_v1 }
 0x13b   : > { %v762_v2 = vpop.xlane.xlu0 %761 }
 0x13c   : > { %v773_v3 = vmul.f32 0.03125, %v762_v2  ;;  %v792_v4 = vmul.f32 %v7021_v20, %v7021_v20 }
 0x13e   : > { %v7026_v21 = vsub.f32 %v6960_v50, %v773_v3  ;;  %v818_v32 = vsel %vm732_vm0, %v792_v4, 0.0 }
 0x13f   : > { %v735_v5 = vpop.xlane.xlu0 %734  ;;  %819 = vadd.xlane.f32.xlu0 %v818_v32 }
 0x140   : > { %v764_v6 = vmul.f32 0.03125, %v735_v5  ;;  %v793_v7 = vmul.f32 %v7026_v21, %v7026_v21 }
 0x142   : > { %v7032_v8 = vsub.f32 %v6964_v54, %v764_v6  ;;  %v821_v9 = vsel %vm732_vm0, %v793_v7, 0.0 }
 0x143   : > { %822 = vadd.xlane.f32.xlu1 %v821_v9 }
 0x144   : > { %v738_v11 = vpop.xlane.xlu1 %737  ;;  %v784_v12 = vmul.f32 %v7032_v8, %v7032_v8 }
 0x145   : > { %v765_v13 = vmul.f32 0.03125, %v738_v11 }
 0x146   : > { %v794_v14 = vsel %vm732_vm0, %v784_v12, 0.0 }
 0x147   : > { %v7039_v15 = vsub.f32 %v6968_v61, %v765_v13  ;;  %795 = vadd.xlane.f32.xlu0 %v794_v14 }
 0x149   : > { %v785_v16 = vmul.f32 %v7039_v15, %v7039_v15 }
 0x14b   : > { %v797_v17 = vsel %vm732_vm0, %v785_v16, 0.0 }
 0x14c   : > { %798 = vadd.xlane.f32.xlu1 %v797_v17 }
 0x150   : > { %v741_v22 = vpop.xlane.xlu0 %740 }
 0x151   : > { %v766_v23 = vmul.f32 0.03125, %v741_v22  ;;  %v7105_v22 = vld [vmem:[%s9191_s4 + $0x2] ss:$0 sm:$0xff] }
 0x153   : > { %v7045_v24 = vsub.f32 %v6978_v10, %v766_v23 }
 0x155   : > { %v786_v25 = vmul.f32 %v7045_v24, %v7045_v24 }
 0x157   : > { %v744_v26 = vpop.xlane.xlu1 %743  ;;  %v800_v27 = vsel %vm732_vm0, %v786_v25, 0.0 }
 0x158   : > { %v767_v28 = vmul.f32 0.03125, %v744_v26  ;;  %801 = vadd.xlane.f32.xlu0 %v800_v27  ;;  %v7112_v27 = vld [vmem:[%s9191_s4 + $0x3] ss:$0 sm:$0xff] }
 0x15a   : > { %v7051_v29 = vsub.f32 %v6984_v18, %v767_v28 }
 0x15c   : > { %v787_v31 = vmul.f32 %v7051_v29, %v7051_v29 }
 0x15e   : > { %v803_v34 = vsel %vm732_vm0, %v787_v31, 0.0 }
 0x15f   : > { %804 = vadd.xlane.f32.xlu1 %v803_v34 }
 0x163   : > { %v747_v38 = vpop.xlane.xlu0 %746 }
 0x164   : > { %v768_v43 = vmul.f32 0.03125, %v747_v38  ;;  %v731_v38 = vld [vmem:[%s9190_s3 + $0x48] sm:$0xff] }
 0x166   : > { %v7073_v45 = vsub.f32 %v6993_v33, %v768_v43 }
 0x168   : > { %v788_v46 = vmul.f32 %v7073_v45, %v7073_v45 }
 0x16a   : > { %v750_v47 = vpop.xlane.xlu1 %749  ;;  %v806_v48 = vsel %vm732_vm0, %v788_v46, 0.0 }
 0x16b   : > { %v769_v49 = vmul.f32 0.03125, %v750_v47  ;;  %807 = vadd.xlane.f32.xlu0 %v806_v48 }
 0x16d   : > { %v7085_v51 = vsub.f32 %v7000_v41, %v769_v49 }
 0x16f   : > { %v789_v52 = vmul.f32 %v7085_v51, %v7085_v51 }
 0x171   : > { %v809_v53 = vsel %vm732_vm0, %v789_v52, 0.0 }
 0x172   : > { %810 = vadd.xlane.f32.xlu1 %v809_v53 }
 0x176   : > { %v753_v56 = vpop.xlane.xlu0 %752 }
 0x177   : > { %v770_v57 = vmul.f32 0.03125, %v753_v56 }
 0x179   : > { %v7091_v58 = vsub.f32 %v7009_v55, %v770_v57  ;;  %v5230_v57 = vld [vmem:[%s9192_s5 + $0x40] sm:$0xff] }
 0x17b   : > { %v790_v59 = vmul.f32 %v7091_v58, %v7091_v58 }
 0x17d   : > { %v756_v60 = vpop.xlane.xlu1 %755  ;;  %v812_v62 = vsel %vm732_vm0, %v790_v59, 0.0 }
 0x17e   : > { %v771_v19 = vmul.f32 0.03125, %v756_v60  ;;  %813 = vadd.xlane.f32.xlu0 %v812_v62 }
 0x180   : > { %v7097_v0 = vsub.f32 %v7016_v63, %v771_v19 }
 0x182   : > { %v791_v1 = vmul.f32 %v7097_v0, %v7097_v0 }
 0x184   : > { %v815_v2 = vsel %vm732_vm0, %v791_v1, 0.0 }
 0x185   : > { %816 = vadd.xlane.f32.xlu1 %v815_v2 }
 0x1c8   : > { %v820_v3 = vpop.xlane.xlu0 %819 }
 0x1c9   : > { %v832_v4 = vmul.f32 0.03125, %v820_v3 }
 0x1cb   : > { %v842_v32 = vadd.f32 1e-05, %v832_v4  ;;  %v723_v4 = vld [vmem:[%s9190_s3 + $0x8] sm:$0xff] }
 0x1cc   : > { %v823_v5 = vpop.xlane.xlu1 %822 }
 0x1cd   : > { %6396 = vrsqrt.f32 %v842_v32  ;;  %v833_v6 = vmul.f32 0.03125, %v823_v5  ;;  %v5243_v5 = vld [vmem:[%s9192_s5 + $0x90] sm:$0xff] }
 0x1cf   : > { %v843_v7 = vadd.f32 1e-05, %v833_v6  ;;  %v5244_v6 = vld [vmem:[%s9192_s5 + $0x98] sm:$0xff] }
 0x1d0   : > { %v796_v9 = vpop.xlane.xlu0 %795 }
 0x1d1   : > { %6398 = vrsqrt.f32 %v843_v7  ;;  %v824_v11 = vmul.f32 0.03125, %v796_v9 }
 0x1d3   : > { %v834_v12 = vadd.f32 1e-05, %v824_v11 }
 0x1d5   : > { %6400 = vrsqrt.f32 %v834_v12  ;;  %v799_v13 = vpop.xlane.xlu1 %798 }
 0x1d6   : > { %v825_v14 = vmul.f32 0.03125, %v799_v13  ;;  %v1115_v13 = vpack.c.bf16 %v5244_v6, %v5243_v5 }
 0x1d8   : > { %v835_v16 = vadd.f32 1e-05, %v825_v14  ;;  %v5241_v14 = vld [vmem:[%s9192_s5 + $0x80] sm:$0xff] }
 0x1da   : > { %v6397_v17 = vpop.eup %6396  ;;  %6402 = vrsqrt.f32 %v835_v16  ;;  %v5242_v16 = vld [vmem:[%s9192_s5 + $0x88] sm:$0xff] }
 0x1db   : > { %v862_v23 = vmul.f32 %v6397_v17, %v7021_v20  ;;  %v730_v20 = vld [vmem:[%s9190_s3 + $0x40] sm:$0xff] }
 0x1dd   : > { %v880_v25 = vmul.f32 %v7105_v22, %v862_v23 }
 0x1de   : > { %v6399_v26 = vpop.eup %6398 }
 0x1df   : > { %v863_v28 = vmul.f32 %v6399_v26, %v7026_v21  ;;  %v898_v35 = vadd.f32 %v7112_v27, %v880_v25  ;;  %v5232_v21 = vld [vmem:[%s9192_s5 + $0x50] sm:$0xff]  ;;  %v1114_v25 = vpack.c.bf16 %v5242_v16, %v5241_v14 }
 0x1e0   : > { %v1022_v49 = vpack.c.bf16 %v5233_v40, %v5232_v21  ;;  %v725_v40 = vld [vmem:[%s9190_s3 + $0x18] sm:$0xff] }
 0x1e1   : > { %v802_v31 = vpop.xlane.xlu0 %801  ;;  %v881_v34 = vmul.f32 %v7105_v22, %v863_v28  ;;  %v908_v46 = vadd.f32 %v898_v35, %v730_v20 }
 0x1e2   : > { %v6401_v36 = vpop.eup %6400  ;;  %v826_v37 = vmul.f32 0.03125, %v802_v31 }
 0x1e3   : > { %v899_v39 = vadd.f32 %v7112_v27, %v881_v34  ;;  %v854_v43 = vmul.f32 %v6401_v36, %v7032_v8  ;;  %v5231_v8 = vld [vmem:[%s9192_s5 + $0x48] sm:$0xff] }
 0x1e4   : > { %v836_v44 = vadd.f32 1e-05, %v826_v37  ;;  %v1021_v19 = vpack.c.bf16 %v5231_v8, %v5230_v57 }
 0x1e5   : > { %v909_v47 = vadd.f32 %v899_v39, %v731_v38  ;;  %v7131_v48 = vpack.c.bf16 %v899_v39, %v898_v35  ;;  %v872_v52 = vmul.f32 %v7105_v22, %v854_v43 }
 0x1e6   : > { %6404 = vrsqrt.f32 %v836_v44 }
 0x1e7   : > { %v6403_v53 = vpop.eup %6402  ;;  %v7134_v56 = vpack.c.bf16 %v909_v47, %v908_v46  ;;  %v890_v2 = vadd.f32 %v7112_v27, %v872_v52 }
 0x1e8   : > { %v805_v59 = vpop.xlane.xlu1 %804  ;;  %v855_v60 = vmul.f32 %v6403_v53, %v7039_v15  ;;  %v722_v15 = vld [vmem:[%s9190_s3] sm:$0xff] }
 0x1e9   : > { %v827_v62 = vmul.f32 0.03125, %v805_v59  ;;  %5728 = vmatmul.mubr.msk.bf16.vlgmr.msra.gmra.mxu1 %vm732_vm0, %v7134_v56  ;;  %v900_v7 = vadd.f32 %v890_v2, %v722_v15  ;;  %v726_v15 = vld [vmem:[%s9190_s3 + $0x20] sm:$0xff] }
 0x1ea   : > { %5732 = vmatpush3.bf16.msra.mxu1 %v1022_v49  ;;  %5735 = vmatprep.mubr.msk.bf16.mxu1 %vm6776_vm1, %v6775_v30  ;;  %v873_v1 = vmul.f32 %v7105_v22, %v855_v60 }
 0x1eb   : > { %v837_v3 = vadd.f32 1e-05, %v827_v62  ;;  %5733 = vmatprep.subr.bf16.mxu1 %v6775_v30 }
 0x1ec   : > { %v891_v32 = vadd.f32 %v7112_v27, %v873_v1 }
 0x1ed   : > { %6406 = vrsqrt.f32 %v837_v3 }
 0x1ee   : > { %5734 = vmatpush3.bf16.msra.mxu1 %v1021_v19  ;;  %v901_v9 = vadd.f32 %v891_v32, %v723_v4  ;;  %v7163_v11 = vpack.c.bf16 %v891_v32, %v890_v2 }
 0x1ef   : > { %5779 = vmatprep.subr.bf16.mxu1 %v6775_v30 }
 0x1f0   : > { %v7166_v12 = vpack.c.bf16 %v901_v9, %v900_v7 }
 0x1f2   : > { %5712 = vmatmul.mubr.msk.bf16.vlgmr.msra.gmra.mxu0 %vm732_vm0, %v7166_v12  ;;  %5736 = vmatmul.mubr.msk.bf16.vlgmr.msra.gmra.mxu1 %vm732_vm0, %v7166_v12 }
 0x1f3   : > { %v6405_v17 = vpop.eup %6404  ;;  %5715 = vmatprep.mubr.msk.bf16.mxu0 %vm6776_vm1, %v6775_v30  ;;  %5739 = vmatprep.mubr.msk.bf16.mxu1 %vm6776_vm1, %v6775_v30 }
 0x1f4   : > { %v808_v23 = vpop.xlane.xlu0 %807  ;;  %5756 = vmatpush3.bf16.msra.mxu0 %v1115_v13  ;;  %v856_v28 = vmul.f32 %v6405_v17, %v7045_v24  ;;  %v724_v24 = vld [vmem:[%s9190_s3 + $0x10] sm:$0xff] }
 0x1f5   : > { %v828_v26 = vmul.f32 0.03125, %v808_v23  ;;  %5757 = vmatprep.subr.bf16.mxu0 %v6775_v30  ;;  %v728_v23 = vld [vmem:[%s9190_s3 + $0x30] sm:$0xff] }
 0x1f6   : > { %v874_v34 = vmul.f32 %v7105_v22, %v856_v28 }
 0x1f7   : > { %v838_v31 = vadd.f32 1e-05, %v828_v26 }
 0x1f8   : > { %5758 = vmatpush3.bf16.msra.mxu0 %v1114_v25  ;;  %v892_v39 = vadd.f32 %v7112_v27, %v874_v34  ;;  %v729_v25 = vld [vmem:[%s9190_s3 + $0x38] sm:$0xff] }
 0x1f9   : > { %6408 = vrsqrt.f32 %v838_v31  ;;  %5809 = vmatprep.subr.bf16.mxu0 %v6775_v30 }
 0x1fa   : > { %v6407_v35 = vpop.eup %6406  ;;  %v902_v44 = vadd.f32 %v892_v39, %v724_v24 }
 0x1fb   : > { %v811_v36 = vpop.xlane.xlu1 %810  ;;  %v857_v37 = vmul.f32 %v6407_v35, %v7051_v29  ;;  %v5224_v35 = vld [vmem:[%s9193_s6] ss:$0 sm:$0xff] }
 0x1fc   : > { %v829_v20 = vmul.f32 0.03125, %v811_v36 }
 0x1fd   : > { %v875_v38 = vmul.f32 %v7105_v22, %v857_v37 }
 0x1fe   : > { %v839_v21 = vadd.f32 1e-05, %v829_v20 }
 0x1ff   : > { %v893_v43 = vadd.f32 %v7112_v27, %v875_v38 }
 0x200   : > { %6410 = vrsqrt.f32 %v839_v21 }
 0x201   : > { %v903_v46 = vadd.f32 %v893_v43, %v725_v40 }
 0x203   : > { %v7196_v29 = vpack.c.bf16 %v903_v46, %v902_v44 }
 0x205   : > { %5716 = vmatmul.mubr.msk.bf16.gmra.mxu0 %vm732_vm0, %v7196_v29  ;;  %5740 = vmatmul.mubr.msk.bf16.gmra.mxu1 %vm732_vm0, %v7196_v29 }
 0x206   : > { %v6409_v47 = vpop.eup %6408  ;;  %5719 = vmatprep.mubr.msk.bf16.mxu0 %vm6776_vm1, %v6775_v30  ;;  %5743 = vmatprep.mubr.msk.bf16.mxu1 %vm6776_vm1, %v6775_v30 }
 0x207   : > { %v814_v49 = vpop.xlane.xlu0 %813  ;;  %v858_v53 = vmul.f32 %v6409_v47, %v7073_v45  ;;  %v727_v45 = vld [vmem:[%s9190_s3 + $0x28] sm:$0xff] }
 0x208   : > { %v830_v52 = vmul.f32 0.03125, %v814_v49 }
 0x209   : > { %v876_v8 = vmul.f32 %v7105_v22, %v858_v53 }
 0x20a   : > { %v840_v57 = vadd.f32 1e-05, %v830_v52 }
 0x20b   : > { %v894_v2 = vadd.f32 %v7112_v27, %v876_v8 }
 0x20c   : > { %6412 = vrsqrt.f32 %v840_v57 }
 0x20d   : > { %v6411_v59 = vpop.eup %6410  ;;  %v904_v32 = vadd.f32 %v894_v2, %v726_v15 }
 0x20e   : > { %v817_v60 = vpop.xlane.xlu1 %816  ;;  %v859_v62 = vmul.f32 %v6411_v59, %v7085_v51 }
 0x20f   : > { %v831_v19 = vmul.f32 0.03125, %v817_v60 }
 0x210   : > { %v877_v1 = vmul.f32 %v7105_v22, %v859_v62 }
 0x211   : > { %v841_v3 = vadd.f32 1e-05, %v831_v19 }
 0x212   : > { %v895_v4 = vadd.f32 %v7112_v27, %v877_v1 }
 0x213   : > { %6414 = vrsqrt.f32 %v841_v3 }
 0x214   : > { %v905_v5 = vadd.f32 %v895_v4, %v727_v45 }
 0x216   : > { %v7218_v51 = vpack.c.bf16 %v905_v5, %v904_v32 }
 0x218   : > { %5720 = vmatmul.mubr.msk.bf16.gmra.mxu0 %vm732_vm0, %v7218_v51  ;;  %5744 = vmatmul.mubr.msk.bf16.gmra.mxu1 %vm732_vm0, %v7218_v51 }
 0x219   : > { %v6413_v6 = vpop.eup %6412  ;;  %5723 = vmatprep.mubr.msk.bf16.mxu0 %vm6776_vm1, %v6775_v30  ;;  %5747 = vmatprep.mubr.msk.bf16.mxu1 %vm6776_vm1, %v6775_v30 }
 0x21a   : > { %v860_v7 = vmul.f32 %v6413_v6, %v7091_v58 }
 0x21c   : > { %v878_v9 = vmul.f32 %v7105_v22, %v860_v7 }
 0x21e   : > { %v896_v17 = vadd.f32 %v7112_v27, %v878_v9 }
 0x220   : > { %v6415_v13 = vpop.eup %6414  ;;  %v906_v58 = vadd.f32 %v896_v17, %v728_v23 }
 0x221   : > { %v861_v14 = vmul.f32 %v6415_v13, %v7097_v0  ;;  %v7258_v0 = vpack.c.bf16 %v893_v43, %v892_v39  ;;  %v7292_v43 = vld [vmem:[%s9193_s6 + $0x2] ss:$0 sm:$0xff] }
 0x223   : > { %v879_v16 = vmul.f32 %v7105_v22, %v861_v14  ;;  %v7264_v22 = vpack.c.bf16 %v895_v4, %v894_v2 }
 0x225   : > { %v897_v26 = vadd.f32 %v7112_v27, %v879_v16 }
 0x227   : > { %v907_v28 = vadd.f32 %v897_v26, %v729_v25  ;;  %v7270_v27 = vpack.c.bf16 %v897_v26, %v896_v17 }
 0x229   : > { %v7240_v31 = vpack.c.bf16 %v907_v28, %v906_v58 }
 0x22b   : > { %5724 = vmatmul.mubr.msk.bf16.gmra.mxu0 %vm732_vm0, %v7240_v31  ;;  %5748 = vmatmul.mubr.msk.bf16.gmra.mxu1 %vm732_vm0, %v7240_v31 }
 0x22c   : > { %5751 = vmatprep.mubr.msk.bf16.mxu1 %vm6776_vm1, %v6775_v30  ;;  %5759 = vmatprep.mubr.msk.bf16.mxu0 %vm6776_vm1, %v6775_v30 }
 0x233   : > { %5752 = vmatmul.mubr.msk.bf16.gmra.mxu1 %vm732_vm0, %v7134_v56  ;;  %5760 = vmatmul.mubr.msk.bf16.vlgmr.msra.gmra.mxu0 %vm732_vm0, %v7163_v11 }
 0x234   : > { %5763 = vmatprep.mubr.msk.bf16.mxu0 %vm6776_vm1, %v6775_v30  ;;  %5789 = vmatprep.mubr.msk.bf16.mxu1 %vm6776_vm1, %v6775_v30 }
 0x23b   : > { %5764 = vmatmul.mubr.msk.bf16.gmra.mxu0 %vm732_vm0, %v7258_v0 }
 0x23c   : > { %5767 = vmatprep.mubr.msk.bf16.mxu0 %vm6776_vm1, %v6775_v30 }
 0x243   : > { %5768 = vmatmul.mubr.msk.bf16.gmra.mxu0 %vm732_vm0, %v7264_v22 }
 0x244   : > { %5771 = vmatprep.mubr.msk.bf16.mxu0 %vm6776_vm1, %v6775_v30 }
 0x24b   : > { %5772 = vmatmul.mubr.msk.bf16.gmra.mxu0 %vm732_vm0, %v7270_v27 }
 0x24c   : > { %5775 = vmatprep.mubr.msk.bf16.mxu0 %vm6776_vm1, %v6775_v30 }
 0x253   : > { %5776 = vmatmul.mubr.msk.bf16.gmra.mxu0 %vm732_vm0, %v7131_v48 }
 0x254   : > { %5819 = vmatprep.mubr.msk.bf16.mxu0 %vm6776_vm1, %v6775_v30 }
 0x2a9   : > { %v1009_v34 = vpop.f32.mrf.mxu1 }
 0x2aa   : > { %v7283_v20 = vadd.f32 %v5224_v35, %v1009_v34 }
 0x2ab   : > { %v5729_v36 = vpop.f32.mrf.mxu1 }
 0x2ad   : > { %v1012_v37 = vpop.f32.mrf.mxu1 }
 0x2ae   : > { %v7285_v38 = vadd.f32 %v5224_v35, %v1012_v37 }
 0x2af   : > { %v5730_v39 = vpop.f32.mrf.mxu1 }
 0x2b0   : > { %v1216_v21 = vpack.c.bf16 %v7285_v38, %v7283_v20  ;;  %v5285_v20 = vld [vmem:[%s9192_s5 + $0xa8] sm:$0xff] }
 0x2b2   : > { %v977_v24 = vpop.f32.mrf.mxu0  ;;  %v1065_v40 = vpop.f32.mrf.mxu1 }
 0x2b3   : > { %v7294_v52 = vadd.f32 %v5224_v35, %v977_v24  ;;  %v7297_v53 = vadd.f32 %v7292_v43, %v1065_v40 }
 0x2b4   : > { %v5713_v44 = vpop.f32.mrf.mxu0  ;;  %v5737_v46 = vpop.f32.mrf.mxu1 }
 0x2b6   : > { %v980_v47 = vpop.f32.mrf.mxu0  ;;  %v1068_v49 = vpop.f32.mrf.mxu1 }
 0x2b7   : > { %v7299_v57 = vadd.f32 %v5224_v35, %v980_v47  ;;  %v7302_v8 = vadd.f32 %v7292_v43, %v1068_v49 }
 0x2b8   : > { %v5714_v59 = vpop.f32.mrf.mxu0  ;;  %v5738_v60 = vpop.f32.mrf.mxu1 }
 0x2b9   : > { %v1212_v62 = vpack.c.bf16 %v7299_v57, %v7294_v52  ;;  %v1217_v19 = vpack.c.bf16 %v7302_v8, %v7297_v53  ;;  %v5286_v57 = vld [vmem:[%s9192_s5 + $0xb0] sm:$0xff] }
 0x2c5   : > { %v985_v1 = vpop.f32.mrf.mxu0  ;;  %v1073_v2 = vpop.f32.mrf.mxu1 }
 0x2c6   : > { %v7308_v32 = vadd.f32 %v5224_v35, %v985_v1  ;;  %v7311_v5 = vadd.f32 %v7292_v43, %v1073_v2 }
 0x2c7   : > { %v5717_v3 = vpop.f32.mrf.mxu0  ;;  %v5741_v15 = vpop.f32.mrf.mxu1 }
 0x2c9   : > { %v988_v45 = vpop.f32.mrf.mxu0  ;;  %v1076_v4 = vpop.f32.mrf.mxu1 }
 0x2ca   : > { %v7313_v6 = vadd.f32 %v5224_v35, %v988_v45  ;;  %v7316_v7 = vadd.f32 %v7292_v43, %v1076_v4 }
 0x2cb   : > { %v5718_v9 = vpop.f32.mrf.mxu0  ;;  %v5742_v13 = vpop.f32.mrf.mxu1 }
 0x2cc   : > { %v1213_v14 = vpack.c.bf16 %v7313_v6, %v7308_v32  ;;  %v1218_v16 = vpack.c.bf16 %v7316_v7, %v7311_v5  ;;  %v1239_v5 = vsel %vm1222_vm2, %v1217_v19, 0  ;;  %v5284_v6 = vld [vmem:[%s9192_s5 + $0xa0] sm:$0xff] }
 0x2cd   : > { %v1734_v38 = vpack.c.bf16 %v5285_v20, %v5284_v6 }
 0x2d8   : > { %v993_v17 = vpop.f32.mrf.mxu0  ;;  %v1081_v23 = vpop.f32.mrf.mxu1 }
 0x2d9   : > { %v7322_v34 = vadd.f32 %v5224_v35, %v993_v17 }
 0x2da   : > { %v5721_v25 = vpop.f32.mrf.mxu0  ;;  %v5745_v26 = vpop.f32.mrf.mxu1 }
 0x2dc   : > { %v996_v58 = vpop.f32.mrf.mxu0  ;;  %v1084_v28 = vpop.f32.mrf.mxu1 }
 0x2dd   : > { %v7324_v36 = vadd.f32 %v5224_v35, %v996_v58 }
 0x2de   : > { %v5722_v37 = vpop.f32.mrf.mxu0  ;;  %v5746_v39 = vpop.f32.mrf.mxu1 }
 0x2df   : > { %v1214_v24 = vpack.c.bf16 %v7324_v36, %v7322_v34 }
 0x2eb   : > { %v1001_v40 = vpop.f32.mrf.mxu0  ;;  %v1089_v44 = vpop.f32.mrf.mxu1 }
 0x2ec   : > { %v7328_v60 = vadd.f32 %v5224_v35, %v1001_v40 }
 0x2ed   : > { %v5725_v46 = vpop.f32.mrf.mxu0  ;;  %v5749_v47 = vpop.f32.mrf.mxu1 }
 0x2ef   : > { %v1004_v49 = vpop.f32.mrf.mxu0  ;;  %v1092_v59 = vpop.f32.mrf.mxu1 }
 0x2f0   : > { %v7330_v1 = vadd.f32 %v5224_v35, %v1004_v49  ;;  %v1093_v46 = vadd.f32 %v7292_v43, %v1092_v59  ;;  %v1082_v59 = vadd.f32 %v7292_v43, %v1081_v23 }
 0x2f1   : > { %v5726_v2 = vpop.f32.mrf.mxu0  ;;  %v5750_v3 = vpop.f32.mrf.mxu1 }
 0x2f2   : > { %v1215_v15 = vpack.c.bf16 %v7330_v1, %v7328_v60  ;;  %v1090_v2 = vadd.f32 %v7292_v43, %v1089_v44 }
 0x2f3   : > { %v1097_v45 = vpop.f32.mrf.mxu1  ;;  %v7334_v4 = vpop.f32.mrf.mxu0 }
 0x2f4   : > { %v1098_v26 = vadd.f32 %v7292_v43, %v1097_v45 }
 0x2f5   : > { %v5753_v9 = vpop.f32.mrf.mxu1  ;;  %v5761_v13 = vpop.f32.mrf.mxu0 }
 0x2f6   : > { %v1220_v9 = vpack.c.bf16 %v1093_v46, %v1090_v2 }
 0x2f7   : > { %v1100_v17 = vpop.f32.mrf.mxu1  ;;  %v7336_v25 = vpop.f32.mrf.mxu0 }
 0x2f8   : > { %v1101_v58 = vadd.f32 %v7292_v43, %v1100_v17  ;;  %v1085_v17 = vadd.f32 %v7292_v43, %v1084_v28  ;;  %v1242_v43 = vsel %vm1222_vm2, %v1218_v16, 0 }
 0x2f9   : > { %v5754_v37 = vpop.f32.mrf.mxu1  ;;  %v5762_v35 = vpop.f32.mrf.mxu0 }
 0x2fa   : > { %v1221_v39 = vpack.c.bf16 %v1101_v58, %v1098_v26  ;;  %v1248_v26 = vsel %vm1222_vm2, %v1220_v9, 0  ;;  %v1219_v35 = vpack.c.bf16 %v1085_v17, %v1082_v59  ;;  %v5246_v9 = vld [vmem:[%s9193_s6 + $0x4] ss:$0 sm:$0xff] }
 0x2fb   : > { %v1181_v40 = vpop.f32.mrf.mxu0 }
 0x2fc   : > { %v1251_v47 = vsel %vm1222_vm2, %v1221_v39, 0 }
 0x2fd   : > { %v5765_v49 = vpop.f32.mrf.mxu0  ;;  %5780 = vmatpush3.bf16.xpose.msra.mxu1 %v1251_v47  ;;  %v1245_v47 = vsel %vm1222_vm2, %v1219_v35, 0 }
 0x2fe   : > { %5781 = vmatprep.subr.bf16.mxu1 %v6775_v30 }
 0x2ff   : > { %v1184_v3 = vpop.f32.mrf.mxu0 }
 0x300   : > { %v1185_v53 = vadd.f32 %v5246_v9, %v1184_v3  ;;  %v1177_v3 = vadd.f32 %v5246_v9, %v7336_v25 }
 0x301   : > { %v5766_v45 = vpop.f32.mrf.mxu0 }
 0x303   : > { %v1189_v13 = vpop.f32.mrf.mxu0 }
 0x305   : > { %v5769_v58 = vpop.f32.mrf.mxu0  ;;  %5782 = vmatpush3.bf16.xpose.msra.mxu1 %v1248_v26 }
 0x306   : > { %5783 = vmatprep.subr.bf16.mxu1 %v6775_v30 }
 0x307   : > { %v1192_v37 = vpop.f32.mrf.mxu0 }
 0x308   : > { %v1193_v7 = vadd.f32 %v5246_v9, %v1192_v37  ;;  %v5262_v37 = vld [vmem:[%s9192_s5 + $0x20] sm:$0xff] }
 0x309   : > { %v5770_v39 = vpop.f32.mrf.mxu0 }
 0x30b   : > { %v1197_v44 = vpop.f32.mrf.mxu0 }
 0x30c   : > { %v1198_v39 = vadd.f32 %v5246_v9, %v1197_v44  ;;  %v5265_v44 = vld [vmem:[%s9192_s5 + $0x38] sm:$0xff] }
 0x30d   : > { %v5773_v49 = vpop.f32.mrf.mxu0  ;;  %5784 = vmatpush3.bf16.xpose.msra.mxu1 %v1245_v47  ;;  %v5264_v47 = vld [vmem:[%s9192_s5 + $0x30] sm:$0xff] }
 0x30e   : > { %5785 = vmatprep.subr.bf16.mxu1 %v6775_v30  ;;  %v1190_v49 = vadd.f32 %v5246_v9, %v1189_v13  ;;  %v1559_v19 = vpack.c.bf16 %v5265_v44, %v5264_v47 }
 0x30f   : > { %v1200_v46 = vpop.f32.mrf.mxu0 }
 0x310   : > { %v1201_v59 = vadd.f32 %v5246_v9, %v1200_v46  ;;  %v1454_v8 = vpack.c.bf16 %v1193_v7, %v1190_v49  ;;  %v5263_v46 = vld [vmem:[%s9192_s5 + $0x28] sm:$0xff] }
 0x311   : > { %v5774_v28 = vpop.f32.mrf.mxu0 }
 0x312   : > { %v1455_v16 = vpack.c.bf16 %v1201_v59, %v1198_v39  ;;  %v1182_v28 = vadd.f32 %v5246_v9, %v1181_v40  ;;  %v1174_v40 = vadd.f32 %v5246_v9, %v7334_v4 }
 0x313   : > { %v1205_v2 = vpop.f32.mrf.mxu0 }
 0x314   : > { %v1206_v17 = vadd.f32 %v5246_v9, %v1205_v2  ;;  %v1453_v13 = vpack.c.bf16 %v1185_v53, %v1182_v28  ;;  %v1558_v2 = vpack.c.bf16 %v5263_v46, %v5262_v37  ;;  %v1452_v52 = vpack.c.bf16 %v1177_v3, %v1174_v40 }
 0x315   : > { %v5777_v23 = vpop.f32.mrf.mxu0  ;;  %5786 = vmatpush3.bf16.xpose.msra.mxu1 %v1242_v43 }
 0x316   : > { %5787 = vmatprep.subr.bf16.mxu1 %v6775_v30 }
 0x317   : > { %v1208_v45 = vpop.f32.mrf.mxu0 }
 0x318   : > { %v1209_v26 = vadd.f32 %v5246_v9, %v1208_v45 }
 0x319   : > { %v5778_v58 = vpop.f32.mrf.mxu0 }
 0x31a   : > { %v1456_v35 = vpack.c.bf16 %v1209_v26, %v1206_v17 }
 0x31c   : > { %5810 = vmatpush3.bf16.msra.mxu0 %v1456_v35 }
 0x31d   : > { %5788 = vmatpush3.bf16.xpose.msra.mxu1 %v1239_v5  ;;  %5811 = vmatprep.subr.bf16.mxu0 %v6775_v30 }
 0x31e   : > { %5839 = vmatprep.subr.bf16.mxu1 %v6775_v30 }
 0x320   : > { %5812 = vmatpush3.bf16.msra.mxu0 %v1455_v16 }
 0x321   : > { %5813 = vmatprep.subr.bf16.mxu0 %v6775_v30 }
 0x324   : > { %5790 = vmatmul.mubr.msk.bf16.vlgmr.msra.gmra.mxu1 %vm1222_vm2, %v1212_v62  ;;  %5814 = vmatpush3.bf16.msra.mxu0 %v1454_v8  ;;  %v5287_v62 = vld [vmem:[%s9192_s5 + $0xb8] sm:$0xff] }
 0x325   : > { %5815 = vmatprep.subr.bf16.mxu0 %v6775_v30  ;;  %5793 = vmatprep.mubr.msk.bf16.mxu1 %vm6776_vm1, %v6775_v30  ;;  %v1735_v32 = vpack.c.bf16 %v5287_v62, %v5286_v57 }
 0x326   : > { %5840 = vmatpush3.bf16.msra.mxu1 %v1559_v19 }
 0x327   : > { %5841 = vmatprep.subr.bf16.mxu1 %v6775_v30 }
 0x328   : > { %5816 = vmatpush3.bf16.msra.mxu0 %v1453_v13 }
 0x329   : > { %5817 = vmatprep.subr.bf16.mxu0 %v6775_v30 }
 0x32a   : > { %5842 = vmatpush3.bf16.msra.mxu1 %v1558_v2 }
 0x32b   : > { %5887 = vmatprep.subr.bf16.mxu1 %v6775_v30 }
 0x32c   : > { %5794 = vmatmul.mubr.msk.bf16.gmra.mxu1 %vm1222_vm2, %v1213_v14  ;;  %5818 = vmatpush3.bf16.msra.mxu0 %v1452_v52  ;;  %v5267_v52 = vld [vmem:[%s9193_s6 + $0x1] ss:$0 sm:$0xff] }
 0x32d   : > { %5797 = vmatprep.mubr.msk.bf16.mxu1 %vm6776_vm1, %v6775_v30  ;;  %5863 = vmatprep.subr.bf16.mxu0 %v6775_v30 }
 0x334   : > { %5798 = vmatmul.mubr.msk.bf16.gmra.mxu1 %vm1222_vm2, %v1214_v24 }
 0x335   : > { %5801 = vmatprep.mubr.msk.bf16.mxu1 %vm6776_vm1, %v6775_v30 }
 0x33c   : > { %5802 = vmatmul.mubr.msk.bf16.gmra.mxu1 %vm1222_vm2, %v1215_v15 }
 0x33d   : > { %5805 = vmatprep.mubr.msk.bf16.mxu1 %vm6776_vm1, %v6775_v30 }
 0x344   : > { %5806 = vmatmul.mubr.msk.bf16.gmra.mxu1 %vm1222_vm2, %v1216_v21 }
 0x345   : > { %5843 = vmatprep.mubr.msk.bf16.mxu1 %vm6776_vm1, %v6775_v30 }
 0x34c   : > { %5844 = vmatmul.mubr.msk.bf16.vlgmr.msra.gmra.mxu1 %vm732_vm0, %v7166_v12 }
 0x34d   : > { %5847 = vmatprep.mubr.msk.bf16.mxu1 %vm6776_vm1, %v6775_v30  ;;  %5888 = vmatpush3.bf16.msra.mxu1 %v1735_v32 }
 0x34e   : > { %5889 = vmatprep.subr.bf16.mxu1 %v6775_v30 }
 0x351   : > { %5890 = vmatpush3.bf16.msra.mxu1 %v1734_v38 }
 0x352   : > { %5941 = vmatprep.subr.bf16.mxu1 %v6775_v30 }
 0x354   : > { %5848 = vmatmul.mubr.msk.bf16.gmra.mxu1 %vm732_vm0, %v7196_v29 }
 0x355   : > { %5851 = vmatprep.mubr.msk.bf16.mxu1 %vm6776_vm1, %v6775_v30 }
 0x35c   : > { %5852 = vmatmul.mubr.msk.bf16.gmra.mxu1 %vm732_vm0, %v7218_v51 }
 0x35d   : > { %5855 = vmatprep.mubr.msk.bf16.mxu1 %vm6776_vm1, %v6775_v30 }
 0x364   : > { %5856 = vmatmul.mubr.msk.bf16.gmra.mxu1 %vm732_vm0, %v7240_v31 }
 0x365   : > { %5859 = vmatprep.mubr.msk.bf16.mxu1 %vm6776_vm1, %v6775_v30 }
 0x36c   : > { %5860 = vmatmul.mubr.msk.bf16.gmra.mxu1 %vm732_vm0, %v7134_v56 }
 0x36d   : > { %5891 = vmatprep.mubr.msk.bf16.mxu1 %vm6776_vm1, %v6775_v30 }
 0x374   : > { %5892 = vmatmul.mubr.msk.bf16.vlgmr.msra.gmra.mxu1 %vm732_vm0, %v7163_v11 }
 0x375   : > { %5895 = vmatprep.mubr.msk.bf16.mxu1 %vm6776_vm1, %v6775_v30 }
 0x37c   : > { %5896 = vmatmul.mubr.msk.bf16.gmra.mxu1 %vm732_vm0, %v7258_v0 }
 0x37d   : > { %5899 = vmatprep.mubr.msk.bf16.mxu1 %vm6776_vm1, %v6775_v30 }
 0x384   : > { %5900 = vmatmul.mubr.msk.bf16.gmra.mxu1 %vm732_vm0, %v7264_v22 }
 0x385   : > { %5903 = vmatprep.mubr.msk.bf16.mxu1 %vm6776_vm1, %v6775_v30 }
 0x38c   : > { %5904 = vmatmul.mubr.msk.bf16.gmra.mxu1 %vm732_vm0, %v7270_v27 }
 0x38d   : > { %5907 = vmatprep.mubr.msk.bf16.mxu1 %vm6776_vm1, %v6775_v30 }
 0x394   : > { %5908 = vmatmul.mubr.msk.bf16.gmra.mxu1 %vm732_vm0, %v7131_v48 }
 0x395   : > { %5951 = vmatprep.mubr.msk.bf16.mxu1 %vm6776_vm1, %v6775_v30 }
 0x3e4   : > { %v1287_v11 = vpop.f32.mrf.mxu1 }
 0x3e5   : > { %v7468_v0 = vmul.f32 0.25, %v1287_v11 }
 0x3e6   : > { %v5791_v22 = vpop.f32.mrf.mxu1 }
 0x3e7   : > { %v1337_v21 = vsel %vm1336_vm3, %v7468_v0, -inf }
 0x3e8   : > { %1338 = vmax.xlane.f32.xlu0 %v1337_v21  ;;  %v1290_v14 = vpop.f32.mrf.mxu1 }
 0x3e9   : > { %v7472_v27 = vmul.f32 0.25, %v1290_v14 }
 0x3ea   : > { %v5792_v34 = vpop.f32.mrf.mxu1 }
 0x3eb   : > { %v1340_v36 = vsel %vm1336_vm3, %v7472_v27, -inf }
 0x3ec   : > { %1341 = vmax.xlane.f32.xlu1 %v1340_v36  ;;  %v1295_v48 = vpop.f32.mrf.mxu1 }
 0x3ed   : > { %v7476_v24 = vmul.f32 0.25, %v1295_v48 }
 0x3ee   : > { %v5795_v60 = vpop.f32.mrf.mxu1 }
 0x3ef   : > { %v1343_v1 = vsel %vm1336_vm3, %v7476_v24, -inf }
 0x3f0   : > { %1344 = vmax.xlane.f32.xlu0 %v1343_v1  ;;  %v1298_v15 = vpop.f32.mrf.mxu1 }
 0x3f1   : > { %v7480_v4 = vmul.f32 0.25, %v1298_v15 }
 0x3f2   : > { %v5796_v25 = vpop.f32.mrf.mxu1 }
 0x3f3   : > { %v1346_v43 = vsel %vm1336_vm3, %v7480_v4, -inf }
 0x3f4   : > { %1347 = vmax.xlane.f32.xlu1 %v1346_v43  ;;  %v1303_v23 = vpop.f32.mrf.mxu1 }
 0x3f5   : > { %v7484_v9 = vmul.f32 0.25, %v1303_v23 }
 0x3f6   : > { %v5799_v45 = vpop.f32.mrf.mxu1 }
 0x3f7   : > { %v1349_v17 = vsel %vm1336_vm3, %v7484_v9, -inf }
 0x3f8   : > { %1350 = vmax.xlane.f32.xlu0 %v1349_v17  ;;  %v1306_v26 = vpop.f32.mrf.mxu1 }
 0x3f9   : > { %v7488_v58 = vmul.f32 0.25, %v1306_v26 }
 0x3fa   : > { %v5800_v59 = vpop.f32.mrf.mxu1 }
 0x3fb   : > { %v1352_v35 = vsel %vm1336_vm3, %v7488_v58, -inf }
 0x3fc   : > { %1353 = vmax.xlane.f32.xlu1 %v1352_v35  ;;  %v1311_v39 = vpop.f32.mrf.mxu1 }
 0x3fd   : > { %v7492_v5 = vmul.f32 0.25, %v1311_v39 }
 0x3fe   : > { %v5803_v7 = vpop.f32.mrf.mxu1 }
 0x3ff   : > { %v1355_v16 = vsel %vm1336_vm3, %v7492_v5, -inf }
 0x400   : > { %1356 = vmax.xlane.f32.xlu0 %v1355_v16  ;;  %v1314_v47 = vpop.f32.mrf.mxu1 }
 0x401   : > { %v7496_v44 = vmul.f32 0.25, %v1314_v47 }
 0x402   : > { %v5804_v49 = vpop.f32.mrf.mxu1 }
 0x403   : > { %v1358_v53 = vsel %vm1336_vm3, %v7496_v44, -inf }
 0x404   : > { %1359 = vmax.xlane.f32.xlu1 %v1358_v53  ;;  %v1319_v8 = vpop.f32.mrf.mxu1 }
 0x405   : > { %v7500_v19 = vmul.f32 0.25, %v1319_v8 }
 0x406   : > { %v5807_v37 = vpop.f32.mrf.mxu1 }
 0x407   : > { %v1361_v46 = vsel %vm1336_vm3, %v7500_v19, -inf }
 0x408   : > { %1362 = vmax.xlane.f32.xlu0 %v1361_v46  ;;  %v1322_v28 = vpop.f32.mrf.mxu1 }
 0x409   : > { %v7504_v3 = vmul.f32 0.25, %v1322_v28 }
 0x40a   : > { %v5808_v13 = vpop.f32.mrf.mxu1 }
 0x40b   : > { %v1364_v2 = vsel %vm1336_vm3, %v7504_v3, -inf }
 0x40c   : > { %1365 = vmax.xlane.f32.xlu1 %v1364_v2  ;;  %v1602_v40 = vpop.f32.mrf.mxu1 }
 0x40d   : > { %v7511_v32 = vadd.f32 %v5267_v52, %v1602_v40 }
 0x40e   : > { %v5845_v57 = vpop.f32.mrf.mxu1 }
 0x410   : > { %v1605_v62 = vpop.f32.mrf.mxu1 }
 0x411   : > { %v7513_v6 = vadd.f32 %v5267_v52, %v1605_v62 }
 0x412   : > { %v5846_v20 = vpop.f32.mrf.mxu1 }
 0x413   : > { %v1817_v38 = vpack.c.bf16 %v7513_v6, %v7511_v32 }
 0x414   : > { %v1610_v11 = vpop.f32.mrf.mxu1 }
 0x415   : > { %v7517_v14 = vadd.f32 %v5267_v52, %v1610_v11 }
 0x416   : > { %v5849_v22 = vpop.f32.mrf.mxu1 }
 0x418   : > { %v1613_v21 = vpop.f32.mrf.mxu1 }
 0x419   : > { %v7519_v34 = vadd.f32 %v5267_v52, %v1613_v21 }
 0x41a   : > { %v5850_v36 = vpop.f32.mrf.mxu1 }
 0x41b   : > { %v1818_v48 = vpack.c.bf16 %v7519_v34, %v7517_v14 }
 0x41c   : > { %v1618_v60 = vpop.f32.mrf.mxu1 }
 0x41d   : > { %v7523_v25 = vadd.f32 %v5267_v52, %v1618_v60 }
 0x41e   : > { %v5853_v1 = vpop.f32.mrf.mxu1 }
 0x420   : > { %v1621_v15 = vpop.f32.mrf.mxu1 }
 0x421   : > { %v7525_v43 = vadd.f32 %v5267_v52, %v1621_v15 }
 0x422   : > { %v5854_v23 = vpop.f32.mrf.mxu1 }
 0x423   : > { %v1819_v45 = vpack.c.bf16 %v7525_v43, %v7523_v25 }
 0x424   : > { %v1626_v17 = vpop.f32.mrf.mxu1 }
 0x425   : > { %v7529_v35 = vadd.f32 %v5267_v52, %v1626_v17 }
 0x426   : > { %v5857_v26 = vpop.f32.mrf.mxu1 }
 0x428   : > { %v1629_v59 = vpop.f32.mrf.mxu1 }
 0x429   : > { %v7531_v39 = vadd.f32 %v5267_v52, %v1629_v59 }
 0x42a   : > { %v5858_v7 = vpop.f32.mrf.mxu1 }
 0x42b   : > { %v1820_v16 = vpack.c.bf16 %v7531_v39, %v7529_v35  ;;  %v5289_v7 = vld [vmem:[%s9193_s6 + $0x5] ss:$0 sm:$0xff] }
 0x42c   : > { %v1634_v47 = vpop.f32.mrf.mxu1 }
 0x42d   : > { %v7535_v8 = vadd.f32 %v5267_v52, %v1634_v47 }
 0x42e   : > { %v5861_v49 = vpop.f32.mrf.mxu1 }
 0x430   : > { %v1637_v53 = vpop.f32.mrf.mxu1 }
 0x431   : > { %v7537_v37 = vadd.f32 %v5267_v52, %v1637_v53 }
 0x432   : > { %v5862_v46 = vpop.f32.mrf.mxu1 }
 0x433   : > { %v1821_v28 = vpack.c.bf16 %v7537_v37, %v7535_v8 }
 0x434   : > { %v1778_v13 = vpop.f32.mrf.mxu1 }
 0x436   : > { %v5893_v2 = vpop.f32.mrf.mxu1 }
 0x438   : > { %v1781_v40 = vpop.f32.mrf.mxu1 }
 0x43a   : > { %v5894_v57 = vpop.f32.mrf.mxu1 }
 0x43c   : > { %v1786_v62 = vpop.f32.mrf.mxu1 }
 0x43e   : > { %v5897_v20 = vpop.f32.mrf.mxu1 }
 0x440   : > { %v1789_v11 = vpop.f32.mrf.mxu1 }
 0x442   : > { %v5898_v22 = vpop.f32.mrf.mxu1 }
 0x444   : > { %v1794_v21 = vpop.f32.mrf.mxu1 }
 0x446   : > { %v5901_v36 = vpop.f32.mrf.mxu1 }
 0x448   : > { %v1797_v60 = vpop.f32.mrf.mxu1 }
 0x449   : > { %v1798_v22 = vadd.f32 %v5289_v7, %v1797_v60 }
 0x44a   : > { %v5902_v1 = vpop.f32.mrf.mxu1 }
 0x44b   : > { %v1795_v1 = vadd.f32 %v5289_v7, %v1794_v21 }
 0x44c   : > { %v1802_v15 = vpop.f32.mrf.mxu1 }
 0x44d   : > { %v1803_v20 = vadd.f32 %v5289_v7, %v1802_v15 }
 0x44e   : > { %v5905_v23 = vpop.f32.mrf.mxu1 }
 0x44f   : > { %v1790_v23 = vadd.f32 %v5289_v7, %v1789_v11 }
 0x450   : > { %v1805_v52 = vpop.f32.mrf.mxu1 }
 0x451   : > { %v1806_v2 = vadd.f32 %v5289_v7, %v1805_v52  ;;  %v1779_v52 = vadd.f32 %v5289_v7, %v1778_v13 }
 0x452   : > { %v5906_v17 = vpop.f32.mrf.mxu1 }
 0x453   : > { %v2058_v36 = vpack.c.bf16 %v1806_v2, %v1803_v20  ;;  %v2057_v17 = vpack.c.bf16 %v1798_v22, %v1795_v1 }
 0x454   : > { %v1810_v26 = vpop.f32.mrf.mxu1 }
 0x455   : > { %v1811_v49 = vadd.f32 %v5289_v7, %v1810_v26  ;;  %v1782_v26 = vadd.f32 %v5289_v7, %v1781_v40 }
 0x456   : > { %v5909_v59 = vpop.f32.mrf.mxu1 }
 0x457   : > { %v1787_v59 = vadd.f32 %v5289_v7, %v1786_v62  ;;  %v2055_v15 = vpack.c.bf16 %v1782_v26, %v1779_v52 }
 0x458   : > { %v1813_v47 = vpop.f32.mrf.mxu1 }
 0x459   : > { %v1814_v53 = vadd.f32 %v5289_v7, %v1813_v47  ;;  %v2056_v47 = vpack.c.bf16 %v1790_v23, %v1787_v59 }
 0x45a   : > { %v5910_v46 = vpop.f32.mrf.mxu1 }
 0x45b   : > { %v2059_v57 = vpack.c.bf16 %v1814_v53, %v1811_v49 }
 0x45d   : > { %5942 = vmatpush3.bf16.msra.mxu1 %v2059_v57 }
 0x45e   : > { %5943 = vmatprep.subr.bf16.mxu1 %v6775_v30 }
 0x461   : > { %5944 = vmatpush3.bf16.msra.mxu1 %v2058_v36 }
 0x462   : > { %5945 = vmatprep.subr.bf16.mxu1 %v6775_v30 }
 0x465   : > { %5946 = vmatpush3.bf16.msra.mxu1 %v2057_v17 }
 0x466   : > { %5947 = vmatprep.subr.bf16.mxu1 %v6775_v30 }
 0x469   : > { %5948 = vmatpush3.bf16.msra.mxu1 %v2056_v47 }
 0x46a   : > { %5949 = vmatprep.subr.bf16.mxu1 %v6775_v30 }
 0x46d   : > { %5950 = vmatpush3.bf16.msra.mxu1 %v2055_v15 }
 0x46e   : > { %5993 = vmatprep.subr.bf16.mxu1 %v6775_v30 }
 0x471   : > { %v1339_v21 = vpop.xlane.xlu0 %1338 }
 0x472   : > { %v1367_v60 = vsub.f32 %v7468_v0, %v1339_v21 }
 0x474   : > { %v1377_v49 = vmul.f32 1.442695, %v1367_v60 }
 0x475   : > { %v1342_v11 = vpop.xlane.xlu1 %1341 }
 0x476   : > { %6416 = vpow2.f32 %v1377_v49  ;;  %v1368_v62 = vsub.f32 %v7472_v27, %v1342_v11 }
 0x478   : > { %v1379_v53 = vmul.f32 1.442695, %v1368_v62 }
 0x479   : > { %v1345_v46 = vpop.xlane.xlu0 %1344 }
 0x47a   : > { %6418 = vpow2.f32 %v1379_v53  ;;  %v1369_v13 = vsub.f32 %v7476_v24, %v1345_v46 }
 0x47c   : > { %v1381_v40 = vmul.f32 1.442695, %v1369_v13 }
 0x47d   : > { %v1348_v7 = vpop.xlane.xlu1 %1347 }
 0x47e   : > { %6420 = vpow2.f32 %v1381_v40  ;;  %v1370_v2 = vsub.f32 %v7480_v4, %v1348_v7 }
 0x480   : > { %v1383_v57 = vmul.f32 1.442695, %v1370_v2 }
 0x481   : > { %v1351_v20 = vpop.xlane.xlu0 %1350 }
 0x482   : > { %6422 = vpow2.f32 %v1383_v57  ;;  %v1371_v0 = vsub.f32 %v7484_v9, %v1351_v20 }
 0x483   : > { %v7554_v22 = vpop.eup %6416 }
 0x484   : > { %v1385_v36 = vmul.f32 1.442695, %v1371_v0  ;;  %v1397_v27 = vsel %vm1336_vm3, %v7554_v22, 0.0 }
 0x485   : > { %v1354_v1 = vpop.xlane.xlu1 %1353  ;;  %1398 = vadd.xlane.f32.xlu0 %v1397_v27 }
 0x486   : > { %6424 = vpow2.f32 %v1385_v36  ;;  %v1372_v24 = vsub.f32 %v7488_v58, %v1354_v1 }
 0x487   : > { %v6419_v23 = vpop.eup %6418 }
 0x488   : > { %v1387_v17 = vmul.f32 1.442695, %v1372_v24  ;;  %v1400_v4 = vsel %vm1336_vm3, %v6419_v23, 0.0 }
 0x489   : > { %v1357_v59 = vpop.xlane.xlu0 %1356  ;;  %1401 = vadd.xlane.f32.xlu1 %v1400_v4 }
 0x48a   : > { %6426 = vpow2.f32 %v1387_v17  ;;  %v1373_v9 = vsub.f32 %v7492_v5, %v1357_v59 }
 0x48b   : > { %v7561_v26 = vpop.eup %6420 }
 0x48c   : > { %v1389_v47 = vmul.f32 1.442695, %v1373_v9  ;;  %v1403_v52 = vsel %vm1336_vm3, %v7561_v26, 0.0 }
 0x48d   : > { %v1360_v15 = vpop.xlane.xlu1 %1359  ;;  %1404 = vadd.xlane.f32.xlu0 %v1403_v52  ;;  %v5275_v52 = vld [vmem:[%s9192_s5 + $0x70] sm:$0xff] }
 0x48e   : > { %6428 = vpow2.f32 %v1389_v47  ;;  %v1374_v58 = vsub.f32 %v7496_v44, %v1360_v15  ;;  %v5276_v15 = vld [vmem:[%s9192_s5 + $0x78] sm:$0xff] }
 0x48f   : > { %v7566_v21 = vpop.eup %6422 }
 0x490   : > { %v1391_v60 = vmul.f32 1.442695, %v1374_v58  ;;  %v1406_v49 = vsel %vm1336_vm3, %v7566_v21, 0.0 }
 0x491   : > { %v1363_v11 = vpop.xlane.xlu0 %1362  ;;  %1407 = vadd.xlane.f32.xlu1 %v1406_v49 }
 0x492   : > { %6430 = vpow2.f32 %v1391_v60  ;;  %v1375_v5 = vsub.f32 %v7500_v19, %v1363_v11 }
 0x493   : > { %v7571_v62 = vpop.eup %6424 }
 0x494   : > { %v1393_v53 = vmul.f32 1.442695, %v1375_v5  ;;  %v1409_v46 = vsel %vm1336_vm3, %v7571_v62, 0.0  ;;  %v1647_v5 = vpack.c.bf16 %v5276_v15, %v5275_v52 }
 0x495   : > { %1410 = vadd.xlane.f32.xlu0 %v1409_v46  ;;  %v1366_v13 = vpop.xlane.xlu1 %1365  ;;  %v5273_v46 = vld [vmem:[%s9192_s5 + $0x60] sm:$0xff] }
 0x496   : > { %6432 = vpow2.f32 %v1393_v53  ;;  %v1376_v44 = vsub.f32 %v7504_v3, %v1366_v13  ;;  %v5274_v13 = vld [vmem:[%s9192_s5 + $0x68] sm:$0xff] }
 0x497   : > { %v6427_v40 = vpop.eup %6426 }
 0x498   : > { %v1395_v7 = vmul.f32 1.442695, %v1376_v44  ;;  %v1412_v2 = vsel %vm1336_vm3, %v6427_v40, 0.0 }
 0x499   : > { %1413 = vadd.xlane.f32.xlu1 %v1412_v2 }
 0x49a   : > { %6434 = vpow2.f32 %v1395_v7 }
 0x49b   : > { %v7577_v57 = vpop.eup %6428 }
 0x49c   : > { %v1415_v19 = vsel %vm1336_vm3, %v7577_v57, 0.0 }
 0x49d   : > { %1416 = vadd.xlane.f32.xlu0 %v1415_v19 }
 0x49f   : > { %v7581_v20 = vpop.eup %6430 }
 0x4a0   : > { %v1418_v0 = vsel %vm1336_vm3, %v7581_v20, 0.0 }
 0x4a1   : > { %1419 = vadd.xlane.f32.xlu1 %v1418_v0 }
 0x4a3   : > { %v7585_v36 = vpop.eup %6432 }
 0x4a4   : > { %v1421_v3 = vsel %vm1336_vm3, %v7585_v36, 0.0 }
 0x4a5   : > { %1422 = vadd.xlane.f32.xlu0 %v1421_v3 }
 0x4a7   : > { %v7589_v27 = vpop.eup %6434 }
 0x4a8   : > { %v1424_v1 = vsel %vm1336_vm3, %v7589_v27, 0.0 }
 0x4a9   : > { %1425 = vadd.xlane.f32.xlu1 %v1424_v1 }
 0x50e   : > { %v1399_v24 = vpop.xlane.xlu0 %1398 }
 0x50f   : > { %6436 = vrcp.f32 %v1399_v24 }
 0x512   : > { %v1402_v17 = vpop.xlane.xlu1 %1401 }
 0x513   : > { %6438 = vrcp.f32 %v1402_v17 }
 0x516   : > { %v1405_v4 = vpop.xlane.xlu0 %1404 }
 0x517   : > { %6440 = vrcp.f32 %v1405_v4 }
 0x51a   : > { %v1408_v59 = vpop.xlane.xlu1 %1407 }
 0x51b   : > { %6442 = vrcp.f32 %v1408_v59 }
 0x51c   : > { %v6437_v9 = vpop.eup %6436 }
 0x51d   : > { %v1437_v60 = vmul.f32 %v6437_v9, %v7554_v22  ;;  %v1646_v22 = vpack.c.bf16 %v5274_v13, %v5273_v46 }
 0x51e   : > { %v1411_v47 = vpop.xlane.xlu0 %1410 }
 0x51f   : > { %6444 = vrcp.f32 %v1411_v47 }
 0x520   : > { %v6439_v58 = vpop.eup %6438 }
 0x521   : > { %v1438_v49 = vmul.f32 %v6439_v58, %v6419_v23 }
 0x522   : > { %v1414_v11 = vpop.xlane.xlu1 %1413 }
 0x523   : > { %6446 = vrcp.f32 %v1414_v11  ;;  %v1447_v53 = vpack.c.bf16 %v1438_v49, %v1437_v60 }
 0x524   : > { %v6441_v44 = vpop.eup %6440 }
 0x525   : > { %5820 = vmatmul.mubr.msk.bf16.vlgmr.msra.gmra.mxu0 %vm1336_vm3, %v1447_v53  ;;  %v1439_v2 = vmul.f32 %v6441_v44, %v7561_v26 }
 0x526   : > { %v1417_v7 = vpop.xlane.xlu0 %1416  ;;  %5864 = vmatpush3.bf16.msra.mxu0 %v1647_v5  ;;  %5823 = vmatprep.mubr.msk.bf16.mxu0 %vm6776_vm1, %v6775_v30 }
 0x527   : > { %5865 = vmatprep.subr.bf16.mxu0 %v6775_v30  ;;  %6448 = vrcp.f32 %v1417_v7 }
 0x528   : > { %v6443_v23 = vpop.eup %6442 }
 0x529   : > { %v1440_v19 = vmul.f32 %v6443_v23, %v7566_v21 }
 0x52a   : > { %v1420_v0 = vpop.xlane.xlu1 %1419  ;;  %5866 = vmatpush3.bf16.msra.mxu0 %v1646_v22 }
 0x52b   : > { %6450 = vrcp.f32 %v1420_v0  ;;  %v1448_v3 = vpack.c.bf16 %v1440_v19, %v1439_v2  ;;  %5911 = vmatprep.subr.bf16.mxu0 %v6775_v30 }
 0x52c   : > { %v6445_v1 = vpop.eup %6444 }
 0x52d   : > { %5824 = vmatmul.mubr.msk.bf16.gmra.mxu0 %vm1336_vm3, %v1448_v3  ;;  %v1441_v4 = vmul.f32 %v6445_v1, %v7571_v62 }
 0x52e   : > { %v1423_v24 = vpop.xlane.xlu0 %1422  ;;  %5827 = vmatprep.mubr.msk.bf16.mxu0 %vm6776_vm1, %v6775_v30 }
 0x52f   : > { %6452 = vrcp.f32 %v1423_v24 }
 0x530   : > { %v6447_v17 = vpop.eup %6446 }
 0x531   : > { %v1442_v26 = vmul.f32 %v6447_v17, %v6427_v40 }
 0x532   : > { %v1426_v59 = vpop.xlane.xlu1 %1425 }
 0x533   : > { %6454 = vrcp.f32 %v1426_v59  ;;  %v1449_v21 = vpack.c.bf16 %v1442_v26, %v1441_v4  ;;  %v5278_v59 = vld [vmem:[%s9193_s6 + $0x3] ss:$0 sm:$0xff] }
 0x534   : > { %v6449_v9 = vpop.eup %6448 }
 0x535   : > { %5828 = vmatmul.mubr.msk.bf16.gmra.mxu0 %vm1336_vm3, %v1449_v21  ;;  %v1443_v52 = vmul.f32 %v6449_v9, %v7577_v57 }
 0x536   : > { %5831 = vmatprep.mubr.msk.bf16.mxu0 %vm6776_vm1, %v6775_v30 }
 0x538   : > { %v6451_v47 = vpop.eup %6450 }
 0x539   : > { %v1444_v15 = vmul.f32 %v6451_v47, %v7581_v20 }
 0x53b   : > { %v1450_v58 = vpack.c.bf16 %v1444_v15, %v1443_v52 }
 0x53c   : > { %v6453_v60 = vpop.eup %6452 }
 0x53d   : > { %5832 = vmatmul.mubr.msk.bf16.gmra.mxu0 %vm1336_vm3, %v1450_v58  ;;  %v1445_v40 = vmul.f32 %v6453_v60, %v7585_v36 }
 0x53e   : > { %5835 = vmatprep.mubr.msk.bf16.mxu0 %vm6776_vm1, %v6775_v30 }
 0x540   : > { %v6455_v62 = vpop.eup %6454 }
 0x541   : > { %v1446_v49 = vmul.f32 %v6455_v62, %v7589_v27 }
 0x543   : > { %v1451_v11 = vpack.c.bf16 %v1446_v49, %v1445_v40 }
 0x545   : > { %5836 = vmatmul.mubr.msk.bf16.gmra.mxu0 %vm1336_vm3, %v1451_v11 }
 0x546   : > { %5867 = vmatprep.mubr.msk.bf16.mxu0 %vm6776_vm1, %v6775_v30 }
 0x54d   : > { %5868 = vmatmul.mubr.msk.bf16.vlgmr.msra.gmra.mxu0 %vm732_vm0, %v7166_v12 }
 0x54e   : > { %5871 = vmatprep.mubr.msk.bf16.mxu0 %vm6776_vm1, %v6775_v30 }
 0x555   : > { %5872 = vmatmul.mubr.msk.bf16.gmra.mxu0 %vm732_vm0, %v7196_v29 }
 0x556   : > { %5875 = vmatprep.mubr.msk.bf16.mxu0 %vm6776_vm1, %v6775_v30 }
 0x55d   : > { %5876 = vmatmul.mubr.msk.bf16.gmra.mxu0 %vm732_vm0, %v7218_v51 }
 0x55e   : > { %5879 = vmatprep.mubr.msk.bf16.mxu0 %vm6776_vm1, %v6775_v30 }
 0x565   : > { %5880 = vmatmul.mubr.msk.bf16.gmra.mxu0 %vm732_vm0, %v7240_v31 }
 0x566   : > { %5883 = vmatprep.mubr.msk.bf16.mxu0 %vm6776_vm1, %v6775_v30 }
 0x56d   : > { %5884 = vmatmul.mubr.msk.bf16.gmra.mxu0 %vm732_vm0, %v7134_v56 }
 0x56e   : > { %5921 = vmatprep.mubr.msk.bf16.mxu0 %vm6776_vm1, %v6775_v30 }
 0x5e5   : > { %v7650_v12 = vpop.f32.mrf.mxu0 }
 0x5e7   : > { %v5821_v29 = vpop.f32.mrf.mxu0 }
 0x5e9   : > { %v7652_v57 = vpop.f32.mrf.mxu0 }
 0x5ea   : > { %v1547_v51 = vpack.c.bf16 %v7652_v57, %v7650_v12 }
 0x5eb   : > { %v5822_v20 = vpop.f32.mrf.mxu0 }
 0x5ed   : > { %v7656_v36 = vpop.f32.mrf.mxu0 }
 0x5ef   : > { %v5825_v31 = vpop.f32.mrf.mxu0 }
 0x5f1   : > { %v7658_v27 = vpop.f32.mrf.mxu0 }
 0x5f2   : > { %v1548_v56 = vpack.c.bf16 %v7658_v27, %v7656_v36 }
 0x5f3   : > { %v5826_v5 = vpop.f32.mrf.mxu0 }
 0x5f5   : > { %v7662_v53 = vpop.f32.mrf.mxu0 }
 0x5f7   : > { %v5829_v46 = vpop.f32.mrf.mxu0 }
 0x5f9   : > { %v7664_v13 = vpop.f32.mrf.mxu0 }
 0x5fa   : > { %v1549_v44 = vpack.c.bf16 %v7664_v13, %v7662_v53 }
 0x5fb   : > { %v5830_v7 = vpop.f32.mrf.mxu0 }
 0x5fd   : > { %v7668_v22 = vpop.f32.mrf.mxu0 }
 0x5ff   : > { %v5833_v23 = vpop.f32.mrf.mxu0 }
 0x601   : > { %v7670_v2 = vpop.f32.mrf.mxu0 }
 0x602   : > { %v1550_v19 = vpack.c.bf16 %v7670_v2, %v7668_v22 }
 0x603   : > { %v5834_v0 = vpop.f32.mrf.mxu0 }
 0x605   : > { %v7674_v3 = vpop.f32.mrf.mxu0 }
 0x607   : > { %v5837_v1 = vpop.f32.mrf.mxu0 }
 0x609   : > { %v7676_v24 = vpop.f32.mrf.mxu0 }
 0x60a   : > { %v1551_v17 = vpack.c.bf16 %v7676_v24, %v7674_v3 }
 0x60b   : > { %v5838_v4 = vpop.f32.mrf.mxu0 }
 0x60d   : > { %v1690_v26 = vpop.f32.mrf.mxu0 }
 0x60e   : > { %v1691_v47 = vadd.f32 %v5278_v59, %v1690_v26 }
 0x60f   : > { %v5869_v21 = vpop.f32.mrf.mxu0 }
 0x611   : > { %v1693_v9 = vpop.f32.mrf.mxu0 }
 0x612   : > { %v1694_v52 = vadd.f32 %v5278_v59, %v1693_v9 }
 0x613   : > { %v5870_v15 = vpop.f32.mrf.mxu0 }
 0x614   : > { %v1822_v58 = vpack.c.bf16 %v1694_v52, %v1691_v47 }
 0x615   : > { %v1698_v60 = vpop.f32.mrf.mxu0 }
 0x617   : > { %v5873_v62 = vpop.f32.mrf.mxu0 }
 0x619   : > { %v1701_v40 = vpop.f32.mrf.mxu0 }
 0x61b   : > { %v5874_v49 = vpop.f32.mrf.mxu0 }
 0x61d   : > { %v1706_v11 = vpop.f32.mrf.mxu0 }
 0x61f   : > { %v5877_v29 = vpop.f32.mrf.mxu0 }
 0x621   : > { %v1709_v20 = vpop.f32.mrf.mxu0 }
 0x622   : > { %v1710_v29 = vadd.f32 %v5278_v59, %v1709_v20  ;;  %v1843_v20 = vsel %vm1222_vm2, %v1822_v58, 0 }
 0x623   : > { %v5878_v31 = vpop.f32.mrf.mxu0 }
 0x625   : > { %v1714_v5 = vpop.f32.mrf.mxu0 }
 0x626   : > { %v1715_v62 = vadd.f32 %v5278_v59, %v1714_v5 }
 0x627   : > { %v5881_v46 = vpop.f32.mrf.mxu0 }
 0x628   : > { %v1707_v46 = vadd.f32 %v5278_v59, %v1706_v11 }
 0x629   : > { %v1717_v7 = vpop.f32.mrf.mxu0 }
 0x62a   : > { %v1718_v47 = vadd.f32 %v5278_v59, %v1717_v7  ;;  %v1699_v7 = vadd.f32 %v5278_v59, %v1698_v60 }
 0x62b   : > { %v5882_v23 = vpop.f32.mrf.mxu0 }
 0x62c   : > { %v1825_v49 = vpack.c.bf16 %v1718_v47, %v1715_v62  ;;  %v1824_v23 = vpack.c.bf16 %v1710_v29, %v1707_v46 }
 0x62d   : > { %v1722_v0 = vpop.f32.mrf.mxu0 }
 0x62e   : > { %v1723_v21 = vadd.f32 %v5278_v59, %v1722_v0  ;;  %v1852_v31 = vsel %vm1222_vm2, %v1825_v49, 0  ;;  %v1702_v0 = vadd.f32 %v5278_v59, %v1701_v40 }
 0x62f   : > { %v5885_v1 = vpop.f32.mrf.mxu0 }
 0x630   : > { %v1849_v1 = vsel %vm1222_vm2, %v1824_v23, 0 }
 0x631   : > { %v1725_v4 = vpop.f32.mrf.mxu0 }
 0x632   : > { %v1726_v26 = vadd.f32 %v5278_v59, %v1725_v4  ;;  %v1823_v4 = vpack.c.bf16 %v1702_v0, %v1699_v7 }
 0x633   : > { %v5886_v9 = vpop.f32.mrf.mxu0 }
 0x634   : > { %v1826_v15 = vpack.c.bf16 %v1726_v26, %v1723_v21  ;;  %v1846_v5 = vsel %vm1222_vm2, %v1823_v4, 0 }
 0x636   : > { %v1855_v52 = vsel %vm1222_vm2, %v1826_v15, 0 }
 0x637   : > { %5912 = vmatpush3.bf16.xpose.msra.mxu0 %v1855_v52 }
 0x638   : > { %5913 = vmatprep.subr.bf16.mxu0 %v6775_v30 }
 0x63f   : > { %5914 = vmatpush3.bf16.xpose.msra.mxu0 %v1852_v31 }
 0x640   : > { %5915 = vmatprep.subr.bf16.mxu0 %v6775_v30 }
 0x647   : > { %5916 = vmatpush3.bf16.xpose.msra.mxu0 %v1849_v1 }
 0x648   : > { %5917 = vmatprep.subr.bf16.mxu0 %v6775_v30 }
 0x64f   : > { %5918 = vmatpush3.bf16.xpose.msra.mxu0 %v1846_v5 }
 0x650   : > { %5919 = vmatprep.subr.bf16.mxu0 %v6775_v30 }
 0x657   : > { %5920 = vmatpush3.bf16.xpose.msra.mxu0 %v1843_v20 }
 0x658   : > { %5971 = vmatprep.subr.bf16.mxu0 %v6775_v30 }
 0x65e   : > { %5922 = vmatmul.mubr.msk.bf16.vlgmr.msra.gmra.mxu0 %vm1222_vm2, %v1817_v38 }
 0x65f   : > { %5925 = vmatprep.mubr.msk.bf16.mxu0 %vm6776_vm1, %v6775_v30 }
 0x666   : > { %5926 = vmatmul.mubr.msk.bf16.gmra.mxu0 %vm1222_vm2, %v1818_v48 }
 0x667   : > { %5929 = vmatprep.mubr.msk.bf16.mxu0 %vm6776_vm1, %v6775_v30 }
 0x66e   : > { %5930 = vmatmul.mubr.msk.bf16.gmra.mxu0 %vm1222_vm2, %v1819_v45 }
 0x66f   : > { %5933 = vmatprep.mubr.msk.bf16.mxu0 %vm6776_vm1, %v6775_v30 }
 0x676   : > { %5934 = vmatmul.mubr.msk.bf16.gmra.mxu0 %vm1222_vm2, %v1820_v16 }
 0x677   : > { %5937 = vmatprep.mubr.msk.bf16.mxu0 %vm6776_vm1, %v6775_v30 }
 0x67e   : > { %5938 = vmatmul.mubr.msk.bf16.gmra.mxu0 %vm1222_vm2, %v1821_v28 }
 0x67f   : > { %5973 = vmatprep.mubr.msk.bf16.mxu0 %vm6776_vm1, %v6775_v30 }
 0x71e   : > { %v1891_v32 = vpop.f32.mrf.mxu0 }
 0x71f   : > { %v1930_v6 = vmul.f32 0.25, %v1891_v32 }
 0x720   : > { %v5923_v38 = vpop.f32.mrf.mxu0 }
 0x721   : > { %v1940_v14 = vsel %vm1336_vm3, %v1930_v6, -inf }
 0x722   : > { %1941 = vmax.xlane.f32.xlu0 %v1940_v14  ;;  %v1894_v34 = vpop.f32.mrf.mxu0 }
 0x723   : > { %v1931_v48 = vmul.f32 0.25, %v1894_v34 }
 0x724   : > { %v5924_v25 = vpop.f32.mrf.mxu0 }
 0x725   : > { %v1943_v43 = vsel %vm1336_vm3, %v1931_v48, -inf }
 0x726   : > { %1944 = vmax.xlane.f32.xlu1 %v1943_v43  ;;  %v1899_v45 = vpop.f32.mrf.mxu0 }
 0x727   : > { %v1932_v35 = vmul.f32 0.25, %v1899_v45 }
 0x728   : > { %v5927_v39 = vpop.f32.mrf.mxu0 }
 0x729   : > { %v1946_v16 = vsel %vm1336_vm3, %v1932_v35, -inf }
 0x72a   : > { %1947 = vmax.xlane.f32.xlu0 %v1946_v16  ;;  %v1902_v8 = vpop.f32.mrf.mxu0 }
 0x72b   : > { %v1933_v37 = vmul.f32 0.25, %v1902_v8 }
 0x72c   : > { %v5928_v28 = vpop.f32.mrf.mxu0 }
 0x72d   : > { %v1949_v59 = vsel %vm1336_vm3, %v1933_v37, -inf }
 0x72e   : > { %1950 = vmax.xlane.f32.xlu1 %v1949_v59  ;;  %v1907_v58 = vpop.f32.mrf.mxu0 }
 0x72f   : > { %v1934_v60 = vmul.f32 0.25, %v1907_v58 }
 0x730   : > { %v5931_v40 = vpop.f32.mrf.mxu0 }
 0x731   : > { %v1952_v11 = vsel %vm1336_vm3, %v1934_v60, -inf }
 0x732   : > { %1953 = vmax.xlane.f32.xlu0 %v1952_v11  ;;  %v1910_v21 = vpop.f32.mrf.mxu0 }
 0x733   : > { %v1935_v26 = vmul.f32 0.25, %v1910_v21 }
 0x734   : > { %v5932_v9 = vpop.f32.mrf.mxu0 }
 0x735   : > { %v1955_v15 = vsel %vm1336_vm3, %v1935_v26, -inf }
 0x736   : > { %1956 = vmax.xlane.f32.xlu1 %v1955_v15  ;;  %v1915_v47 = vpop.f32.mrf.mxu0 }
 0x737   : > { %v1936_v52 = vmul.f32 0.25, %v1915_v47 }
 0x738   : > { %v5935_v62 = vpop.f32.mrf.mxu0 }
 0x739   : > { %v1958_v49 = vsel %vm1336_vm3, %v1936_v52, -inf }
 0x73a   : > { %1959 = vmax.xlane.f32.xlu0 %v1958_v49  ;;  %v1918_v29 = vpop.f32.mrf.mxu0 }
 0x73b   : > { %v1937_v31 = vmul.f32 0.25, %v1918_v29 }
 0x73c   : > { %v5936_v46 = vpop.f32.mrf.mxu0 }
 0x73d   : > { %v1961_v23 = vsel %vm1336_vm3, %v1937_v31, -inf }
 0x73e   : > { %1962 = vmax.xlane.f32.xlu1 %v1961_v23  ;;  %v1923_v0 = vpop.f32.mrf.mxu0 }
 0x73f   : > { %v1938_v1 = vmul.f32 0.25, %v1923_v0 }
 0x740   : > { %v5939_v7 = vpop.f32.mrf.mxu0 }
 0x741   : > { %v1964_v4 = vsel %vm1336_vm3, %v1938_v1, -inf }
 0x742   : > { %1965 = vmax.xlane.f32.xlu0 %v1964_v4  ;;  %v1926_v5 = vpop.f32.mrf.mxu0 }
 0x743   : > { %v1939_v20 = vmul.f32 0.25, %v1926_v5 }
 0x744   : > { %v5940_v32 = vpop.f32.mrf.mxu0 }
 0x745   : > { %v1967_v38 = vsel %vm1336_vm3, %v1939_v20, -inf }
 0x746   : > { %1968 = vmax.xlane.f32.xlu1 %v1967_v38 }
 0x7ab   : > { %v1942_v14 = vpop.xlane.xlu0 %1941 }
 0x7ac   : > { %v1970_v34 = vsub.f32 %v1930_v6, %v1942_v14 }
 0x7ae   : > { %v1980_v25 = vmul.f32 1.442695, %v1970_v34 }
 0x7af   : > { %v1945_v43 = vpop.xlane.xlu1 %1944 }
 0x7b0   : > { %6456 = vpow2.f32 %v1980_v25  ;;  %v1971_v45 = vsub.f32 %v1931_v48, %v1945_v43 }
 0x7b2   : > { %v1982_v39 = vmul.f32 1.442695, %v1971_v45 }
 0x7b3   : > { %v1948_v16 = vpop.xlane.xlu0 %1947 }
 0x7b4   : > { %6458 = vpow2.f32 %v1982_v39  ;;  %v1972_v8 = vsub.f32 %v1932_v35, %v1948_v16 }
 0x7b6   : > { %v1984_v28 = vmul.f32 1.442695, %v1972_v8 }
 0x7b7   : > { %v1951_v59 = vpop.xlane.xlu1 %1950 }
 0x7b8   : > { %6460 = vpow2.f32 %v1984_v28  ;;  %v1973_v58 = vsub.f32 %v1933_v37, %v1951_v59 }
 0x7ba   : > { %v1986_v40 = vmul.f32 1.442695, %v1973_v58 }
 0x7bb   : > { %v1954_v11 = vpop.xlane.xlu0 %1953 }
 0x7bc   : > { %6462 = vpow2.f32 %v1986_v40  ;;  %v1974_v21 = vsub.f32 %v1934_v60, %v1954_v11  ;;  %v5305_v11 = vld [vmem:[%s9194_s7 + $0x10] sm:$0xff] }
 0x7bd   : > { %v7733_v9 = vpop.eup %6456 }
 0x7be   : > { %v1988_v15 = vmul.f32 1.442695, %v1974_v21  ;;  %v2000_v6 = vsel %vm1336_vm3, %v7733_v9, 0.0  ;;  %v5306_v21 = vld [vmem:[%s9194_s7 + $0x18] sm:$0xff] }
 0x7bf   : > { %v1957_v47 = vpop.xlane.xlu1 %1956  ;;  %2001 = vadd.xlane.f32.xlu0 %v2000_v6 }
 0x7c0   : > { %6464 = vpow2.f32 %v1988_v15  ;;  %v1975_v48 = vsub.f32 %v1935_v26, %v1957_v47  ;;  %v2156_v15 = vpack.c.bf16 %v5306_v21, %v5305_v11 }
 0x7c1   : > { %v7737_v62 = vpop.eup %6458 }
 0x7c2   : > { %v1990_v35 = vmul.f32 1.442695, %v1975_v48  ;;  %v2003_v37 = vsel %vm1336_vm3, %v7737_v62, 0.0  ;;  %5972 = vmatpush3.bf16.msra.mxu0 %v2156_v15 }
 0x7c3   : > { %v1960_v49 = vpop.xlane.xlu0 %1959  ;;  %2004 = vadd.xlane.f32.xlu1 %v2003_v37  ;;  %6015 = vmatprep.subr.bf16.mxu0 %v6775_v30 }
 0x7c4   : > { %6466 = vpow2.f32 %v1990_v35  ;;  %v1976_v60 = vsub.f32 %v1936_v52, %v1960_v49 }
 0x7c5   : > { %v7741_v29 = vpop.eup %6460 }
 0x7c6   : > { %v1992_v46 = vmul.f32 1.442695, %v1976_v60  ;;  %v2006_v23 = vsel %vm1336_vm3, %v7741_v29, 0.0  ;;  %v1545_v60 = vld [vmem:[%s9194_s7] sm:$0xff] }
 0x7c7   : > { %v1963_v0 = vpop.xlane.xlu1 %1962  ;;  %2007 = vadd.xlane.f32.xlu0 %v2006_v23 }
 0x7c8   : > { %6468 = vpow2.f32 %v1992_v46  ;;  %v1977_v26 = vsub.f32 %v1937_v31, %v1963_v0  ;;  %v1546_v46 = vld [vmem:[%s9194_s7 + $0x8] sm:$0xff] }
 0x7c9   : > { %v7745_v7 = vpop.eup %6462 }
 0x7ca   : > { %v1994_v4 = vmul.f32 1.442695, %v1977_v26  ;;  %v2009_v5 = vsel %vm1336_vm3, %v7745_v7, 0.0 }
 0x7cb   : > { %v1966_v32 = vpop.xlane.xlu0 %1965  ;;  %2010 = vadd.xlane.f32.xlu1 %v2009_v5  ;;  %v1552_v5 = vpack.c.bf16 %v1546_v46, %v1545_v60 }
 0x7cc   : > { %6470 = vpow2.f32 %v1994_v4  ;;  %v1978_v52 = vsub.f32 %v1938_v1, %v1966_v32 }
 0x7cd   : > { %v7749_v38 = vpop.eup %6464 }
 0x7ce   : > { %v1996_v14 = vmul.f32 1.442695, %v1978_v52  ;;  %v2012_v34 = vsel %vm1336_vm3, %v7749_v38, 0.0 }
 0x7cf   : > { %2013 = vadd.xlane.f32.xlu0 %v2012_v34  ;;  %v1969_v25 = vpop.xlane.xlu1 %1968 }
 0x7d0   : > { %6472 = vpow2.f32 %v1996_v14  ;;  %v1979_v31 = vsub.f32 %v1939_v20, %v1969_v25 }
 0x7d1   : > { %v6467_v43 = vpop.eup %6466 }
 0x7d2   : > { %v1998_v45 = vmul.f32 1.442695, %v1979_v31  ;;  %v2015_v39 = vsel %vm1336_vm3, %v6467_v43, 0.0 }
 0x7d3   : > { %2016 = vadd.xlane.f32.xlu1 %v2015_v39 }
 0x7d4   : > { %6474 = vpow2.f32 %v1998_v45 }
 0x7d5   : > { %v7754_v16 = vpop.eup %6468 }
 0x7d6   : > { %v2018_v1 = vsel %vm1336_vm3, %v7754_v16, 0.0 }
 0x7d7   : > { %2019 = vadd.xlane.f32.xlu0 %v2018_v1 }
 0x7d9   : > { %v7758_v8 = vpop.eup %6470 }
 0x7da   : > { %v2021_v28 = vsel %vm1336_vm3, %v7758_v8, 0.0 }
 0x7db   : > { %2022 = vadd.xlane.f32.xlu1 %v2021_v28 }
 0x7dd   : > { %v7762_v59 = vpop.eup %6472 }
 0x7de   : > { %v2024_v20 = vsel %vm1336_vm3, %v7762_v59, 0.0 }
 0x7df   : > { %2025 = vadd.xlane.f32.xlu0 %v2024_v20 }
 0x7e1   : > { %v7766_v58 = vpop.eup %6474 }
 0x7e2   : > { %v2027_v40 = vsel %vm1336_vm3, %v7766_v58, 0.0 }
 0x7e3   : > { %2028 = vadd.xlane.f32.xlu1 %v2027_v40 }
 0x848   : > { %v2002_v6 = vpop.xlane.xlu0 %2001 }
 0x849   : > { %6476 = vrcp.f32 %v2002_v6 }
 0x84c   : > { %v2005_v47 = vpop.xlane.xlu1 %2004 }
 0x84d   : > { %6478 = vrcp.f32 %v2005_v47 }
 0x850   : > { %v2008_v48 = vpop.xlane.xlu0 %2007 }
 0x851   : > { %6480 = vrcp.f32 %v2008_v48 }
 0x854   : > { %v2011_v35 = vpop.xlane.xlu1 %2010 }
 0x855   : > { %6482 = vrcp.f32 %v2011_v35 }
 0x856   : > { %v6477_v37 = vpop.eup %6476 }
 0x857   : > { %v2040_v0 = vmul.f32 %v6477_v37, %v7733_v9 }
 0x858   : > { %v2014_v49 = vpop.xlane.xlu0 %2013 }
 0x859   : > { %6484 = vrcp.f32 %v2014_v49 }
 0x85a   : > { %v6479_v23 = vpop.eup %6478 }
 0x85b   : > { %v2041_v26 = vmul.f32 %v6479_v23, %v7737_v62 }
 0x85c   : > { %v2017_v4 = vpop.xlane.xlu1 %2016 }
 0x85d   : > { %6486 = vrcp.f32 %v2017_v4  ;;  %v2050_v32 = vpack.c.bf16 %v2041_v26, %v2040_v0 }
 0x85e   : > { %v6481_v52 = vpop.eup %6480 }
 0x85f   : > { %5952 = vmatmul.mubr.msk.bf16.vlgmr.msra.gmra.mxu1 %vm1336_vm3, %v2050_v32  ;;  %v2042_v9 = vmul.f32 %v6481_v52, %v7741_v29 }
 0x860   : > { %v2020_v14 = vpop.xlane.xlu0 %2019  ;;  %5955 = vmatprep.mubr.msk.bf16.mxu1 %vm6776_vm1, %v6775_v30  ;;  %5994 = vmatpush3.bf16.msra.mxu1 %v1552_v5 }
 0x861   : > { %6039 = vmatprep.subr.bf16.mxu1 %v6775_v30  ;;  %6488 = vrcp.f32 %v2020_v14 }
 0x862   : > { %v6483_v34 = vpop.eup %6482 }
 0x863   : > { %v2043_v62 = vmul.f32 %v6483_v34, %v7745_v7 }
 0x864   : > { %v2023_v25 = vpop.xlane.xlu1 %2022 }
 0x865   : > { %6490 = vrcp.f32 %v2023_v25  ;;  %v2051_v31 = vpack.c.bf16 %v2043_v62, %v2042_v9 }
 0x866   : > { %v6485_v45 = vpop.eup %6484 }
 0x867   : > { %5956 = vmatmul.mubr.msk.bf16.gmra.mxu1 %vm1336_vm3, %v2051_v31  ;;  %v2044_v28 = vmul.f32 %v6485_v45, %v7749_v38 }
 0x868   : > { %v2026_v39 = vpop.xlane.xlu0 %2025  ;;  %5959 = vmatprep.mubr.msk.bf16.mxu1 %vm6776_vm1, %v6775_v30 }
 0x869   : > { %6492 = vrcp.f32 %v2026_v39 }
 0x86a   : > { %v6487_v1 = vpop.eup %6486 }
 0x86b   : > { %v2045_v20 = vmul.f32 %v6487_v1, %v6467_v43 }
 0x86c   : > { %v2029_v40 = vpop.xlane.xlu1 %2028 }
 0x86d   : > { %6494 = vrcp.f32 %v2029_v40  ;;  %v2052_v29 = vpack.c.bf16 %v2045_v20, %v2044_v28 }
 0x86e   : > { %v6489_v7 = vpop.eup %6488 }
 0x86f   : > { %5960 = vmatmul.mubr.msk.bf16.gmra.mxu1 %vm1336_vm3, %v2052_v29  ;;  %v2046_v21 = vmul.f32 %v6489_v7, %v7754_v16 }
 0x870   : > { %5963 = vmatprep.mubr.msk.bf16.mxu1 %vm6776_vm1, %v6775_v30 }
 0x872   : > { %v6491_v11 = vpop.eup %6490 }
 0x873   : > { %v2047_v15 = vmul.f32 %v6491_v11, %v7758_v8 }
 0x875   : > { %v2053_v6 = vpack.c.bf16 %v2047_v15, %v2046_v21  ;;  %v7858_v15 = vld [vmem:[%s9191_s4 + $0x6] ss:$0 sm:$0xff] }
 0x876   : > { %v6493_v47 = vpop.eup %6492 }
 0x877   : > { %5964 = vmatmul.mubr.msk.bf16.gmra.mxu1 %vm1336_vm3, %v2053_v6  ;;  %v2048_v43 = vmul.f32 %v6493_v47, %v7762_v59 }
 0x878   : > { %5967 = vmatprep.mubr.msk.bf16.mxu1 %vm6776_vm1, %v6775_v30 }
 0x87a   : > { %v6495_v38 = vpop.eup %6494 }
 0x87b   : > { %v2049_v48 = vmul.f32 %v6495_v38, %v7766_v58 }
 0x87d   : > { %v2054_v35 = vpack.c.bf16 %v2049_v48, %v2048_v43 }
 0x87f   : > { %5968 = vmatmul.mubr.msk.bf16.gmra.mxu1 %vm1336_vm3, %v2054_v35 }
 0x880   : > { %5995 = vmatprep.mubr.msk.bf16.mxu1 %vm6776_vm1, %v6775_v30 }
 0x887   : > { %5996 = vmatmul.mubr.msk.bf16.vlgmr.msra.gmra.mxu1 %vm1222_vm2, %v1547_v51 }
 0x888   : > { %5999 = vmatprep.mubr.msk.bf16.mxu1 %vm6776_vm1, %v6775_v30 }
 0x88f   : > { %6000 = vmatmul.mubr.msk.bf16.gmra.mxu1 %vm1222_vm2, %v1548_v56 }
 0x890   : > { %6003 = vmatprep.mubr.msk.bf16.mxu1 %vm6776_vm1, %v6775_v30 }
 0x897   : > { %6004 = vmatmul.mubr.msk.bf16.gmra.mxu1 %vm1222_vm2, %v1549_v44 }
 0x898   : > { %6007 = vmatprep.mubr.msk.bf16.mxu1 %vm6776_vm1, %v6775_v30 }
 0x89f   : > { %6008 = vmatmul.mubr.msk.bf16.gmra.mxu1 %vm1222_vm2, %v1550_v19 }
 0x8a0   : > { %6011 = vmatprep.mubr.msk.bf16.mxu1 %vm6776_vm1, %v6775_v30 }
 0x8a7   : > { %6012 = vmatmul.mubr.msk.bf16.gmra.mxu1 %vm1222_vm2, %v1551_v17 }
 0x8a8   : > { %6047 = vmatprep.mubr.msk.bf16.mxu1 %vm6776_vm1, %v6775_v30 }
 0x91f   : > { %v2109_v12 = vpop.f32.mrf.mxu1 }
 0x921   : > { %v5953_v57 = vpop.f32.mrf.mxu1 }
 0x923   : > { %v2112_v51 = vpop.f32.mrf.mxu1 }
 0x924   : > { %v2151_v36 = vpack.c.bf16 %v2112_v51, %v2109_v12 }
 0x925   : > { %v5954_v27 = vpop.f32.mrf.mxu1 }
 0x926   : > { %5974 = vmatmul.mubr.msk.bf16.vlgmr.msra.gmra.mxu0 %vm1222_vm2, %v2151_v36 }
 0x927   : > { %v2117_v56 = vpop.f32.mrf.mxu1  ;;  %5977 = vmatprep.mubr.msk.bf16.mxu0 %vm6776_vm1, %v6775_v30 }
 0x929   : > { %v5957_v53 = vpop.f32.mrf.mxu1 }
 0x92b   : > { %v2120_v13 = vpop.f32.mrf.mxu1 }
 0x92c   : > { %v2152_v44 = vpack.c.bf16 %v2120_v13, %v2117_v56 }
 0x92d   : > { %v5958_v22 = vpop.f32.mrf.mxu1 }
 0x92e   : > { %5978 = vmatmul.mubr.msk.bf16.gmra.mxu0 %vm1222_vm2, %v2152_v44 }
 0x92f   : > { %v2125_v2 = vpop.f32.mrf.mxu1  ;;  %5981 = vmatprep.mubr.msk.bf16.mxu0 %vm6776_vm1, %v6775_v30 }
 0x931   : > { %v5961_v19 = vpop.f32.mrf.mxu1 }
 0x933   : > { %v2128_v3 = vpop.f32.mrf.mxu1 }
 0x934   : > { %v2153_v24 = vpack.c.bf16 %v2128_v3, %v2125_v2 }
 0x935   : > { %v5962_v17 = vpop.f32.mrf.mxu1 }
 0x936   : > { %5982 = vmatmul.mubr.msk.bf16.gmra.mxu0 %vm1222_vm2, %v2153_v24 }
 0x937   : > { %v2133_v16 = vpop.f32.mrf.mxu1  ;;  %5985 = vmatprep.mubr.msk.bf16.mxu0 %vm6776_vm1, %v6775_v30 }
 0x939   : > { %v5965_v8 = vpop.f32.mrf.mxu1 }
 0x93b   : > { %v2136_v59 = vpop.f32.mrf.mxu1 }
 0x93c   : > { %v2154_v58 = vpack.c.bf16 %v2136_v59, %v2133_v16 }
 0x93d   : > { %v5966_v37 = vpop.f32.mrf.mxu1 }
 0x93e   : > { %5986 = vmatmul.mubr.msk.bf16.gmra.mxu0 %vm1222_vm2, %v2154_v58 }
 0x93f   : > { %v2141_v49 = vpop.f32.mrf.mxu1  ;;  %5989 = vmatprep.mubr.msk.bf16.mxu0 %vm6776_vm1, %v6775_v30 }
 0x941   : > { %v5969_v60 = vpop.f32.mrf.mxu1 }
 0x943   : > { %v2144_v46 = vpop.f32.mrf.mxu1 }
 0x944   : > { %v2155_v23 = vpack.c.bf16 %v2144_v46, %v2141_v49 }
 0x945   : > { %v5970_v0 = vpop.f32.mrf.mxu1 }
 0x946   : > { %5990 = vmatmul.mubr.msk.bf16.gmra.mxu0 %vm1222_vm2, %v2155_v23 }
 0x947   : > { %v2294_v26 = vpop.f32.mrf.mxu1  ;;  %6019 = vmatprep.mubr.msk.bf16.mxu0 %vm6776_vm1, %v6775_v30 }
 0x949   : > { %v5997_v4 = vpop.f32.mrf.mxu1 }
 0x94b   : > { %v2297_v5 = vpop.f32.mrf.mxu1 }
 0x94d   : > { %v5998_v32 = vpop.f32.mrf.mxu1 }
 0x94f   : > { %v2302_v52 = vpop.f32.mrf.mxu1 }
 0x951   : > { %v6001_v14 = vpop.f32.mrf.mxu1 }
 0x953   : > { %v2305_v34 = vpop.f32.mrf.mxu1 }
 0x955   : > { %v6002_v9 = vpop.f32.mrf.mxu1 }
 0x957   : > { %v2310_v62 = vpop.f32.mrf.mxu1 }
 0x959   : > { %v6005_v25 = vpop.f32.mrf.mxu1 }
 0x95b   : > { %v2313_v31 = vpop.f32.mrf.mxu1 }
 0x95d   : > { %v6006_v45 = vpop.f32.mrf.mxu1 }
 0x95f   : > { %v2318_v39 = vpop.f32.mrf.mxu1 }
 0x961   : > { %v6009_v1 = vpop.f32.mrf.mxu1 }
 0x963   : > { %v2321_v28 = vpop.f32.mrf.mxu1 }
 0x965   : > { %v6010_v20 = vpop.f32.mrf.mxu1 }
 0x967   : > { %v2326_v40 = vpop.f32.mrf.mxu1 }
 0x969   : > { %v6013_v29 = vpop.f32.mrf.mxu1 }
 0x96b   : > { %v7853_v7 = vpop.f32.mrf.mxu1 }
 0x96d   : > { %v6014_v11 = vpop.f32.mrf.mxu1 }
 0x9e6   : > { %v2206_v21 = vpop.f32.mrf.mxu0 }
 0x9e7   : > { %v2295_v6 = vadd.f32 %v2294_v26, %v2206_v21 }
 0x9e8   : > { %v5975_v47 = vpop.f32.mrf.mxu0 }
 0x9e9   : > { %v2341_v38 = vadd.f32 %v7858_v15, %v2295_v6 }
 0x9ea   : > { %v2209_v43 = vpop.f32.mrf.mxu0 }
 0x9eb   : > { %v7862_v48 = vadd.f32 %v2341_v38, %v6964_v54  ;;  %v2298_v35 = vadd.f32 %v2297_v5, %v2209_v43 }
 0x9ec   : > { %v5976_v12 = vpop.f32.mrf.mxu0 }
 0x9ed   : > { %v2342_v57 = vadd.f32 %v7858_v15, %v2298_v35  ;;  %v2361_v51 = vsel %vm732_vm0, %v7862_v48, 0.0 }
 0x9ee   : > { %2362 = vadd.xlane.f32.xlu0 %v2361_v51  ;;  %v2214_v36 = vpop.f32.mrf.mxu0 }
 0x9ef   : > { %v7868_v27 = vadd.f32 %v2342_v57, %v6968_v61  ;;  %v2303_v56 = vadd.f32 %v2302_v52, %v2214_v36 }
 0x9f0   : > { %v5979_v53 = vpop.f32.mrf.mxu0 }
 0x9f1   : > { %v2343_v13 = vadd.f32 %v7858_v15, %v2303_v56  ;;  %v2364_v54 = vsel %vm732_vm0, %v7868_v27, 0.0 }
 0x9f2   : > { %2365 = vadd.xlane.f32.xlu1 %v2364_v54  ;;  %v2217_v44 = vpop.f32.mrf.mxu0 }
 0x9f3   : > { %v7874_v22 = vadd.f32 %v2343_v13, %v6978_v10  ;;  %v2306_v2 = vadd.f32 %v2305_v34, %v2217_v44 }
 0x9f4   : > { %v5980_v19 = vpop.f32.mrf.mxu0 }
 0x9f5   : > { %v2344_v3 = vadd.f32 %v7858_v15, %v2306_v2  ;;  %v2367_v61 = vsel %vm732_vm0, %v7874_v22, 0.0 }
 0x9f6   : > { %2368 = vadd.xlane.f32.xlu0 %v2367_v61  ;;  %v2222_v24 = vpop.f32.mrf.mxu0 }
 0x9f7   : > { %v7880_v17 = vadd.f32 %v2344_v3, %v6984_v18  ;;  %v2311_v16 = vadd.f32 %v2310_v62, %v2222_v24 }
 0x9f8   : > { %v5983_v8 = vpop.f32.mrf.mxu0 }
 0x9f9   : > { %v2345_v59 = vadd.f32 %v7858_v15, %v2311_v16  ;;  %v2370_v10 = vsel %vm732_vm0, %v7880_v17, 0.0 }
 0x9fa   : > { %2371 = vadd.xlane.f32.xlu1 %v2370_v10  ;;  %v2225_v58 = vpop.f32.mrf.mxu0 }
 0x9fb   : > { %v7886_v37 = vadd.f32 %v2345_v59, %v6993_v33  ;;  %v2314_v49 = vadd.f32 %v2313_v31, %v2225_v58 }
 0x9fc   : > { %v5984_v60 = vpop.f32.mrf.mxu0 }
 0x9fd   : > { %v2346_v46 = vadd.f32 %v7858_v15, %v2314_v49  ;;  %v2373_v18 = vsel %vm732_vm0, %v7886_v37, 0.0 }
 0x9fe   : > { %2374 = vadd.xlane.f32.xlu0 %v2373_v18  ;;  %v2230_v23 = vpop.f32.mrf.mxu0 }
 0x9ff   : > { %v7892_v0 = vadd.f32 %v2346_v46, %v7000_v41  ;;  %v2319_v26 = vadd.f32 %v2318_v39, %v2230_v23 }
 0xa00   : > { %v5987_v4 = vpop.f32.mrf.mxu0 }
 0xa01   : > { %v2347_v5 = vadd.f32 %v7858_v15, %v2319_v26  ;;  %v2376_v33 = vsel %vm732_vm0, %v7892_v0, 0.0 }
 0xa02   : > { %2377 = vadd.xlane.f32.xlu1 %v2376_v33  ;;  %v2233_v32 = vpop.f32.mrf.mxu0 }
 0xa03   : > { %v7898_v52 = vadd.f32 %v2347_v5, %v7009_v55  ;;  %v2322_v14 = vadd.f32 %v2321_v28, %v2233_v32 }
 0xa04   : > { %v5988_v34 = vpop.f32.mrf.mxu0 }
 0xa05   : > { %v2348_v9 = vadd.f32 %v7858_v15, %v2322_v14  ;;  %v2379_v41 = vsel %vm732_vm0, %v7898_v52, 0.0 }
 0xa06   : > { %2380 = vadd.xlane.f32.xlu0 %v2379_v41  ;;  %v2238_v62 = vpop.f32.mrf.mxu0 }
 0xa07   : > { %v7904_v25 = vadd.f32 %v2348_v9, %v7016_v63  ;;  %v2327_v31 = vadd.f32 %v2326_v40, %v2238_v62 }
 0xa08   : > { %v5991_v45 = vpop.f32.mrf.mxu0 }
 0xa09   : > { %v2349_v39 = vadd.f32 %v7858_v15, %v2327_v31  ;;  %v2382_v55 = vsel %vm732_vm0, %v7904_v25, 0.0 }
 0xa0a   : > { %2383 = vadd.xlane.f32.xlu1 %v2382_v55  ;;  %v2241_v1 = vpop.f32.mrf.mxu0 }
 0xa0b   : > { %v7910_v28 = vadd.f32 %v2349_v39, %v6952_v42  ;;  %v2330_v20 = vadd.f32 %v7853_v7, %v2241_v1  ;;  %v2529_v42 = vld [vmem:[%s9195_s8 + $0x10] sm:$0xff]  ;;  %v2530_v7 = vld [vmem:[%s9195_s8 + $0x18] sm:$0xff] }
 0xa0c   : > { %v5992_v29 = vpop.f32.mrf.mxu0 }
 0xa0d   : > { %v2350_v11 = vadd.f32 %v7858_v15, %v2330_v20  ;;  %v2385_v63 = vsel %vm732_vm0, %v7910_v28, 0.0  ;;  %v2537_v15 = vpack.c.bf16 %v2530_v7, %v2529_v42  ;;  %v2528_v42 = vld [vmem:[%s9195_s8 + $0x8] sm:$0xff] }
 0xa0e   : > { %2386 = vadd.xlane.f32.xlu0 %v2385_v63 }
 0xa0f   : > { %v7917_v40 = vadd.f32 %v2350_v11, %v6960_v50  ;;  %6016 = vmatpush3.bf16.msra.mxu0 %v2537_v15 }
 0xa10   : > { %6017 = vmatprep.subr.bf16.mxu0 %v6775_v30 }
 0xa11   : > { %v2388_v21 = vsel %vm732_vm0, %v7917_v40, 0.0 }
 0xa12   : > { %2389 = vadd.xlane.f32.xlu1 %v2388_v21  ;;  %v2527_v21 = vld [vmem:[%s9195_s8] sm:$0xff] }
 0xa13   : > { %v2536_v15 = vpack.c.bf16 %v2528_v42, %v2527_v21 }
 0xa15   : > { %6018 = vmatpush3.bf16.msra.mxu0 %v2536_v15 }
 0xa77   : > { %v2363_v6 = vpop.xlane.xlu0 %2362 }
 0xa78   : > { %v2391_v47 = vmul.f32 0.03125, %v2363_v6 }
 0xa7a   : > { %v7929_v50 = vsub.f32 %v7862_v48, %v2391_v47 }
 0xa7b   : > { %v2366_v38 = vpop.xlane.xlu1 %2365 }
 0xa7c   : > { %v2392_v43 = vmul.f32 0.03125, %v2366_v38  ;;  %v2411_v35 = vmul.f32 %v7929_v50, %v7929_v50 }
 0xa7e   : > { %v7934_v12 = vsub.f32 %v7868_v27, %v2392_v43  ;;  %v2421_v57 = vsel %vm732_vm0, %v2411_v35, 0.0 }
 0xa7f   : > { %v2369_v51 = vpop.xlane.xlu0 %2368  ;;  %2422 = vadd.xlane.f32.xlu0 %v2421_v57 }
 0xa80   : > { %v2393_v36 = vmul.f32 0.03125, %v2369_v51  ;;  %v2412_v56 = vmul.f32 %v7934_v12, %v7934_v12 }
 0xa82   : > { %v7940_v53 = vsub.f32 %v7874_v22, %v2393_v36  ;;  %v2424_v13 = vsel %vm732_vm0, %v2412_v56, 0.0 }
 0xa83   : > { %v2372_v54 = vpop.xlane.xlu1 %2371  ;;  %2425 = vadd.xlane.f32.xlu1 %v2424_v13 }
 0xa84   : > { %v2394_v44 = vmul.f32 0.03125, %v2372_v54  ;;  %v2413_v2 = vmul.f32 %v7940_v53, %v7940_v53 }
 0xa86   : > { %v7946_v19 = vsub.f32 %v7880_v17, %v2394_v44  ;;  %v2427_v3 = vsel %vm732_vm0, %v2413_v2, 0.0 }
 0xa87   : > { %v2375_v61 = vpop.xlane.xlu0 %2374  ;;  %2428 = vadd.xlane.f32.xlu0 %v2427_v3 }
 0xa88   : > { %v2395_v24 = vmul.f32 0.03125, %v2375_v61  ;;  %v2414_v16 = vmul.f32 %v7946_v19, %v7946_v19 }
 0xa8a   : > { %v7952_v8 = vsub.f32 %v7886_v37, %v2395_v24  ;;  %v2430_v59 = vsel %vm732_vm0, %v2414_v16, 0.0 }
 0xa8b   : > { %v2378_v10 = vpop.xlane.xlu1 %2377  ;;  %2431 = vadd.xlane.f32.xlu1 %v2430_v59  ;;  %v7998_v59 = vld [vmem:[%s9191_s4 + $0x4] ss:$0 sm:$0xff] }
 0xa8c   : > { %v2396_v58 = vmul.f32 0.03125, %v2378_v10  ;;  %v2415_v49 = vmul.f32 %v7952_v8, %v7952_v8 }
 0xa8e   : > { %v7958_v60 = vsub.f32 %v7892_v0, %v2396_v58  ;;  %v2433_v46 = vsel %vm732_vm0, %v2415_v49, 0.0 }
 0xa8f   : > { %v2381_v18 = vpop.xlane.xlu0 %2380  ;;  %2434 = vadd.xlane.f32.xlu0 %v2433_v46 }
 0xa90   : > { %v2397_v23 = vmul.f32 0.03125, %v2381_v18  ;;  %v2416_v26 = vmul.f32 %v7958_v60, %v7958_v60 }
 0xa92   : > { %v7964_v4 = vsub.f32 %v7898_v52, %v2397_v23  ;;  %v2436_v5 = vsel %vm732_vm0, %v2416_v26, 0.0  ;;  %v8005_v26 = vld [vmem:[%s9191_s4 + $0x5] ss:$0 sm:$0xff] }
 0xa93   : > { %v2384_v33 = vpop.xlane.xlu1 %2383  ;;  %2437 = vadd.xlane.f32.xlu1 %v2436_v5 }
 0xa94   : > { %v2398_v32 = vmul.f32 0.03125, %v2384_v33  ;;  %v2417_v14 = vmul.f32 %v7964_v4, %v7964_v4 }
 0xa96   : > { %v7970_v34 = vsub.f32 %v7904_v25, %v2398_v32  ;;  %v2439_v9 = vsel %vm732_vm0, %v2417_v14, 0.0 }
 0xa97   : > { %2440 = vadd.xlane.f32.xlu0 %v2439_v9  ;;  %v2387_v41 = vpop.xlane.xlu0 %2386 }
 0xa98   : > { %v2399_v62 = vmul.f32 0.03125, %v2387_v41  ;;  %v2418_v31 = vmul.f32 %v7970_v34, %v7970_v34 }
 0xa9a   : > { %v7976_v45 = vsub.f32 %v7910_v28, %v2399_v62  ;;  %v2442_v39 = vsel %vm732_vm0, %v2418_v31, 0.0 }
 0xa9b   : > { %2443 = vadd.xlane.f32.xlu1 %v2442_v39  ;;  %v2390_v55 = vpop.xlane.xlu1 %2389 }
 0xa9c   : > { %v2400_v1 = vmul.f32 0.03125, %v2390_v55  ;;  %v2419_v20 = vmul.f32 %v7976_v45, %v7976_v45 }
 0xa9e   : > { %v7982_v29 = vsub.f32 %v7917_v40, %v2400_v1  ;;  %v2445_v11 = vsel %vm732_vm0, %v2419_v20, 0.0 }
 0xa9f   : > { %2446 = vadd.xlane.f32.xlu0 %v2445_v11 }
 0xaa0   : > { %v2420_v63 = vmul.f32 %v7982_v29, %v7982_v29 }
 0xaa2   : > { %v2448_v7 = vsel %vm732_vm0, %v2420_v63, 0.0 }
 0xaa3   : > { %2449 = vadd.xlane.f32.xlu1 %v2448_v7 }
 0xb08   : > { %v2423_v6 = vpop.xlane.xlu0 %2422 }
 0xb09   : > { %v2451_v47 = vmul.f32 0.03125, %v2423_v6 }
 0xb0b   : > { %v2461_v38 = vadd.f32 1e-05, %v2451_v47 }
 0xb0c   : > { %v2426_v43 = vpop.xlane.xlu1 %2425 }
 0xb0d   : > { %6496 = vrsqrt.f32 %v2461_v38  ;;  %v2452_v35 = vmul.f32 0.03125, %v2426_v43 }
 0xb0f   : > { %v2462_v57 = vadd.f32 1e-05, %v2452_v35 }
 0xb10   : > { %v2429_v51 = vpop.xlane.xlu0 %2428 }
 0xb11   : > { %6498 = vrsqrt.f32 %v2462_v57  ;;  %v2453_v36 = vmul.f32 0.03125, %v2429_v51 }
 0xb13   : > { %v2463_v56 = vadd.f32 1e-05, %v2453_v36 }
 0xb14   : > { %v2432_v13 = vpop.xlane.xlu1 %2431 }
 0xb15   : > { %6500 = vrsqrt.f32 %v2463_v56  ;;  %v2454_v54 = vmul.f32 0.03125, %v2432_v13 }
 0xb17   : > { %v2464_v44 = vadd.f32 1e-05, %v2454_v54 }
 0xb18   : > { %v2435_v2 = vpop.xlane.xlu0 %2434 }
 0xb19   : > { %6502 = vrsqrt.f32 %v2464_v44  ;;  %v2455_v3 = vmul.f32 0.03125, %v2435_v2 }
 0xb1a   : > { %v6497_v61 = vpop.eup %6496 }
 0xb1b   : > { %v2481_v24 = vmul.f32 %v6497_v61, %v7929_v50  ;;  %v2465_v16 = vadd.f32 1e-05, %v2455_v3 }
 0xb1c   : > { %v2438_v10 = vpop.xlane.xlu1 %2437 }
 0xb1d   : > { %6504 = vrsqrt.f32 %v2465_v16  ;;  %v2456_v58 = vmul.f32 0.03125, %v2438_v10  ;;  %v2499_v46 = vmul.f32 %v7998_v59, %v2481_v24 }
 0xb1e   : > { %v6499_v49 = vpop.eup %6498 }
 0xb1f   : > { %v2482_v18 = vmul.f32 %v6499_v49, %v7934_v12  ;;  %v2466_v23 = vadd.f32 1e-05, %v2456_v58  ;;  %v2517_v14 = vadd.f32 %v8005_v26, %v2499_v46 }
 0xb20   : > { %v2441_v50 = vpop.xlane.xlu0 %2440 }
 0xb21   : > { %v2500_v5 = vmul.f32 %v7998_v59, %v2482_v18  ;;  %6506 = vrsqrt.f32 %v2466_v23  ;;  %v2457_v33 = vmul.f32 0.03125, %v2441_v50 }
 0xb22   : > { %v6501_v32 = vpop.eup %6500 }
 0xb23   : > { %v2518_v9 = vadd.f32 %v8005_v26, %v2500_v5  ;;  %v2483_v41 = vmul.f32 %v6501_v32, %v7940_v53  ;;  %v2467_v62 = vadd.f32 1e-05, %v2457_v33  ;;  %v2730_v33 = vld [vmem:[%s9197_s10 + $0x38] sm:$0xff] }
 0xb24   : > { %v2444_v12 = vpop.xlane.xlu1 %2443 }
 0xb25   : > { %v2531_v31 = vpack.c.bf16 %v2518_v9, %v2517_v14  ;;  %6508 = vrsqrt.f32 %v2467_v62  ;;  %v2458_v39 = vmul.f32 0.03125, %v2444_v12  ;;  %v2501_v11 = vmul.f32 %v7998_v59, %v2483_v41  ;;  %v2725_v9 = vld [vmem:[%s9197_s10 + $0x10] sm:$0xff]  ;;  %v2726_v41 = vld [vmem:[%s9197_s10 + $0x18] sm:$0xff]  ;;  %v2723_v12 = vld [vmem:[%s9197_s10] sm:$0xff] }
 0xb26   : > { %v6503_v55 = vpop.eup %6502  ;;  %v2737_v62 = vpack.c.bf16 %v2726_v41, %v2725_v9 }
 0xb27   : > { %v2484_v1 = vmul.f32 %v6503_v55, %v7946_v19  ;;  %v2468_v20 = vadd.f32 1e-05, %v2458_v39  ;;  %6020 = vmatmul.mubr.msk.bf16.vlgmr.msra.gmra.mxu0 %vm732_vm0, %v2531_v31  ;;  %v2519_v6 = vadd.f32 %v8005_v26, %v2501_v11  ;;  %v2724_v31 = vld [vmem:[%s9197_s10 + $0x8] sm:$0xff]  ;;  %v8078_v55 = vld [vmem:[%s9196_s9] ss:$0 sm:$0xff] }
 0xb28   : > { %v2447_v63 = vpop.xlane.xlu0 %2446  ;;  %6023 = vmatprep.mubr.msk.bf16.mxu0 %vm6776_vm1, %v6775_v30  ;;  %v2736_v39 = vpack.c.bf16 %v2724_v31, %v2723_v12 }
 0xb29   : > { %6510 = vrsqrt.f32 %v2468_v20  ;;  %v2459_v21 = vmul.f32 0.03125, %v2447_v63  ;;  %v2502_v53 = vmul.f32 %v7998_v59, %v2484_v1 }
 0xb2a   : > { %v6505_v42 = vpop.eup %6504 }
 0xb2b   : > { %v2485_v7 = vmul.f32 %v6505_v42, %v7952_v8  ;;  %v2469_v15 = vadd.f32 1e-05, %v2459_v21  ;;  %v2520_v19 = vadd.f32 %v8005_v26, %v2502_v53 }
 0xb2c   : > { %v2450_v47 = vpop.xlane.xlu1 %2449 }
 0xb2d   : > { %6512 = vrsqrt.f32 %v2469_v15  ;;  %v2460_v38 = vmul.f32 0.03125, %v2450_v47  ;;  %v2532_v43 = vpack.c.bf16 %v2520_v19, %v2519_v6  ;;  %v2503_v36 = vmul.f32 %v7998_v59, %v2485_v7 }
 0xb2e   : > { %v6507_v35 = vpop.eup %6506 }
 0xb2f   : > { %v2486_v57 = vmul.f32 %v6507_v35, %v7958_v60  ;;  %v2470_v51 = vadd.f32 1e-05, %v2460_v38  ;;  %6024 = vmatmul.mubr.msk.bf16.gmra.mxu0 %vm732_vm0, %v2532_v43  ;;  %v2521_v54 = vadd.f32 %v8005_v26, %v2503_v36 }
 0xb30   : > { %6027 = vmatprep.mubr.msk.bf16.mxu0 %vm6776_vm1, %v6775_v30 }
 0xb31   : > { %6514 = vrsqrt.f32 %v2470_v51  ;;  %v2504_v8 = vmul.f32 %v7998_v59, %v2486_v57 }
 0xb32   : > { %v6509_v56 = vpop.eup %6508 }
 0xb33   : > { %v2487_v13 = vmul.f32 %v6509_v56, %v7964_v4  ;;  %v2522_v44 = vadd.f32 %v8005_v26, %v2504_v8 }
 0xb35   : > { %v2533_v2 = vpack.c.bf16 %v2522_v44, %v2521_v54  ;;  %v2505_v61 = vmul.f32 %v7998_v59, %v2487_v13 }
 0xb36   : > { %v6511_v60 = vpop.eup %6510 }
 0xb37   : > { %v2488_v3 = vmul.f32 %v6511_v60, %v7970_v34  ;;  %6028 = vmatmul.mubr.msk.bf16.gmra.mxu0 %vm732_vm0, %v2533_v2  ;;  %v2523_v10 = vadd.f32 %v8005_v26, %v2505_v61 }
 0xb38   : > { %6031 = vmatprep.mubr.msk.bf16.mxu0 %vm6776_vm1, %v6775_v30 }
 0xb39   : > { %v2506_v24 = vmul.f32 %v7998_v59, %v2488_v3 }
 0xb3a   : > { %v6513_v16 = vpop.eup %6512 }
 0xb3b   : > { %v2489_v4 = vmul.f32 %v6513_v16, %v7976_v45  ;;  %v2524_v58 = vadd.f32 %v8005_v26, %v2506_v24 }
 0xb3d   : > { %v2534_v49 = vpack.c.bf16 %v2524_v58, %v2523_v10  ;;  %v2507_v18 = vmul.f32 %v7998_v59, %v2489_v4 }
 0xb3e   : > { %v6515_v46 = vpop.eup %6514 }
 0xb3f   : > { %v2490_v34 = vmul.f32 %v6515_v46, %v7982_v29  ;;  %6032 = vmatmul.mubr.msk.bf16.gmra.mxu0 %vm732_vm0, %v2534_v49  ;;  %v2525_v50 = vadd.f32 %v8005_v26, %v2507_v18  ;;  %v2729_v29 = vld [vmem:[%s9197_s10 + $0x30] sm:$0xff] }
 0xb40   : > { %6035 = vmatprep.mubr.msk.bf16.mxu0 %vm6776_vm1, %v6775_v30  ;;  %v2739_v32 = vpack.c.bf16 %v2730_v33, %v2729_v29 }
 0xb41   : > { %v2508_v23 = vmul.f32 %v7998_v59, %v2490_v34  ;;  %v2727_v59 = vld [vmem:[%s9197_s10 + $0x20] sm:$0xff] }
 0xb42   : > { %6040 = vmatpush3.bf16.msra.mxu1 %v2739_v32 }
 0xb43   : > { %v2526_v45 = vadd.f32 %v8005_v26, %v2508_v23  ;;  %6041 = vmatprep.subr.bf16.mxu1 %v6775_v30  ;;  %v2728_v26 = vld [vmem:[%s9197_s10 + $0x28] sm:$0xff] }
 0xb44   : > { %v2738_v14 = vpack.c.bf16 %v2728_v26, %v2727_v59 }
 0xb45   : > { %v2535_v5 = vpack.c.bf16 %v2526_v45, %v2525_v50 }
 0xb46   : > { %6042 = vmatpush3.bf16.msra.mxu1 %v2738_v14 }
 0xb47   : > { %6036 = vmatmul.mubr.msk.bf16.gmra.mxu0 %vm732_vm0, %v2535_v5  ;;  %6043 = vmatprep.subr.bf16.mxu1 %v6775_v30 }
 0xb4a   : > { %6044 = vmatpush3.bf16.msra.mxu1 %v2737_v62 }
 0xb4b   : > { %6045 = vmatprep.subr.bf16.mxu1 %v6775_v30 }
 0xb4e   : > { %6046 = vmatpush3.bf16.msra.mxu1 %v2736_v39 }
 0xb4f   : > { %6079 = vmatprep.subr.bf16.mxu1 %v6775_v30 }
 0xbe7   : > { %v2594_v1 = vpop.f32.mrf.mxu0 }
 0xbe8   : > { %v8081_v20 = vadd.f32 %v8078_v55, %v2594_v1 }
 0xbe9   : > { %v6021_v11 = vpop.f32.mrf.mxu0 }
 0xbea   : > { %v2633_v63 = vmul.f32 %v8081_v20, %v8081_v20 }
 0xbeb   : > { %v2597_v21 = vpop.f32.mrf.mxu0 }
 0xbec   : > { %v2643_v53 = vmul.f32 %v2633_v63, %v8081_v20  ;;  %v8087_v42 = vadd.f32 %v8078_v55, %v2597_v21 }
 0xbed   : > { %v6022_v7 = vpop.f32.mrf.mxu0 }
 0xbee   : > { %v2653_v15 = vmul.f32 0.044715, %v2643_v53  ;;  %v2634_v6 = vmul.f32 %v8087_v42, %v8087_v42 }
 0xbef   : > { %v2602_v19 = vpop.f32.mrf.mxu0 }
 0xbf0   : > { %v2663_v47 = vadd.f32 %v2653_v15, %v8081_v20  ;;  %v2644_v38 = vmul.f32 %v2634_v6, %v8087_v42  ;;  %v8094_v43 = vadd.f32 %v8078_v55, %v2602_v19 }
 0xbf1   : > { %v6025_v35 = vpop.f32.mrf.mxu0 }
 0xbf2   : > { %v2673_v57 = vmul.f32 0.7978846, %v2663_v47  ;;  %v2654_v51 = vmul.f32 0.044715, %v2644_v38  ;;  %v2635_v36 = vmul.f32 %v8094_v43, %v8094_v43 }
 0xbf3   : > { %v2605_v8 = vpop.f32.mrf.mxu0 }
 0xbf4   : > { %6516 = vtanh.f32 %v2673_v57  ;;  %v2664_v56 = vadd.f32 %v2654_v51, %v8087_v42  ;;  %v2645_v13 = vmul.f32 %v2635_v36, %v8094_v43  ;;  %v8101_v54 = vadd.f32 %v8078_v55, %v2605_v8 }
 0xbf5   : > { %v6026_v44 = vpop.f32.mrf.mxu0 }
 0xbf6   : > { %v2674_v2 = vmul.f32 0.7978846, %v2664_v56  ;;  %v2655_v60 = vmul.f32 0.044715, %v2645_v13  ;;  %v2636_v3 = vmul.f32 %v8101_v54, %v8101_v54 }
 0xbf7   : > { %v2610_v61 = vpop.f32.mrf.mxu0 }
 0xbf8   : > { %6518 = vtanh.f32 %v2674_v2  ;;  %v2665_v24 = vadd.f32 %v2655_v60, %v8094_v43  ;;  %v2646_v16 = vmul.f32 %v2636_v3, %v8101_v54  ;;  %v8108_v4 = vadd.f32 %v8078_v55, %v2610_v61 }
 0xbf9   : > { %v6029_v10 = vpop.f32.mrf.mxu0 }
 0xbfa   : > { %v2675_v58 = vmul.f32 0.7978846, %v2665_v24  ;;  %v2656_v49 = vmul.f32 0.044715, %v2646_v16  ;;  %v2637_v46 = vmul.f32 %v8108_v4, %v8108_v4 }
 0xbfb   : > { %v2613_v34 = vpop.f32.mrf.mxu0 }
 0xbfc   : > { %6520 = vtanh.f32 %v2675_v58  ;;  %v2666_v18 = vadd.f32 %v2656_v49, %v8101_v54  ;;  %v2647_v23 = vmul.f32 %v2637_v46, %v8108_v4  ;;  %v8115_v50 = vadd.f32 %v8078_v55, %v2613_v34 }
 0xbfd   : > { %v6030_v45 = vpop.f32.mrf.mxu0 }
 0xbfe   : > { %v2676_v5 = vmul.f32 0.7978846, %v2666_v18  ;;  %v2657_v29 = vmul.f32 0.044715, %v2647_v23  ;;  %v2638_v33 = vmul.f32 %v8115_v50, %v8115_v50 }
 0xbff   : > { %v2618_v32 = vpop.f32.mrf.mxu0 }
 0xc00   : > { %6522 = vtanh.f32 %v2676_v5  ;;  %v2667_v59 = vadd.f32 %v2657_v29, %v8108_v4  ;;  %v2648_v26 = vmul.f32 %v2638_v33, %v8115_v50  ;;  %v8122_v14 = vadd.f32 %v8078_v55, %v2618_v32 }
 0xc01   : > { %v6517_v9 = vpop.eup %6516  ;;  %v6033_v41 = vpop.f32.mrf.mxu0 }
 0xc02   : > { %v2693_v62 = vadd.f32 1.0, %v6517_v9  ;;  %v2677_v12 = vmul.f32 0.7978846, %v2667_v59  ;;  %v2658_v31 = vmul.f32 0.044715, %v2648_v26  ;;  %v2639_v39 = vmul.f32 %v8122_v14, %v8122_v14 }
 0xc03   : > { %v2621_v1 = vpop.f32.mrf.mxu0 }
 0xc04   : > { %6524 = vtanh.f32 %v2677_v12  ;;  %v2668_v11 = vadd.f32 %v2658_v31, %v8115_v50  ;;  %v2649_v63 = vmul.f32 %v2639_v39, %v8122_v14  ;;  %v2703_v53 = vmul.f32 0.5, %v2693_v62 }
 0xc05   : > { %v6519_v21 = vpop.eup %6518  ;;  %v8129_v7 = vadd.f32 %v8078_v55, %v2621_v1  ;;  %v6034_v15 = vpop.f32.mrf.mxu0 }
 0xc06   : > { %v2694_v6 = vadd.f32 1.0, %v6519_v21  ;;  %v2678_v19 = vmul.f32 0.7978846, %v2668_v11  ;;  %v2659_v47 = vmul.f32 0.044715, %v2649_v63  ;;  %v2713_v56 = vmul.f32 %v2703_v53, %v8081_v20 }
 0xc07   : > { %v2640_v38 = vmul.f32 %v8129_v7, %v8129_v7  ;;  %v2626_v35 = vpop.f32.mrf.mxu0 }
 0xc08   : > { %v2704_v57 = vmul.f32 0.5, %v2694_v6  ;;  %6526 = vtanh.f32 %v2678_v19  ;;  %v2669_v51 = vadd.f32 %v2659_v47, %v8122_v14  ;;  %v8135_v36 = vadd.f32 %v8078_v55, %v2626_v35 }
 0xc09   : > { %v6521_v8 = vpop.eup %6520  ;;  %v2650_v13 = vmul.f32 %v2640_v38, %v8129_v7  ;;  %v6037_v44 = vpop.f32.mrf.mxu0 }
 0xc0a   : > { %v2714_v2 = vmul.f32 %v2704_v57, %v8087_v42  ;;  %v2695_v60 = vadd.f32 1.0, %v6521_v8  ;;  %v2679_v3 = vmul.f32 0.7978846, %v2669_v51  ;;  %v2641_v61 = vmul.f32 %v8135_v36, %v8135_v36 }
 0xc0b   : > { %v2660_v24 = vmul.f32 0.044715, %v2650_v13  ;;  %v2629_v16 = vpop.f32.mrf.mxu0 }
 0xc0c   : > { %v2731_v10 = vpack.c.bf16 %v2714_v2, %v2713_v56  ;;  %6528 = vtanh.f32 %v2679_v3  ;;  %v2651_v58 = vmul.f32 %v2641_v61, %v8135_v36  ;;  %v2630_v46 = vadd.f32 %v8078_v55, %v2629_v16 }
 0xc0d   : > { %v6523_v49 = vpop.eup %6522  ;;  %v2670_v20 = vadd.f32 %v2660_v24, %v8129_v7  ;;  %v6038_v34 = vpop.f32.mrf.mxu0  ;;  %v2705_v18 = vmul.f32 0.5, %v2695_v60 }
 0xc0e   : > { %v2696_v42 = vadd.f32 1.0, %v6523_v49  ;;  %v2661_v23 = vmul.f32 0.044715, %v2651_v58  ;;  %6048 = vmatmul.mubr.msk.bf16.vlgmr.msra.gmra.mxu1 %vm2740_vm4, %v2731_v10  ;;  %v2642_v5 = vmul.f32 %v2630_v46, %v2630_v46 }
 0xc0f   : > { %v2680_v45 = vmul.f32 0.7978846, %v2670_v20  ;;  %6051 = vmatprep.mubr.msk.bf16.mxu1 %vm6776_vm1, %v6775_v30  ;;  %v2715_v26 = vmul.f32 %v2705_v18, %v8094_v43 }
 0xc10   : > { %v2706_v29 = vmul.f32 0.5, %v2696_v42  ;;  %v2671_v33 = vadd.f32 %v2661_v23, %v8135_v36  ;;  %v2652_v59 = vmul.f32 %v2642_v5, %v2630_v46 }
 0xc11   : > { %v6525_v32 = vpop.eup %6524  ;;  %6530 = vtanh.f32 %v2680_v45 }
 0xc12   : > { %v2716_v55 = vmul.f32 %v2706_v29, %v8101_v54  ;;  %v2697_v9 = vadd.f32 1.0, %v6525_v32  ;;  %v2681_v41 = vmul.f32 0.7978846, %v2671_v33  ;;  %v2662_v62 = vmul.f32 0.044715, %v2652_v59 }
 0xc14   : > { %v2732_v12 = vpack.c.bf16 %v2716_v55, %v2715_v26  ;;  %6532 = vtanh.f32 %v2681_v41  ;;  %v2672_v39 = vadd.f32 %v2662_v62, %v2630_v46  ;;  %v2707_v1 = vmul.f32 0.5, %v2697_v9 }
 0xc15   : > { %v6527_v31 = vpop.eup %6526 }
 0xc16   : > { %v2698_v11 = vadd.f32 1.0, %v6527_v31  ;;  %6052 = vmatmul.mubr.msk.bf16.gmra.mxu1 %vm2740_vm4, %v2732_v12  ;;  %v2682_v63 = vmul.f32 0.7978846, %v2672_v39  ;;  %v2717_v43 = vmul.f32 %v2707_v1, %v8108_v4 }
 0xc17   : > { %6055 = vmatprep.mubr.msk.bf16.mxu1 %vm6776_vm1, %v6775_v30 }
 0xc18   : > { %v2708_v21 = vmul.f32 0.5, %v2698_v11  ;;  %6534 = vtanh.f32 %v2682_v63 }
 0xc19   : > { %v6529_v53 = vpop.eup %6528 }
 0xc1a   : > { %v2718_v54 = vmul.f32 %v2708_v21, %v8115_v50  ;;  %v2699_v15 = vadd.f32 1.0, %v6529_v53 }
 0xc1c   : > { %v2733_v6 = vpack.c.bf16 %v2718_v54, %v2717_v43  ;;  %v2709_v47 = vmul.f32 0.5, %v2699_v15 }
 0xc1e   : > { %v6531_v19 = vpop.eup %6530  ;;  %6056 = vmatmul.mubr.msk.bf16.gmra.mxu1 %vm2740_vm4, %v2733_v6  ;;  %v2719_v51 = vmul.f32 %v2709_v47, %v8122_v14 }
 0xc1f   : > { %v2700_v38 = vadd.f32 1.0, %v6531_v19  ;;  %6059 = vmatprep.mubr.msk.bf16.mxu1 %vm6776_vm1, %v6775_v30 }
 0xc21   : > { %v6533_v35 = vpop.eup %6532  ;;  %v2710_v57 = vmul.f32 0.5, %v2700_v38 }
 0xc22   : > { %v2701_v56 = vadd.f32 1.0, %v6533_v35 }
 0xc23   : > { %v2720_v8 = vmul.f32 %v2710_v57, %v8129_v7  ;;  %v5335_v7 = vld [vmem:[%s9191_s4 + $0x7] ss:$0 sm:$0xff] }
 0xc24   : > { %v2711_v50 = vmul.f32 0.5, %v2701_v56 }
 0xc25   : > { %v2734_v4 = vpack.c.bf16 %v2720_v8, %v2719_v51  ;;  %v6535_v13 = vpop.eup %6534  ;;  %v5356_v51 = vld [vmem:[%s9192_s5 + $0x110] sm:$0xff]  ;;  %v5357_v8 = vld [vmem:[%s9192_s5 + $0x118] sm:$0xff] }
 0xc26   : > { %v2702_v44 = vadd.f32 1.0, %v6535_v13  ;;  %v2721_v60 = vmul.f32 %v2711_v50, %v8135_v36 }
 0xc27   : > { %6060 = vmatmul.mubr.msk.bf16.gmra.mxu1 %vm2740_vm4, %v2734_v4 }
 0xc28   : > { %6063 = vmatprep.mubr.msk.bf16.mxu1 %vm6776_vm1, %v6775_v30  ;;  %v2712_v2 = vmul.f32 0.5, %v2702_v44 }
 0xc2a   : > { %v2722_v3 = vmul.f32 %v2712_v2, %v2630_v46 }
 0xc2c   : > { %v2735_v61 = vpack.c.bf16 %v2722_v3, %v2721_v60 }
 0xc2f   : > { %6064 = vmatmul.mubr.msk.bf16.gmra.mxu1 %vm2740_vm4, %v2735_v61 }
 0xc30   : > { %6083 = vmatprep.mubr.msk.bf16.mxu1 %vm6776_vm1, %v6775_v30 }
 0xcce   : > { %v2790_v14 = vpop.f32.mrf.mxu1 }
 0xccf   : > { %v2829_v24 = vadd.f32 %v2790_v14, %v7862_v48 }
 0xcd0   : > { %v6049_v16 = vpop.f32.mrf.mxu1 }
 0xcd1   : > { %v8172_v10 = vadd.f32 %v5335_v7, %v2829_v24 }
 0xcd2   : > { %v2793_v58 = vpop.f32.mrf.mxu1 }
 0xcd3   : > { %v2830_v36 = vadd.f32 %v2793_v58, %v7868_v27  ;;  %v2993_v49 = vsel %vm732_vm0, %v8172_v10, 0.0 }
 0xcd4   : > { %2994 = vadd.xlane.f32.xlu0 %v2993_v49  ;;  %v6050_v20 = vpop.f32.mrf.mxu1 }
 0xcd5   : > { %v2848_v46 = vadd.f32 %v5335_v7, %v2830_v36 }
 0xcd6   : > { %v2798_v34 = vpop.f32.mrf.mxu1 }
 0xcd7   : > { %v2831_v18 = vadd.f32 %v2798_v34, %v7874_v22  ;;  %v2996_v42 = vsel %vm732_vm0, %v2848_v46, 0.0 }
 0xcd8   : > { %2997 = vadd.xlane.f32.xlu1 %v2996_v42  ;;  %v6053_v23 = vpop.f32.mrf.mxu1 }
 0xcd9   : > { %v8179_v48 = vadd.f32 %v5335_v7, %v2831_v18 }
 0xcda   : > { %v2801_v45 = vpop.f32.mrf.mxu1 }
 0xcdb   : > { %v2832_v5 = vadd.f32 %v2801_v45, %v7880_v17  ;;  %v2857_v27 = vsel %vm732_vm0, %v8179_v48, 0.0 }
 0xcdc   : > { %2858 = vadd.xlane.f32.xlu0 %v2857_v27  ;;  %v6054_v29 = vpop.f32.mrf.mxu1 }
 0xcdd   : > { %v8184_v33 = vadd.f32 %v5335_v7, %v2832_v5 }
 0xcde   : > { %v2806_v32 = vpop.f32.mrf.mxu1 }
 0xcdf   : > { %v2833_v59 = vadd.f32 %v2806_v32, %v7886_v37  ;;  %v2860_v22 = vsel %vm732_vm0, %v8184_v33, 0.0 }
 0xce0   : > { %2861 = vadd.xlane.f32.xlu1 %v2860_v22  ;;  %v6057_v26 = vpop.f32.mrf.mxu1 }
 0xce1   : > { %v8189_v55 = vadd.f32 %v5335_v7, %v2833_v59 }
 0xce2   : > { %v2809_v9 = vpop.f32.mrf.mxu1 }
 0xce3   : > { %v2834_v17 = vadd.f32 %v2809_v9, %v7892_v0  ;;  %v2863_v41 = vsel %vm732_vm0, %v8189_v55, 0.0 }
 0xce4   : > { %2864 = vadd.xlane.f32.xlu0 %v2863_v41  ;;  %v6058_v62 = vpop.f32.mrf.mxu1 }
 0xce5   : > { %v8194_v12 = vadd.f32 %v5335_v7, %v2834_v17 }
 0xce7   : > { %v2814_v31 = vpop.f32.mrf.mxu1  ;;  %v2866_v37 = vsel %vm732_vm0, %v8194_v12, 0.0 }
 0xce8   : > { %v2835_v39 = vadd.f32 %v2814_v31, %v7898_v52  ;;  %2867 = vadd.xlane.f32.xlu1 %v2866_v37 }
 0xce9   : > { %v6061_v1 = vpop.f32.mrf.mxu1 }
 0xcea   : > { %v8199_v11 = vadd.f32 %v5335_v7, %v2835_v39 }
 0xceb   : > { %v2817_v63 = vpop.f32.mrf.mxu1 }
 0xcec   : > { %v2836_v0 = vadd.f32 %v2817_v63, %v7904_v25  ;;  %v2869_v21 = vsel %vm732_vm0, %v8199_v11, 0.0 }
 0xced   : > { %2870 = vadd.xlane.f32.xlu0 %v2869_v21  ;;  %v6062_v53 = vpop.f32.mrf.mxu1 }
 0xcee   : > { %v8204_v43 = vadd.f32 %v5335_v7, %v2836_v0 }
 0xcef   : > { %v2822_v54 = vpop.f32.mrf.mxu1 }
 0xcf0   : > { %v2837_v15 = vadd.f32 %v2822_v54, %v7910_v28  ;;  %v2872_v52 = vsel %vm732_vm0, %v8204_v43, 0.0 }
 0xcf1   : > { %2873 = vadd.xlane.f32.xlu1 %v2872_v52  ;;  %v6065_v6 = vpop.f32.mrf.mxu1 }
 0xcf2   : > { %v8209_v19 = vadd.f32 %v5335_v7, %v2837_v15 }
 0xcf3   : > { %v2825_v47 = vpop.f32.mrf.mxu1 }
 0xcf4   : > { %v2838_v25 = vadd.f32 %v2825_v47, %v7917_v40  ;;  %v2875_v38 = vsel %vm732_vm0, %v8209_v19, 0.0  ;;  %v3180_v40 = vpack.c.bf16 %v5357_v8, %v5356_v51  ;;  %v5346_v8 = vld [vmem:[%s9192_s5 + $0xd0] sm:$0xff] }
 0xcf5   : > { %2876 = vadd.xlane.f32.xlu0 %v2875_v38  ;;  %v6066_v35 = vpop.f32.mrf.mxu1 }
 0xcf6   : > { %v8214_v57 = vadd.f32 %v5335_v7, %v2838_v25  ;;  %6080 = vmatpush3.bf16.msra.mxu1 %v3180_v40  ;;  %v5354_v35 = vld [vmem:[%s9192_s5 + $0x100] sm:$0xff]  ;;  %v5347_v40 = vld [vmem:[%s9192_s5 + $0xd8] sm:$0xff] }
 0xcf7   : > { %6081 = vmatprep.subr.bf16.mxu1 %v6775_v30 }
 0xcf8   : > { %v2878_v28 = vsel %vm732_vm0, %v8214_v57, 0.0 }
 0xcf9   : > { %2879 = vadd.xlane.f32.xlu1 %v2878_v28  ;;  %v5355_v28 = vld [vmem:[%s9192_s5 + $0x108] sm:$0xff] }
 0xcfa   : > { %v3179_v51 = vpack.c.bf16 %v5355_v28, %v5354_v35  ;;  %v8340_v35 = vld [vmem:[%s9191_s4 + $0x9] ss:$0 sm:$0xff] }
 0xcfc   : > { %6082 = vmatpush3.bf16.msra.mxu1 %v3179_v51 }
 0xd5d   : > { %v2995_v56 = vpop.xlane.xlu0 %2994 }
 0xd5e   : > { %v2999_v4 = vmul.f32 0.03125, %v2995_v56  ;;  %v3083_v56 = vpack.c.bf16 %v5347_v40, %v5346_v8 }
 0xd60   : > { %v8226_v13 = vsub.f32 %v8172_v10, %v2999_v4  ;;  %6067 = vmatprep.subr.bf16.mxu0 %v3083_v56  ;;  %v5344_v4 = vld [vmem:[%s9192_s5 + $0xc0] sm:$0xff] }
 0xd61   : > { %v2998_v50 = vpop.xlane.xlu1 %2997  ;;  %6068 = vmatpush3.bf16.msra.mxu0 %v3083_v56 }
 0xd62   : > { %v3000_v44 = vmul.f32 0.03125, %v2998_v50  ;;  %v3003_v2 = vmul.f32 %v8226_v13, %v8226_v13  ;;  %v5345_v50 = vld [vmem:[%s9192_s5 + $0xc8] sm:$0xff] }
 0xd64   : > { %v8230_v60 = vsub.f32 %v2848_v46, %v3000_v44  ;;  %v3005_v3 = vsel %vm732_vm0, %v3003_v2, 0.0  ;;  %v3082_v44 = vpack.c.bf16 %v5345_v50, %v5344_v4 }
 0xd65   : > { %v2859_v61 = vpop.xlane.xlu0 %2858  ;;  %3006 = vadd.xlane.f32.xlu0 %v3005_v3 }
 0xd66   : > { %v2881_v14 = vmul.f32 0.03125, %v2859_v61  ;;  %v3004_v7 = vmul.f32 %v8230_v60, %v8230_v60  ;;  %6069 = vmatprep.subr.bf16.mxu0 %v3082_v44 }
 0xd67   : > { %6070 = vmatpush3.bf16.msra.mxu0 %v3082_v44 }
 0xd68   : > { %v8236_v24 = vsub.f32 %v8179_v48, %v2881_v14  ;;  %v3008_v16 = vsel %vm732_vm0, %v3004_v7, 0.0  ;;  %6103 = vmatprep.subr.bf16.mxu0 %v6775_v30 }
 0xd69   : > { %v2862_v10 = vpop.xlane.xlu1 %2861  ;;  %3009 = vadd.xlane.f32.xlu1 %v3008_v16 }
 0xd6a   : > { %v2882_v58 = vmul.f32 0.03125, %v2862_v10  ;;  %v2897_v36 = vmul.f32 %v8236_v24, %v8236_v24 }
 0xd6c   : > { %v8242_v49 = vsub.f32 %v8184_v33, %v2882_v58  ;;  %v2905_v20 = vsel %vm732_vm0, %v2897_v36, 0.0 }
 0xd6d   : > { %v2865_v46 = vpop.xlane.xlu0 %2864  ;;  %2906 = vadd.xlane.f32.xlu0 %v2905_v20 }
 0xd6e   : > { %v2883_v34 = vmul.f32 0.03125, %v2865_v46  ;;  %v2898_v18 = vmul.f32 %v8242_v49, %v8242_v49 }
 0xd70   : > { %v8248_v42 = vsub.f32 %v8189_v55, %v2883_v34  ;;  %v2908_v23 = vsel %vm732_vm0, %v2898_v18, 0.0 }
 0xd71   : > { %v2868_v45 = vpop.xlane.xlu1 %2867  ;;  %2909 = vadd.xlane.f32.xlu1 %v2908_v23 }
 0xd72   : > { %v2884_v5 = vmul.f32 0.03125, %v2868_v45  ;;  %v2899_v27 = vmul.f32 %v8248_v42, %v8248_v42 }
 0xd74   : > { %v8254_v29 = vsub.f32 %v8194_v12, %v2884_v5  ;;  %v2911_v32 = vsel %vm732_vm0, %v2899_v27, 0.0  ;;  %v8306_v5 = vld [vmem:[%s9191_s4 + $0xa] ss:$0 sm:$0xff] }
 0xd75   : > { %2912 = vadd.xlane.f32.xlu0 %v2911_v32 }
 0xd76   : > { %v2871_v59 = vpop.xlane.xlu0 %2870  ;;  %v2900_v22 = vmul.f32 %v8254_v29, %v8254_v29 }
 0xd77   : > { %v2885_v26 = vmul.f32 0.03125, %v2871_v59 }
 0xd78   : > { %v2914_v9 = vsel %vm732_vm0, %v2900_v22, 0.0 }
 0xd79   : > { %v8261_v17 = vsub.f32 %v8199_v11, %v2885_v26  ;;  %2915 = vadd.xlane.f32.xlu1 %v2914_v9 }
 0xd7a   : > { %v2874_v41 = vpop.xlane.xlu1 %2873 }
 0xd7b   : > { %v2886_v62 = vmul.f32 0.03125, %v2874_v41  ;;  %v2901_v31 = vmul.f32 %v8261_v17, %v8261_v17  ;;  %v8313_v41 = vld [vmem:[%s9191_s4 + $0xb] ss:$0 sm:$0xff] }
 0xd7d   : > { %v8266_v37 = vsub.f32 %v8204_v43, %v2886_v62  ;;  %v2917_v39 = vsel %vm732_vm0, %v2901_v31, 0.0 }
 0xd7e   : > { %2918 = vadd.xlane.f32.xlu0 %v2917_v39  ;;  %v2877_v1 = vpop.xlane.xlu0 %2876 }
 0xd7f   : > { %v2887_v63 = vmul.f32 0.03125, %v2877_v1  ;;  %v2902_v0 = vmul.f32 %v8266_v37, %v8266_v37 }
 0xd81   : > { %v8272_v21 = vsub.f32 %v8209_v19, %v2887_v63  ;;  %v2920_v53 = vsel %vm732_vm0, %v2902_v0, 0.0  ;;  %v8323_v0 = vld [vmem:[%s9191_s4 + $0x8] ss:$0 sm:$0xff] }
 0xd82   : > { %2921 = vadd.xlane.f32.xlu1 %v2920_v53  ;;  %v2880_v54 = vpop.xlane.xlu1 %2879 }
 0xd83   : > { %v2888_v15 = vmul.f32 0.03125, %v2880_v54  ;;  %v2903_v52 = vmul.f32 %v8272_v21, %v8272_v21 }
 0xd85   : > { %v8278_v6 = vsub.f32 %v8214_v57, %v2888_v15  ;;  %v2923_v47 = vsel %vm732_vm0, %v2903_v52, 0.0  ;;  %v6700_v52 = vld [vmem:[%s9190_s3] sm:$0xff] }
 0xd86   : > { %2924 = vadd.xlane.f32.xlu0 %v2923_v47 }
 0xd87   : > { %v2904_v25 = vmul.f32 %v8278_v6, %v8278_v6 }
 0xd89   : > { %v2926_v38 = vsel %vm732_vm0, %v2904_v25, 0.0  ;;  %v6701_v25 = vld [vmem:[%s9190_s3 + $0x8] sm:$0xff] }
 0xd8a   : > { %2927 = vadd.xlane.f32.xlu1 %v2926_v38 }
 0xdee   : > { %v3007_v2 = vpop.xlane.xlu0 %3006 }
 0xdef   : > { %v3011_v3 = vmul.f32 0.03125, %v3007_v2 }
 0xdf1   : > { %v3013_v61 = vadd.f32 1e-05, %v3011_v3 }
 0xdf2   : > { %v3010_v14 = vpop.xlane.xlu1 %3009 }
 0xdf3   : > { %6536 = vrsqrt.f32 %v3013_v61  ;;  %v3012_v7 = vmul.f32 0.03125, %v3010_v14 }
 0xdf5   : > { %v3014_v16 = vadd.f32 1e-05, %v3012_v7 }
 0xdf6   : > { %v2907_v10 = vpop.xlane.xlu0 %2906 }
 0xdf7   : > { %6538 = vrsqrt.f32 %v3014_v16  ;;  %v2929_v58 = vmul.f32 0.03125, %v2907_v10 }
 0xdf9   : > { %v2937_v36 = vadd.f32 1e-05, %v2929_v58 }
 0xdfa   : > { %v2910_v20 = vpop.xlane.xlu1 %2909 }
 0xdfb   : > { %6540 = vrsqrt.f32 %v2937_v36  ;;  %v2930_v46 = vmul.f32 0.03125, %v2910_v20  ;;  %v6702_v20 = vld [vmem:[%s9190_s3 + $0x10] sm:$0xff] }
 0xdfd   : > { %v2938_v34 = vadd.f32 1e-05, %v2930_v46 }
 0xdfe   : > { %v2913_v18 = vpop.xlane.xlu0 %2912 }
 0xdff   : > { %6542 = vrsqrt.f32 %v2938_v34  ;;  %v2931_v23 = vmul.f32 0.03125, %v2913_v18 }
 0xe00   : > { %v6537_v45 = vpop.eup %6536 }
 0xe01   : > { %v3017_v27 = vmul.f32 %v6537_v45, %v8226_v13  ;;  %v2939_v32 = vadd.f32 1e-05, %v2931_v23 }
 0xe02   : > { %v2916_v59 = vpop.xlane.xlu1 %2915 }
 0xe03   : > { %v3027_v22 = vmul.f32 %v8306_v5, %v3017_v27  ;;  %6544 = vrsqrt.f32 %v2939_v32  ;;  %v2932_v26 = vmul.f32 0.03125, %v2916_v59 }
 0xe04   : > { %v6539_v9 = vpop.eup %6538 }
 0xe05   : > { %v3018_v62 = vmul.f32 %v6539_v9, %v8230_v60  ;;  %v2940_v31 = vadd.f32 1e-05, %v2932_v26  ;;  %v8317_v39 = vadd.f32 %v8313_v41, %v3027_v22 }
 0xe07   : > { %v3028_v13 = vmul.f32 %v8306_v5, %v3018_v62  ;;  %6546 = vrsqrt.f32 %v2940_v31  ;;  %v2919_v1 = vpop.xlane.xlu0 %2918  ;;  %v3063_v47 = vadd.f32 %v6700_v52, %v8317_v39 }
 0xe08   : > { %v6541_v63 = vpop.eup %6540  ;;  %v2933_v53 = vmul.f32 0.03125, %v2919_v1 }
 0xe09   : > { %v8326_v54 = vadd.f32 %v8313_v41, %v3028_v13  ;;  %v2953_v60 = vmul.f32 %v6541_v63, %v8236_v24 }
 0xe0a   : > { %v2941_v15 = vadd.f32 1e-05, %v2933_v53 }
 0xe0b   : > { %v3064_v38 = vadd.f32 %v6701_v25, %v8326_v54  ;;  %v2922_v28 = vpop.xlane.xlu1 %2921  ;;  %v2969_v24 = vmul.f32 %v8323_v0, %v2953_v60  ;;  %v3029_v51 = vmul.f32 %v8306_v5, %v2953_v60  ;;  %v5368_v25 = vld [vmem:[%s9192_s5 + $0x158] sm:$0xff] }
 0xe0c   : > { %v6543_v8 = vpop.eup %6542  ;;  %6548 = vrsqrt.f32 %v2941_v15  ;;  %v2934_v40 = vmul.f32 0.03125, %v2922_v28 }
 0xe0d   : > { %v8344_v56 = vpack.c.bf16 %v3064_v38, %v3063_v47  ;;  %v2954_v4 = vmul.f32 %v6543_v8, %v8242_v49  ;;  %v2985_v44 = vadd.f32 %v8340_v35, %v2969_v24  ;;  %v8349_v2 = vadd.f32 %v8313_v41, %v3029_v51  ;;  %v5367_v47 = vld [vmem:[%s9192_s5 + $0x150] sm:$0xff]  ;;  %v6704_v38 = vld [vmem:[%s9190_s3 + $0x20] sm:$0xff]  ;;  %v6705_v24 = vld [vmem:[%s9190_s3 + $0x28] sm:$0xff] }
 0xe0e   : > { %v2942_v50 = vadd.f32 1e-05, %v2934_v40 }
 0xe0f   : > { %v2925_v3 = vpop.xlane.xlu0 %2924  ;;  %6084 = vmatmul.mubr.msk.bf16.vlgmr.msra.gmra.mxu1 %vm732_vm0, %v8344_v56  ;;  %v2970_v61 = vmul.f32 %v8323_v0, %v2954_v4  ;;  %v3030_v14 = vmul.f32 %v8306_v5, %v2954_v4  ;;  %v3055_v46 = vadd.f32 %v6702_v20, %v2985_v44  ;;  %v3065_v34 = vadd.f32 %v6702_v20, %v8349_v2 }
 0xe10   : > { %v6545_v7 = vpop.eup %6544  ;;  %6550 = vrsqrt.f32 %v2942_v50  ;;  %v2935_v16 = vmul.f32 0.03125, %v2925_v3  ;;  %6087 = vmatprep.mubr.msk.bf16.mxu1 %vm6776_vm1, %v6775_v30 }
 0xe11   : > { %v2955_v49 = vmul.f32 %v6545_v7, %v8248_v42  ;;  %v2986_v10 = vadd.f32 %v8340_v35, %v2970_v61  ;;  %v8360_v58 = vadd.f32 %v8313_v41, %v3030_v14  ;;  %v6703_v42 = vld [vmem:[%s9190_s3 + $0x18] sm:$0xff]  ;;  %v3288_v61 = vpack.c.bf16 %v5368_v25, %v5367_v47  ;;  %v5365_v7 = vld [vmem:[%s9192_s5 + $0x140] sm:$0xff] }
 0xe12   : > { %v2943_v36 = vadd.f32 1e-05, %v2935_v16  ;;  %v5366_v16 = vld [vmem:[%s9192_s5 + $0x148] sm:$0xff] }
 0xe13   : > { %v2971_v18 = vmul.f32 %v8323_v0, %v2955_v49  ;;  %v3031_v23 = vmul.f32 %v8306_v5, %v2955_v49  ;;  %v2928_v45 = vpop.xlane.xlu1 %2927  ;;  %v3056_v27 = vadd.f32 %v6703_v42, %v2986_v10  ;;  %v3066_v32 = vadd.f32 %v6703_v42, %v8360_v58 }
 0xe14   : > { %v6547_v59 = vpop.eup %6546  ;;  %6552 = vrsqrt.f32 %v2943_v36  ;;  %v2936_v22 = vmul.f32 0.03125, %v2928_v45  ;;  %v6706_v45 = vld [vmem:[%s9190_s3 + $0x30] sm:$0xff] }
 0xe15   : > { %v2956_v26 = vmul.f32 %v6547_v59, %v8254_v29  ;;  %v8373_v9 = vpack.c.bf16 %v3056_v27, %v3055_v46  ;;  %v8375_v62 = vpack.c.bf16 %v3066_v32, %v3065_v34  ;;  %v2987_v31 = vadd.f32 %v8340_v35, %v2971_v18 }
 0xe16   : > { %v2944_v13 = vadd.f32 1e-05, %v2936_v22  ;;  %v8385_v53 = vadd.f32 %v8313_v41, %v3031_v23  ;;  %v3287_v46 = vpack.c.bf16 %v5366_v16, %v5365_v7 }
 0xe17   : > { %v2972_v1 = vmul.f32 %v8323_v0, %v2956_v26  ;;  %v3032_v63 = vmul.f32 %v8306_v5, %v2956_v26  ;;  %6071 = vmatprep.mubr.msk.bf16.mxu0 %vm732_vm0, %v8373_v9  ;;  %6088 = vmatmul.mubr.msk.bf16.gmra.mxu1 %vm732_vm0, %v8375_v62  ;;  %v3057_v28 = vadd.f32 %v6704_v38, %v2987_v31 }
 0xe18   : > { %6554 = vrsqrt.f32 %v2944_v13  ;;  %6091 = vmatprep.mubr.msk.bf16.mxu1 %vm6776_vm1, %v6775_v30 }
 0xe19   : > { %v6549_v29 = vpop.eup %6548  ;;  %v2988_v60 = vadd.f32 %v8340_v35, %v2972_v1  ;;  %v8391_v15 = vadd.f32 %v8313_v41, %v3032_v63 }
 0xe1a   : > { %v2957_v52 = vmul.f32 %v6549_v29, %v8261_v17  ;;  %v3067_v17 = vadd.f32 %v6704_v38, %v8385_v53  ;;  %v6709_v38 = vld [vmem:[%s9190_s3 + $0x48] sm:$0xff] }
 0xe1b   : > { %v3058_v51 = vadd.f32 %v6705_v24, %v2988_v60  ;;  %v3068_v8 = vadd.f32 %v6705_v24, %v8391_v15 }
 0xe1c   : > { %v2973_v40 = vmul.f32 %v8323_v0, %v2957_v52  ;;  %v3033_v4 = vmul.f32 %v8306_v5, %v2957_v52 }
 0xe1d   : > { %v6551_v50 = vpop.eup %6550  ;;  %v8410_v44 = vpack.c.bf16 %v3058_v51, %v3057_v28  ;;  %v8412_v3 = vpack.c.bf16 %v3068_v8, %v3067_v17 }
 0xe1e   : > { %v2958_v14 = vmul.f32 %v6551_v50, %v8266_v37  ;;  %v2989_v49 = vadd.f32 %v8340_v35, %v2973_v40  ;;  %v3051_v10 = vadd.f32 %v8313_v41, %v3033_v4 }
 0xe1f   : > { %6072 = vmatmul.mubr.msk.bf16.vlgmr.msra.gmra.mxu0 %vm732_vm0, %v8410_v44  ;;  %6092 = vmatmul.mubr.msk.bf16.gmra.mxu1 %vm732_vm0, %v8412_v3 }
 0xe20   : > { %6095 = vmatprep.mubr.msk.bf16.mxu1 %vm6776_vm1, %v6775_v30  ;;  %v2974_v37 = vmul.f32 %v8323_v0, %v2958_v14  ;;  %v3034_v36 = vmul.f32 %v8306_v5, %v2958_v14  ;;  %6104 = vmatpush3.bf16.msra.mxu0 %v3288_v61  ;;  %v3059_v42 = vadd.f32 %v6706_v45, %v2989_v49 }
 0xe21   : > { %v6553_v20 = vpop.eup %6552  ;;  %6105 = vmatprep.subr.bf16.mxu0 %v6775_v30  ;;  %v3069_v27 = vadd.f32 %v6706_v45, %v3051_v10 }
 0xe22   : > { %v2959_v34 = vmul.f32 %v6553_v20, %v8272_v21  ;;  %v2990_v18 = vadd.f32 %v8340_v35, %v2974_v37  ;;  %v3052_v23 = vadd.f32 %v8313_v41, %v3034_v36  ;;  %v6707_v21 = vld [vmem:[%s9190_s3 + $0x38] sm:$0xff]  ;;  %v8521_v20 = vld [vmem:[%s9193_s6 + $0x6] ss:$0 sm:$0xff] }
 0xe24   : > { %v2975_v32 = vmul.f32 %v8323_v0, %v2959_v34  ;;  %v3035_v59 = vmul.f32 %v8306_v5, %v2959_v34  ;;  %v3060_v22 = vadd.f32 %v6707_v21, %v2990_v18  ;;  %v3070_v26 = vadd.f32 %v6707_v21, %v3052_v23  ;;  %6106 = vmatpush3.bf16.msra.mxu0 %v3287_v46 }
 0xe25   : > { %v6555_v31 = vpop.eup %6554 }
 0xe26   : > { %v2960_v13 = vmul.f32 %v6555_v31, %v8278_v6  ;;  %v8444_v1 = vpack.c.bf16 %v3060_v22, %v3059_v42  ;;  %v8446_v63 = vpack.c.bf16 %v3070_v26, %v3069_v27  ;;  %v2991_v29 = vadd.f32 %v8340_v35, %v2975_v32 }
 0xe27   : > { %v3053_v47 = vadd.f32 %v8313_v41, %v3035_v59 }
 0xe28   : > { %v2976_v60 = vmul.f32 %v8323_v0, %v2960_v13  ;;  %v3036_v52 = vmul.f32 %v8306_v5, %v2960_v13  ;;  %6075 = vmatprep.mubr.msk.bf16.mxu0 %vm732_vm0, %v8444_v1  ;;  %6096 = vmatmul.mubr.msk.bf16.gmra.mxu1 %vm732_vm0, %v8446_v63  ;;  %v6708_v0 = vld [vmem:[%s9190_s3 + $0x40] sm:$0xff]  ;;  %v5359_v13 = vld [vmem:[%s9193_s6 + $0x8] ss:$0 sm:$0xff] }
 0xe29   : > { %6099 = vmatprep.mubr.msk.bf16.mxu1 %vm6776_vm1, %v6775_v30  ;;  %v3061_v5 = vadd.f32 %v6708_v0, %v2991_v29  ;;  %v3071_v24 = vadd.f32 %v6708_v0, %v3053_v47 }
 0xe2a   : > { %v2992_v6 = vadd.f32 %v8340_v35, %v2976_v60  ;;  %v3054_v25 = vadd.f32 %v8313_v41, %v3036_v52  ;;  %v8478_v41 = vpack.c.bf16 %v8326_v54, %v8317_v39  ;;  %v8486_v35 = vpack.c.bf16 %v8360_v58, %v8349_v2 }
 0xe2b   : > { %v8494_v39 = vpack.c.bf16 %v8391_v15, %v8385_v53  ;;  %v8500_v54 = vpack.c.bf16 %v3052_v23, %v3051_v10 }
 0xe2c   : > { %v3062_v28 = vadd.f32 %v6709_v38, %v2992_v6  ;;  %v3072_v51 = vadd.f32 %v6709_v38, %v3054_v25  ;;  %v8506_v2 = vpack.c.bf16 %v3054_v25, %v3053_v47 }
 0xe2e   : > { %v8466_v17 = vpack.c.bf16 %v3062_v28, %v3061_v5  ;;  %v8468_v8 = vpack.c.bf16 %v3072_v51, %v3071_v24 }
 0xe30   : > { %6076 = vmatmul.mubr.msk.bf16.gmra.mxu0 %vm732_vm0, %v8466_v17  ;;  %6100 = vmatmul.mubr.msk.bf16.gmra.mxu1 %vm732_vm0, %v8468_v8 }
 0xe31   : > { %6107 = vmatprep.mubr.msk.bf16.mxu0 %vm6776_vm1, %v6775_v30 }
 0xe38   : > { %6108 = vmatmul.mubr.msk.bf16.vlgmr.msra.gmra.mxu0 %vm732_vm0, %v8478_v41 }
 0xe39   : > { %6111 = vmatprep.mubr.msk.bf16.mxu0 %vm6776_vm1, %v6775_v30 }
 0xe40   : > { %6112 = vmatmul.mubr.msk.bf16.gmra.mxu0 %vm732_vm0, %v8486_v35 }
 0xe41   : > { %6115 = vmatprep.mubr.msk.bf16.mxu0 %vm6776_vm1, %v6775_v30 }
 0xe48   : > { %6116 = vmatmul.mubr.msk.bf16.gmra.mxu0 %vm732_vm0, %v8494_v39 }
 0xe49   : > { %6119 = vmatprep.mubr.msk.bf16.mxu0 %vm6776_vm1, %v6775_v30 }
 0xe50   : > { %6120 = vmatmul.mubr.msk.bf16.gmra.mxu0 %vm732_vm0, %v8500_v54 }
 0xe51   : > { %6123 = vmatprep.mubr.msk.bf16.mxu0 %vm6776_vm1, %v6775_v30 }
 0xe58   : > { %6124 = vmatmul.mubr.msk.bf16.gmra.mxu0 %vm732_vm0, %v8506_v2 }
 0xecf   : > { %v8510_v58 = vpop.f32.mrf.mxu1 }
 0xed1   : > { %v6085_v53 = vpop.f32.mrf.mxu1 }
 0xed3   : > { %v8512_v15 = vpop.f32.mrf.mxu1 }
 0xed5   : > { %v6086_v40 = vpop.f32.mrf.mxu1 }
 0xed7   : > { %v3246_v4 = vpop.f32.mrf.mxu1 }
 0xed9   : > { %v6089_v50 = vpop.f32.mrf.mxu1 }
 0xedb   : > { %v3249_v61 = vpop.f32.mrf.mxu1 }
 0xedd   : > { %v6090_v14 = vpop.f32.mrf.mxu1 }
 0xedf   : > { %v8514_v7 = vpop.f32.mrf.mxu0  ;;  %v3254_v16 = vpop.f32.mrf.mxu1 }
 0xee1   : > { %v3138_v49 = vpop.f32.mrf.mxu0  ;;  %v6093_v10 = vpop.f32.mrf.mxu1 }
 0xee2   : > { %v3139_v18 = vadd.f32 %v8521_v20, %v3138_v49  ;;  %v3255_v49 = vadd.f32 %v5359_v13, %v3254_v16 }
 0xee3   : > { %v8516_v37 = vpop.f32.mrf.mxu0  ;;  %v3257_v36 = vpop.f32.mrf.mxu1 }
 0xee4   : > { %v3258_v50 = vadd.f32 %v5359_v13, %v3257_v36 }
 0xee5   : > { %v3141_v46 = vpop.f32.mrf.mxu0  ;;  %v6094_v34 = vpop.f32.mrf.mxu1 }
 0xee6   : > { %v3142_v23 = vadd.f32 %v8521_v20, %v3141_v46  ;;  %v3391_v46 = vpack.c.bf16 %v3258_v50, %v3255_v49 }
 0xee8   : > { %v3385_v45 = vpack.c.bf16 %v3142_v23, %v3139_v18  ;;  %v3262_v42 = vpop.f32.mrf.mxu1 }
 0xee9   : > { %v3263_v5 = vadd.f32 %v5359_v13, %v3262_v42 }
 0xeea   : > { %v6097_v27 = vpop.f32.mrf.mxu1  ;;  %6137 = vmatprep.mubr.msk.bf16.mxu1 %vm1222_vm2, %v3385_v45  ;;  %v3250_v45 = vadd.f32 %v5359_v13, %v3249_v61 }
 0xeeb   : > { %v3247_v27 = vadd.f32 %v5359_v13, %v3246_v4 }
 0xeec   : > { %v3265_v32 = vpop.f32.mrf.mxu1 }
 0xeed   : > { %v3266_v52 = vadd.f32 %v5359_v13, %v3265_v32 }
 0xeee   : > { %v6098_v59 = vpop.f32.mrf.mxu1 }
 0xeef   : > { %v3392_v24 = vpack.c.bf16 %v3266_v52, %v3263_v5  ;;  %v3390_v59 = vpack.c.bf16 %v3250_v45, %v3247_v27  ;;  %v3239_v52 = vadd.f32 %v5359_v13, %v8510_v58  ;;  %v5388_v5 = vld [vmem:[%s9192_s5 + $0xf0] sm:$0xff] }
 0xef0   : > { %v8526_v21 = vpop.f32.mrf.mxu0  ;;  %v3270_v22 = vpop.f32.mrf.mxu1 }
 0xef1   : > { %v3271_v47 = vadd.f32 %v5359_v13, %v3270_v22  ;;  %v3416_v34 = vsel %vm1222_vm2, %v3392_v24, 0  ;;  %v3413_v22 = vsel %vm1222_vm2, %v3391_v46, 0  ;;  %v3410_v61 = vsel %vm1222_vm2, %v3390_v59, 0 }
 0xef2   : > { %v8528_v26 = vpop.f32.mrf.mxu0  ;;  %v6101_v31 = vpop.f32.mrf.mxu1 }
 0xef3   : > { %v3242_v31 = vadd.f32 %v5359_v13, %v8512_v15  ;;  %v5389_v15 = vld [vmem:[%s9192_s5 + $0xf8] sm:$0xff] }
 0xef4   : > { %v8533_v29 = vpop.f32.mrf.mxu0  ;;  %v3273_v60 = vpop.f32.mrf.mxu1 }
 0xef5   : > { %v3274_v6 = vadd.f32 %v5359_v13, %v3273_v60 }
 0xef6   : > { %v3157_v25 = vpop.f32.mrf.mxu0  ;;  %v6102_v0 = vpop.f32.mrf.mxu1 }
 0xef7   : > { %v3393_v38 = vpack.c.bf16 %v3274_v6, %v3271_v47  ;;  %v3389_v6 = vpack.c.bf16 %v3242_v31, %v3239_v52  ;;  %v3158_v50 = vadd.f32 %v8521_v20, %v3157_v25  ;;  %v3155_v25 = vadd.f32 %v8521_v20, %v8528_v26 }
 0xef8   : > { %v8535_v28 = vpop.f32.mrf.mxu0  ;;  %v3163_v26 = vadd.f32 %v8526_v21, %v8521_v20  ;;  %v5409_v21 = vld [vmem:[%s9192_s5 + $0x170] sm:$0xff] }
 0xef9   : > { %6323 = vmatprep.subr.msk.bf16.mxu1 %vm1222_vm2, %v3393_v38  ;;  %v3419_v51 = vsel %vm1222_vm2, %v3393_v38, 0  ;;  %v3407_v13 = vsel %vm1222_vm2, %v3389_v6, 0  ;;  %v3387_v31 = vpack.c.bf16 %v3158_v50, %v3155_v25 }
 0xefa   : > { %v6109_v53 = vpop.f32.mrf.mxu0  ;;  %6128 = vmatpush3.bf16.xpose.msra.mxu1 %v3419_v51 }
 0xefb   : > { %6324 = vmatprep.subr.msk.bf16.mxu1 %vm1222_vm2, %v3392_v24  ;;  %v3682_v24 = vpack.c.bf16 %v5389_v15, %v5388_v5  ;;  %v3150_v53 = vadd.f32 %v8516_v37, %v8521_v20  ;;  %v5387_v37 = vld [vmem:[%s9192_s5 + $0xe8] sm:$0xff] }
 0xefc   : > { %v8540_v40 = vpop.f32.mrf.mxu0 }
 0xefe   : > { %v6110_v14 = vpop.f32.mrf.mxu0 }
 0xeff   : > { %v5370_v14 = vld [vmem:[%s9193_s6 + $0xa] ss:$0 sm:$0xff] }
 0xf00   : > { %v8542_v10 = vpop.f32.mrf.mxu0  ;;  %v3350_v5 = vadd.f32 %v5370_v14, %v8540_v40 }
 0xf02   : > { %v6113_v18 = vpop.f32.mrf.mxu0  ;;  %6130 = vmatpush3.bf16.xpose.msra.mxu1 %v3416_v34 }
 0xf03   : > { %6325 = vmatprep.subr.msk.bf16.mxu1 %vm1222_vm2, %v3391_v46  ;;  %v3147_v46 = vadd.f32 %v8514_v7, %v8521_v20 }
 0xf04   : > { %v3357_v23 = vpop.f32.mrf.mxu0 }
 0xf06   : > { %v6114_v42 = vpop.f32.mrf.mxu0 }
 0xf07   : > { %v5386_v42 = vld [vmem:[%s9192_s5 + $0xe0] sm:$0xff] }
 0xf08   : > { %v3362_v32 = vpop.f32.mrf.mxu0  ;;  %v3681_v7 = vpack.c.bf16 %v5387_v37, %v5386_v42 }
 0xf0a   : > { %v6117_v36 = vpop.f32.mrf.mxu0  ;;  %6132 = vmatpush3.bf16.xpose.msra.mxu1 %v3413_v22 }
 0xf0b   : > { %6326 = vmatprep.subr.msk.bf16.mxu1 %vm1222_vm2, %v3390_v59  ;;  %v3386_v59 = vpack.c.bf16 %v3150_v53, %v3147_v46 }
 0xf0c   : > { %v3365_v16 = vpop.f32.mrf.mxu0 }
 0xf0e   : > { %v6118_v60 = vpop.f32.mrf.mxu0 }
 0xf0f   : > { %v3366_v60 = vadd.f32 %v5370_v14, %v3365_v16 }
 0xf10   : > { %v3370_v47 = vpop.f32.mrf.mxu0 }
 0xf11   : > { %v3371_v22 = vadd.f32 %v5370_v14, %v3370_v47  ;;  %v3358_v47 = vadd.f32 %v5370_v14, %v3357_v23 }
 0xf12   : > { %v6121_v0 = vpop.f32.mrf.mxu0  ;;  %6134 = vmatpush3.bf16.xpose.msra.mxu1 %v3410_v61  ;;  %v3363_v61 = vadd.f32 %v5370_v14, %v3362_v32  ;;  %v5407_v32 = vld [vmem:[%s9192_s5 + $0x160] sm:$0xff] }
 0xf13   : > { %6327 = vmatprep.subr.msk.bf16.mxu1 %vm1222_vm2, %v3389_v6  ;;  %v3166_v6 = vadd.f32 %v8533_v29, %v8521_v20  ;;  %v3347_v20 = vadd.f32 %v5370_v14, %v8535_v28 }
 0xf14   : > { %v3373_v4 = vpop.f32.mrf.mxu0  ;;  %v3588_v0 = vpack.c.bf16 %v3366_v60, %v3363_v61 }
 0xf15   : > { %v3374_v34 = vadd.f32 %v5370_v14, %v3373_v4  ;;  %v3388_v16 = vpack.c.bf16 %v3166_v6, %v3163_v26  ;;  %v3355_v4 = vadd.f32 %v5370_v14, %v8542_v10  ;;  %v5410_v10 = vld [vmem:[%s9192_s5 + $0x178] sm:$0xff]  ;;  %v3586_v23 = vpack.c.bf16 %v3350_v5, %v3347_v20 }
 0xf16   : > { %v6122_v38 = vpop.f32.mrf.mxu0  ;;  %v3850_v40 = vpack.c.bf16 %v5410_v10, %v5409_v21 }
 0xf17   : > { %v3589_v52 = vpack.c.bf16 %v3374_v34, %v3371_v22  ;;  %v3587_v29 = vpack.c.bf16 %v3358_v47, %v3355_v4  ;;  %v5391_v34 = vld [vmem:[%s9193_s6 + $0x7] ss:$0 sm:$0xff] }
 0xf18   : > { %v3378_v58 = vpop.f32.mrf.mxu0 }
 0xf19   : > { %v3379_v18 = vadd.f32 %v5370_v14, %v3378_v58 }
 0xf1a   : > { %v6125_v51 = vpop.f32.mrf.mxu0  ;;  %6136 = vmatpush3.bf16.xpose.msra.mxu1 %v3407_v13 }
 0xf1b   : > { %6163 = vmatprep.subr.bf16.mxu1 %v3682_v24 }
 0xf1c   : > { %v3381_v49 = vpop.f32.mrf.mxu0 }
 0xf1d   : > { %v3382_v45 = vadd.f32 %v5370_v14, %v3381_v49 }
 0xf1e   : > { %v6126_v27 = vpop.f32.mrf.mxu0 }
 0xf1f   : > { %v3590_v36 = vpack.c.bf16 %v3382_v45, %v3379_v18 }
 0xf21   : > { %6138 = vmatmul.mubr.msk.bf16.vlgmr.msra.gmra.mxu1 %vm1222_vm2, %v3386_v59  ;;  %6145 = vmatprep.subr.bf16.mxu0 %v3590_v36 }
 0xf22   : > { %6141 = vmatprep.mubr.msk.bf16.mxu1 %vm1222_vm2, %v3387_v31  ;;  %6146 = vmatpush3.bf16.msra.mxu0 %v3590_v36 }
 0xf23   : > { %6147 = vmatprep.subr.bf16.mxu0 %v3589_v52  ;;  %6164 = vmatpush3.bf16.msra.mxu1 %v3682_v24 }
 0xf24   : > { %6165 = vmatprep.subr.bf16.mxu1 %v3681_v7 }
 0xf26   : > { %6148 = vmatpush3.bf16.msra.mxu0 %v3589_v52 }
 0xf27   : > { %6149 = vmatprep.subr.bf16.mxu0 %v3588_v0  ;;  %6166 = vmatpush3.bf16.msra.mxu1 %v3681_v7 }
 0xf28   : > { %6199 = vmatprep.subr.bf16.mxu1 %v6775_v30 }
 0xf29   : > { %6142 = vmatmul.mubr.msk.bf16.gmra.mxu1 %vm1222_vm2, %v3388_v16 }
 0xf2a   : > { %6150 = vmatpush3.bf16.msra.mxu0 %v3588_v0  ;;  %6167 = vmatprep.mubr.msk.bf16.mxu1 %vm732_vm0, %v8373_v9  ;;  %v5408_v9 = vld [vmem:[%s9192_s5 + $0x168] sm:$0xff] }
 0xf2b   : > { %6151 = vmatprep.subr.bf16.mxu0 %v3587_v29  ;;  %v3849_v28 = vpack.c.bf16 %v5408_v9, %v5407_v32 }
 0xf2e   : > { %6152 = vmatpush3.bf16.msra.mxu0 %v3587_v29 }
 0xf2f   : > { %6153 = vmatprep.subr.bf16.mxu0 %v3586_v23 }
 0xf31   : > { %6168 = vmatmul.mubr.msk.bf16.vlgmr.msra.gmra.mxu1 %vm732_vm0, %v8410_v44 }
 0xf32   : > { %6154 = vmatpush3.bf16.msra.mxu0 %v3586_v23  ;;  %6171 = vmatprep.mubr.msk.bf16.mxu1 %vm732_vm0, %v8444_v1 }
 0xf33   : > { %6200 = vmatpush3.bf16.msra.mxu1 %v3850_v40  ;;  %6175 = vmatprep.subr.bf16.mxu0 %v6775_v30 }
 0xf34   : > { %6201 = vmatprep.subr.bf16.mxu1 %v6775_v30 }
 0xf37   : > { %6202 = vmatpush3.bf16.msra.mxu1 %v3849_v28 }
 0xf39   : > { %6172 = vmatmul.mubr.msk.bf16.gmra.mxu1 %vm732_vm0, %v8466_v17 }
 0xf3a   : > { %6203 = vmatprep.mubr.msk.bf16.mxu1 %vm6776_vm1, %v6775_v30 }
 0xf41   : > { %6204 = vmatmul.mubr.msk.bf16.vlgmr.msra.gmra.mxu1 %vm732_vm0, %v8478_v41 }
 0xf42   : > { %6207 = vmatprep.mubr.msk.bf16.mxu1 %vm6776_vm1, %v6775_v30 }
 0xf49   : > { %6208 = vmatmul.mubr.msk.bf16.gmra.mxu1 %vm732_vm0, %v8486_v35 }
 0xf4a   : > { %6211 = vmatprep.mubr.msk.bf16.mxu1 %vm6776_vm1, %v6775_v30 }
 0xf51   : > { %6212 = vmatmul.mubr.msk.bf16.gmra.mxu1 %vm732_vm0, %v8494_v39 }
 0xf52   : > { %6215 = vmatprep.mubr.msk.bf16.mxu1 %vm6776_vm1, %v6775_v30 }
 0xf59   : > { %6216 = vmatmul.mubr.msk.bf16.gmra.mxu1 %vm732_vm0, %v8500_v54 }
 0xf5a   : > { %6219 = vmatprep.mubr.msk.bf16.mxu1 %vm6776_vm1, %v6775_v30 }
 0xf61   : > { %6220 = vmatmul.mubr.msk.bf16.gmra.mxu1 %vm732_vm0, %v8506_v2 }
 0xfe1   : > { %v6139_v44 = vpop.f32.mrf.mxu1 }
 0xfe2   : > { %v8630_v35 = vmul.f32 0.25, %v6139_v44 }
 0xfe3   : > { %v3455_v1 = vpop.f32.mrf.mxu1 }
 0xfe4   : > { %v8628_v17 = vmul.f32 0.25, %v3455_v1  ;;  %v3500_v2 = vsel %vm1336_vm3, %v8630_v35, -inf }
 0xfe5   : > { %v6140_v41 = vpop.f32.mrf.mxu1 }
 0xfe6   : > { %v3494_v39 = vsel %vm1336_vm3, %v8628_v17, -inf  ;;  %v8636_v24 = vmul.f32 0.25, %v6140_v41 }
 0xfe7   : > { %3495 = vmax.xlane.f32.xlu0 %v3494_v39  ;;  %v3458_v15 = vpop.f32.mrf.mxu1 }
 0xfe8   : > { %v8634_v38 = vmul.f32 0.25, %v3458_v15  ;;  %v3503_v14 = vsel %vm1336_vm3, %v8636_v24, -inf }
 0xfe9   : > { %v6143_v54 = vpop.f32.mrf.mxu1 }
 0xfea   : > { %v3497_v58 = vsel %vm1336_vm3, %v8634_v38, -inf  ;;  %v8644_v50 = vmul.f32 0.25, %v6143_v54 }
 0xfeb   : > { %3501 = vmax.xlane.f32.xlu0 %v3500_v2  ;;  %3498 = vmax.xlane.f32.xlu1 %v3497_v58  ;;  %v3471_v13 = vpop.f32.mrf.mxu1 }
 0xfec   : > { %v8642_v51 = vmul.f32 0.25, %v3471_v13  ;;  %v3512_v25 = vsel %vm1336_vm3, %v8644_v50, -inf }
 0xfed   : > { %v6144_v53 = vpop.f32.mrf.mxu1 }
 0xfee   : > { %v3506_v49 = vsel %vm1336_vm3, %v8642_v51, -inf  ;;  %v8655_v42 = vmul.f32 0.25, %v6144_v53 }
 0xfef   : > { %3504 = vmax.xlane.f32.xlu1 %v3503_v14  ;;  %3507 = vmax.xlane.f32.xlu0 %v3506_v49  ;;  %v3474_v46 = vpop.f32.mrf.mxu1 }
 0xff0   : > { %v8653_v18 = vmul.f32 0.25, %v3474_v46  ;;  %v3515_v31 = vsel %vm1336_vm3, %v8655_v42, -inf }
 0xff1   : > { %v6169_v45 = vpop.f32.mrf.mxu1 }
 0xff2   : > { %v8657_v37 = vadd.f32 %v6169_v45, %v5391_v34  ;;  %v3509_v27 = vsel %vm1336_vm3, %v8653_v18, -inf }
 0xff3   : > { %3513 = vmax.xlane.f32.xlu0 %v3512_v25  ;;  %v3725_v59 = vpop.f32.mrf.mxu1  ;;  %3510 = vmax.xlane.f32.xlu1 %v3509_v27 }
 0xff4   : > { %v8667_v60 = vadd.f32 %v5391_v34, %v3725_v59 }
 0xff5   : > { %v6170_v22 = vpop.f32.mrf.mxu1 }
 0xff6   : > { %v8663_v36 = vadd.f32 %v6170_v22, %v5391_v34 }
 0xff7   : > { %v3728_v7 = vpop.f32.mrf.mxu1  ;;  %3516 = vmax.xlane.f32.xlu1 %v3515_v31 }
 0xff8   : > { %v3933_v52 = vpack.c.bf16 %v8663_v36, %v8657_v37  ;;  %v8671_v6 = vadd.f32 %v5391_v34, %v3728_v7 }
 0xff9   : > { %v6173_v61 = vpop.f32.mrf.mxu1 }
 0xffa   : > { %v3932_v26 = vpack.c.bf16 %v8671_v6, %v8667_v60  ;;  %v8675_v47 = vadd.f32 %v6173_v61, %v5391_v34 }
 0xffb   : > { %v3741_v0 = vpop.f32.mrf.mxu1 }
 0xffc   : > { %v8677_v16 = vadd.f32 %v5391_v34, %v3741_v0 }
 0xffd   : > { %v6174_v4 = vpop.f32.mrf.mxu1 }
 0xffe   : > { %v8679_v5 = vadd.f32 %v6174_v4, %v5391_v34 }
 0xfff   : > { %v3744_v29 = vpop.f32.mrf.mxu1 }
0x1000   : > { %v3935_v20 = vpack.c.bf16 %v8679_v5, %v8675_v47  ;;  %v8683_v21 = vadd.f32 %v5391_v34, %v3744_v29  ;;  %v5412_v34 = vld [vmem:[%s9193_s6 + $0xb] ss:$0 sm:$0xff] }
0x1001   : > { %v3893_v10 = vpop.f32.mrf.mxu1 }
0x1002   : > { %v3934_v23 = vpack.c.bf16 %v8683_v21, %v8677_v16 }
0x1003   : > { %v6205_v40 = vpop.f32.mrf.mxu1 }
0x1005   : > { %v3896_v32 = vpop.f32.mrf.mxu1 }
0x1007   : > { %v6206_v9 = vpop.f32.mrf.mxu1 }
0x1009   : > { %v3901_v28 = vpop.f32.mrf.mxu1 }
0x100a   : > { %v3902_v9 = vadd.f32 %v5412_v34, %v3901_v28 }
0x100b   : > { %v6209_v44 = vpop.f32.mrf.mxu1 }
0x100c   : > { %v3897_v44 = vadd.f32 %v5412_v34, %v3896_v32 }
0x100d   : > { %v3904_v1 = vpop.f32.mrf.mxu1 }
0x100e   : > { %v3905_v29 = vadd.f32 %v5412_v34, %v3904_v1 }
0x100f   : > { %v6210_v41 = vpop.f32.mrf.mxu1 }
0x1010   : > { %v4134_v41 = vpack.c.bf16 %v3905_v29, %v3902_v9 }
0x1011   : > { %v3909_v39 = vpop.f32.mrf.mxu1 }
0x1012   : > { %v3910_v4 = vadd.f32 %v5412_v34, %v3909_v39 }
0x1013   : > { %v6213_v15 = vpop.f32.mrf.mxu1 }
0x1014   : > { %v3894_v15 = vadd.f32 %v5412_v34, %v3893_v10 }
0x1015   : > { %v3912_v54 = vpop.f32.mrf.mxu1 }
0x1016   : > { %v3913_v61 = vadd.f32 %v5412_v34, %v3912_v54 }
0x1017   : > { %v6214_v2 = vpop.f32.mrf.mxu1 }
0x1018   : > { %v4135_v40 = vpack.c.bf16 %v3913_v61, %v3910_v4  ;;  %v4133_v2 = vpack.c.bf16 %v3897_v44, %v3894_v15 }
0x1019   : > { %v3917_v58 = vpop.f32.mrf.mxu1 }
0x101a   : > { %v3918_v31 = vadd.f32 %v5412_v34, %v3917_v58 }
0x101b   : > { %v6217_v13 = vpop.f32.mrf.mxu1 }
0x101d   : > { %v3920_v53 = vpop.f32.mrf.mxu1 }
0x101e   : > { %v3921_v25 = vadd.f32 %v5412_v34, %v3920_v53 }
0x101f   : > { %v6218_v14 = vpop.f32.mrf.mxu1 }
0x1020   : > { %v4136_v0 = vpack.c.bf16 %v3921_v25, %v3918_v31 }
0x1021   : > { %v3925_v49 = vpop.f32.mrf.mxu1 }
0x1022   : > { %v3926_v27 = vadd.f32 %v5412_v34, %v3925_v49 }
0x1023   : > { %v6221_v46 = vpop.f32.mrf.mxu1 }
0x1025   : > { %v3928_v45 = vpop.f32.mrf.mxu1 }
0x1026   : > { %v3929_v59 = vadd.f32 %v5412_v34, %v3928_v45 }
0x1027   : > { %v6222_v22 = vpop.f32.mrf.mxu1 }
0x1028   : > { %v4137_v7 = vpack.c.bf16 %v3929_v59, %v3926_v27 }
0x102a   : > { %6241 = vmatprep.subr.bf16.mxu1 %v4137_v7 }
0x102b   : > { %6242 = vmatpush3.bf16.msra.mxu1 %v4137_v7 }
0x102c   : > { %6243 = vmatprep.subr.bf16.mxu1 %v4136_v0 }
0x102f   : > { %6244 = vmatpush3.bf16.msra.mxu1 %v4136_v0 }
0x1030   : > { %6245 = vmatprep.subr.bf16.mxu1 %v4135_v40 }
0x1033   : > { %6246 = vmatpush3.bf16.msra.mxu1 %v4135_v40 }
0x1034   : > { %6247 = vmatprep.subr.bf16.mxu1 %v4134_v41 }
0x1037   : > { %6248 = vmatpush3.bf16.msra.mxu1 %v4134_v41 }
0x1038   : > { %6249 = vmatprep.subr.bf16.mxu1 %v4133_v2 }
0x103b   : > { %6250 = vmatpush3.bf16.msra.mxu1 %v4133_v2 }
0x1070   : > { %v3496_v54 = vpop.xlane.xlu0 %3495 }
0x1071   : > { %v3518_v58 = vsub.f32 %v8628_v17, %v3496_v54 }
0x1073   : > { %v3526_v13 = vmul.f32 1.442695, %v3518_v58 }
0x1074   : > { %v3502_v39 = vpop.xlane.xlu0 %3501  ;;  %v3499_v53 = vpop.xlane.xlu1 %3498 }
0x1075   : > { %6556 = vpow2.f32 %v3526_v13  ;;  %v3520_v1 = vsub.f32 %v8630_v35, %v3502_v39  ;;  %v3519_v28 = vsub.f32 %v8634_v38, %v3499_v53 }
0x1077   : > { %v3530_v32 = vmul.f32 1.442695, %v3520_v1  ;;  %v3528_v14 = vmul.f32 1.442695, %v3519_v28 }
0x1078   : > { %v3505_v49 = vpop.xlane.xlu1 %3504  ;;  %v3508_v10 = vpop.xlane.xlu0 %3507 }
0x1079   : > { %6558 = vpow2.f32 %v3530_v32  ;;  %v3521_v46 = vsub.f32 %v8636_v24, %v3505_v49  ;;  %v3522_v34 = vsub.f32 %v8642_v51, %v3508_v10 }
0x107a   : > { %6560 = vpow2.f32 %v3528_v14 }
0x107b   : > { %v3532_v45 = vmul.f32 1.442695, %v3521_v46  ;;  %v3534_v17 = vmul.f32 1.442695, %v3522_v34 }
0x107c   : > { %v3514_v25 = vpop.xlane.xlu0 %3513  ;;  %v3511_v27 = vpop.xlane.xlu1 %3510 }
0x107d   : > { %6562 = vpow2.f32 %v3532_v45  ;;  %v3524_v59 = vsub.f32 %v8644_v50, %v3514_v25  ;;  %v3523_v35 = vsub.f32 %v8653_v18, %v3511_v27  ;;  %v5398_v27 = vld [vmem:[%s9192_s5 + $0x130] sm:$0xff] }
0x107e   : > { %6564 = vpow2.f32 %v3534_v17 }
0x107f   : > { %v3538_v38 = vmul.f32 1.442695, %v3524_v59  ;;  %v3536_v22 = vmul.f32 1.442695, %v3523_v35  ;;  %v5399_v59 = vld [vmem:[%s9192_s5 + $0x138] sm:$0xff] }
0x1080   : > { %v3517_v31 = vpop.xlane.xlu1 %3516 }
0x1081   : > { %6566 = vpow2.f32 %v3538_v38  ;;  %v3525_v7 = vsub.f32 %v8655_v42, %v3517_v31 }
0x1082   : > { %v6557_v24 = vpop.eup %6556  ;;  %6568 = vpow2.f32 %v3536_v22 }
0x1083   : > { %v3540_v51 = vmul.f32 1.442695, %v3525_v7  ;;  %v3542_v61 = vsel %vm1336_vm3, %v6557_v24, 0.0  ;;  %v3762_v7 = vpack.c.bf16 %v5399_v59, %v5398_v27 }
0x1084   : > { %3543 = vadd.xlane.f32.xlu0 %v3542_v61  ;;  %v5397_v61 = vld [vmem:[%s9192_s5 + $0x128] sm:$0xff] }
0x1085   : > { %6570 = vpow2.f32 %v3540_v51 }
0x1086   : > { %v6559_v0 = vpop.eup %6558 }
0x1087   : > { %v6561_v4 = vpop.eup %6560  ;;  %v3548_v50 = vsel %vm1336_vm3, %v6559_v0, 0.0 }
0x1088   : > { %3549 = vadd.xlane.f32.xlu0 %v3548_v50  ;;  %v3545_v18 = vsel %vm1336_vm3, %v6561_v4, 0.0 }
0x1089   : > { %3546 = vadd.xlane.f32.xlu1 %v3545_v18 }
0x108a   : > { %v6563_v29 = vpop.eup %6562 }
0x108b   : > { %v6565_v40 = vpop.eup %6564  ;;  %v3551_v9 = vsel %vm1336_vm3, %v6563_v29, 0.0 }
0x108c   : > { %v3554_v42 = vsel %vm1336_vm3, %v6565_v40, 0.0 }
0x108d   : > { %3555 = vadd.xlane.f32.xlu0 %v3554_v42  ;;  %3552 = vadd.xlane.f32.xlu1 %v3551_v9 }
0x108e   : > { %v6567_v44 = vpop.eup %6566 }
0x108f   : > { %v6569_v41 = vpop.eup %6568  ;;  %v3560_v15 = vsel %vm1336_vm3, %v6567_v44, 0.0 }
0x1090   : > { %v3557_v2 = vsel %vm1336_vm3, %v6569_v41, 0.0 }
0x1091   : > { %3561 = vadd.xlane.f32.xlu0 %v3560_v15  ;;  %3558 = vadd.xlane.f32.xlu1 %v3557_v2 }
0x1092   : > { %v6571_v54 = vpop.eup %6570 }
0x1093   : > { %v3563_v58 = vsel %vm1336_vm3, %v6571_v54, 0.0 }
0x1095   : > { %3564 = vadd.xlane.f32.xlu1 %v3563_v58 }
0x110d   : > { %v3544_v13 = vpop.xlane.xlu0 %3543 }
0x110e   : > { %6572 = vrcp.f32 %v3544_v13 }
0x1111   : > { %v3550_v39 = vpop.xlane.xlu0 %3549 }
0x1112   : > { %v3547_v53 = vpop.xlane.xlu1 %3546 }
0x1113   : > { %6574 = vrcp.f32 %v3547_v53 }
0x1114   : > { %6576 = vrcp.f32 %v3550_v39 }
0x1116   : > { %v3556_v1 = vpop.xlane.xlu0 %3555  ;;  %v3553_v28 = vpop.xlane.xlu1 %3552 }
0x1117   : > { %6578 = vrcp.f32 %v3553_v28 }
0x1118   : > { %6580 = vrcp.f32 %v3556_v1 }
0x111a   : > { %v3562_v32 = vpop.xlane.xlu0 %3561  ;;  %v3559_v14 = vpop.xlane.xlu1 %3558 }
0x111b   : > { %6582 = vrcp.f32 %v3559_v14  ;;  %v6573_v49 = vpop.eup %6572 }
0x111c   : > { %6584 = vrcp.f32 %v3562_v32  ;;  %v3574_v34 = vmul.f32 %v6573_v49, %v6557_v24  ;;  %v5396_v24 = vld [vmem:[%s9192_s5 + $0x120] sm:$0xff] }
0x111e   : > { %v3565_v10 = vpop.xlane.xlu1 %3564 }
0x111f   : > { %6586 = vrcp.f32 %v3565_v10 }
0x1120   : > { %v6575_v46 = vpop.eup %6574 }
0x1121   : > { %v3575_v45 = vmul.f32 %v6575_v46, %v6561_v4  ;;  %v6577_v17 = vpop.eup %6576 }
0x1122   : > { %v3576_v38 = vmul.f32 %v6577_v17, %v6559_v0  ;;  %v3761_v0 = vpack.c.bf16 %v5397_v61, %v5396_v24 }
0x1123   : > { %v3582_v25 = vpack.c.bf16 %v3575_v45, %v3574_v34 }
0x1124   : > { %v6579_v35 = vpop.eup %6578 }
0x1125   : > { %6155 = vmatprep.mubr.msk.bf16.mxu0 %vm1336_vm3, %v3582_v25  ;;  %v3577_v22 = vmul.f32 %v6579_v35, %v6563_v29  ;;  %v6581_v31 = vpop.eup %6580 }
0x1126   : > { %v3578_v18 = vmul.f32 %v6581_v31, %v6565_v40 }
0x1127   : > { %v3583_v51 = vpack.c.bf16 %v3577_v22, %v3576_v38  ;;  %v5401_v38 = vld [vmem:[%s9193_s6 + $0x9] ss:$0 sm:$0xff] }
0x1128   : > { %v6583_v4 = vpop.eup %6582 }
0x1129   : > { %v6585_v50 = vpop.eup %6584  ;;  %6156 = vmatmul.mubr.msk.bf16.vlgmr.msra.gmra.mxu0 %vm1336_vm3, %v3583_v51  ;;  %v3579_v9 = vmul.f32 %v6583_v4, %v6569_v41 }
0x112a   : > { %6176 = vmatpush3.bf16.msra.mxu0 %v3762_v7  ;;  %v3580_v15 = vmul.f32 %v6585_v50, %v6567_v44 }
0x112b   : > { %v3584_v42 = vpack.c.bf16 %v3579_v9, %v3578_v18  ;;  %6177 = vmatprep.subr.bf16.mxu0 %v6775_v30 }
0x112c   : > { %v6587_v29 = vpop.eup %6586 }
0x112d   : > { %v3581_v2 = vmul.f32 %v6587_v29, %v6571_v54  ;;  %6159 = vmatprep.mubr.msk.bf16.mxu0 %vm1336_vm3, %v3584_v42 }
0x112e   : > { %6178 = vmatpush3.bf16.msra.mxu0 %v3761_v0 }
0x112f   : > { %v3585_v58 = vpack.c.bf16 %v3581_v2, %v3580_v15 }
0x1131   : > { %6160 = vmatmul.mubr.msk.bf16.gmra.mxu0 %vm1336_vm3, %v3585_v58 }
0x1132   : > { %6179 = vmatprep.mubr.msk.bf16.mxu0 %vm6776_vm1, %v6775_v30 }
0x1139   : > { %6180 = vmatmul.mubr.msk.bf16.vlgmr.msra.gmra.mxu0 %vm732_vm0, %v8344_v56 }
0x113a   : > { %6183 = vmatprep.mubr.msk.bf16.mxu0 %vm6776_vm1, %v6775_v30 }
0x1141   : > { %6184 = vmatmul.mubr.msk.bf16.gmra.mxu0 %vm732_vm0, %v8375_v62 }
0x1142   : > { %6187 = vmatprep.mubr.msk.bf16.mxu0 %vm6776_vm1, %v6775_v30 }
0x1149   : > { %6188 = vmatmul.mubr.msk.bf16.gmra.mxu0 %vm732_vm0, %v8412_v3 }
0x114a   : > { %6191 = vmatprep.mubr.msk.bf16.mxu0 %vm6776_vm1, %v6775_v30 }
0x1151   : > { %6192 = vmatmul.mubr.msk.bf16.gmra.mxu0 %vm732_vm0, %v8446_v63 }
0x1152   : > { %6195 = vmatprep.mubr.msk.bf16.mxu0 %vm6776_vm1, %v6775_v30 }
0x1159   : > { %6196 = vmatmul.mubr.msk.bf16.gmra.mxu0 %vm732_vm0, %v8468_v8 }
0x115a   : > { %6233 = vmatprep.mubr.msk.bf16.mxu0 %vm1222_vm2, %v3932_v26 }
0x11e9   : > { %v8747_v56 = vpop.f32.mrf.mxu0 }
0x11eb   : > { %v8749_v62 = vpop.f32.mrf.mxu0 }
0x11ed   : > { %v8751_v3 = vpop.f32.mrf.mxu0 }
0x11ee   : > { %v3672_v63 = vpack.c.bf16 %v8751_v3, %v8747_v56 }
0x11ef   : > { %v8755_v40 = vpop.f32.mrf.mxu0 }
0x11f0   : > { %v3671_v30 = vpack.c.bf16 %v8755_v40, %v8749_v62 }
0x11f1   : > { %v8759_v8 = vpop.f32.mrf.mxu0 }
0x11f3   : > { %v8761_v44 = vpop.f32.mrf.mxu0 }
0x11f5   : > { %v8763_v60 = vpop.f32.mrf.mxu0 }
0x11f6   : > { %v3674_v6 = vpack.c.bf16 %v8763_v60, %v8759_v8 }
0x11f7   : > { %v8767_v26 = vpop.f32.mrf.mxu0 }
0x11f8   : > { %v3673_v41 = vpack.c.bf16 %v8767_v26, %v8761_v44 }
0x11f9   : > { %v3805_v54 = vpop.f32.mrf.mxu0 }
0x11fb   : > { %v6181_v13 = vpop.f32.mrf.mxu0 }
0x11fd   : > { %v3808_v39 = vpop.f32.mrf.mxu0 }
0x11ff   : > { %v6182_v53 = vpop.f32.mrf.mxu0 }
0x1200   : > { %v3809_v53 = vadd.f32 %v5401_v38, %v3808_v39 }
0x1201   : > { %v3813_v1 = vpop.f32.mrf.mxu0 }
0x1202   : > { %v3814_v2 = vadd.f32 %v5401_v38, %v3813_v1 }
0x1203   : > { %v6185_v28 = vpop.f32.mrf.mxu0 }
0x1204   : > { %v3806_v28 = vadd.f32 %v5401_v38, %v3805_v54 }
0x1205   : > { %v3816_v32 = vpop.f32.mrf.mxu0 }
0x1206   : > { %v3817_v15 = vadd.f32 %v5401_v38, %v3816_v32 }
0x1207   : > { %v6186_v14 = vpop.f32.mrf.mxu0 }
0x1208   : > { %v3937_v58 = vpack.c.bf16 %v3817_v15, %v3814_v2  ;;  %v3936_v14 = vpack.c.bf16 %v3809_v53, %v3806_v28 }
0x1209   : > { %v3821_v49 = vpop.f32.mrf.mxu0 }
0x120a   : > { %v3822_v0 = vadd.f32 %v5401_v38, %v3821_v49  ;;  %v3954_v49 = vsel %vm1222_vm2, %v3936_v14, 0 }
0x120b   : > { %v6189_v10 = vpop.f32.mrf.mxu0 }
0x120c   : > { %v3957_v10 = vsel %vm1222_vm2, %v3937_v58, 0 }
0x120d   : > { %v3824_v46 = vpop.f32.mrf.mxu0 }
0x120e   : > { %v3825_v9 = vadd.f32 %v5401_v38, %v3824_v46 }
0x120f   : > { %v6190_v34 = vpop.f32.mrf.mxu0 }
0x1210   : > { %v3938_v29 = vpack.c.bf16 %v3825_v9, %v3822_v0 }
0x1211   : > { %v3829_v45 = vpop.f32.mrf.mxu0 }
0x1212   : > { %v3830_v61 = vadd.f32 %v5401_v38, %v3829_v45  ;;  %v3960_v13 = vsel %vm1222_vm2, %v3938_v29, 0 }
0x1213   : > { %v6193_v17 = vpop.f32.mrf.mxu0 }
0x1215   : > { %v3832_v25 = vpop.f32.mrf.mxu0 }
0x1216   : > { %v3833_v31 = vadd.f32 %v5401_v38, %v3832_v25 }
0x1217   : > { %v6194_v27 = vpop.f32.mrf.mxu0 }
0x1218   : > { %v3939_v50 = vpack.c.bf16 %v3833_v31, %v3830_v61 }
0x1219   : > { %v3837_v59 = vpop.f32.mrf.mxu0 }
0x121a   : > { %v3838_v7 = vadd.f32 %v5401_v38, %v3837_v59  ;;  %v3963_v42 = vsel %vm1222_vm2, %v3939_v50, 0 }
0x121b   : > { %v6197_v35 = vpop.f32.mrf.mxu0 }
0x121d   : > { %v3840_v22 = vpop.f32.mrf.mxu0 }
0x121e   : > { %v3841_v51 = vadd.f32 %v5401_v38, %v3840_v22 }
0x121f   : > { %v6198_v24 = vpop.f32.mrf.mxu0 }
0x1220   : > { %v3940_v4 = vpack.c.bf16 %v3841_v51, %v3838_v7 }
0x1222   : > { %6328 = vmatprep.subr.msk.bf16.mxu0 %vm1222_vm2, %v3940_v4  ;;  %v3966_v18 = vsel %vm1222_vm2, %v3940_v4, 0 }
0x1223   : > { %6224 = vmatpush3.bf16.xpose.msra.mxu0 %v3966_v18 }
0x1224   : > { %6329 = vmatprep.subr.msk.bf16.mxu0 %vm1222_vm2, %v3939_v50 }
0x122b   : > { %6226 = vmatpush3.bf16.xpose.msra.mxu0 %v3963_v42 }
0x122c   : > { %6330 = vmatprep.subr.msk.bf16.mxu0 %vm1222_vm2, %v3938_v29 }
0x1233   : > { %6228 = vmatpush3.bf16.xpose.msra.mxu0 %v3960_v13 }
0x1234   : > { %6331 = vmatprep.subr.msk.bf16.mxu0 %vm1222_vm2, %v3937_v58 }
0x123b   : > { %6230 = vmatpush3.bf16.xpose.msra.mxu0 %v3957_v10 }
0x123c   : > { %6332 = vmatprep.subr.msk.bf16.mxu0 %vm1222_vm2, %v3936_v14 }
0x1243   : > { %6232 = vmatpush3.bf16.xpose.msra.mxu0 %v3954_v49 }
0x124a   : > { %6234 = vmatmul.mubr.msk.bf16.vlgmr.msra.gmra.mxu0 %vm1222_vm2, %v3933_v52 }
0x124b   : > { %6237 = vmatprep.mubr.msk.bf16.mxu0 %vm1222_vm2, %v3934_v23 }
0x1252   : > { %6238 = vmatmul.mubr.msk.bf16.gmra.mxu0 %vm1222_vm2, %v3935_v20 }
0x130a   : > { %v6235_v54 = vpop.f32.mrf.mxu0 }
0x130b   : > { %v4035_v46 = vmul.f32 0.25, %v6235_v54 }
0x130c   : > { %v4002_v39 = vpop.f32.mrf.mxu0 }
0x130d   : > { %v4033_v1 = vmul.f32 0.25, %v4002_v39  ;;  %v4047_v16 = vsel %vm1336_vm3, %v4035_v46, -inf }
0x130e   : > { %v6236_v32 = vpop.f32.mrf.mxu0 }
0x130f   : > { %v4041_v34 = vsel %vm1336_vm3, %v4033_v1, -inf  ;;  %v4036_v45 = vmul.f32 0.25, %v6236_v32 }
0x1310   : > { %4042 = vmax.xlane.f32.xlu0 %v4041_v34  ;;  %v4005_v37 = vpop.f32.mrf.mxu0 }
0x1311   : > { %v4034_v36 = vmul.f32 0.25, %v4005_v37  ;;  %v4050_v17 = vsel %vm1336_vm3, %v4036_v45, -inf }
0x1312   : > { %v6239_v52 = vpop.f32.mrf.mxu0 }
0x1313   : > { %v4044_v21 = vsel %vm1336_vm3, %v4034_v36, -inf  ;;  %v4039_v23 = vmul.f32 0.25, %v6239_v52 }
0x1314   : > { %4048 = vmax.xlane.f32.xlu0 %v4047_v16  ;;  %4045 = vmax.xlane.f32.xlu1 %v4044_v21  ;;  %v4018_v47 = vpop.f32.mrf.mxu0 }
0x1315   : > { %v4037_v5 = vmul.f32 0.25, %v4018_v47  ;;  %v4059_v38 = vsel %vm1336_vm3, %v4039_v23, -inf }
0x1316   : > { %v6240_v20 = vpop.f32.mrf.mxu0 }
0x1317   : > { %v4053_v25 = vsel %vm1336_vm3, %v4037_v5, -inf  ;;  %v4040_v35 = vmul.f32 0.25, %v6240_v20 }
0x1318   : > { %4051 = vmax.xlane.f32.xlu1 %v4050_v17  ;;  %4054 = vmax.xlane.f32.xlu0 %v4053_v25  ;;  %v4021_v27 = vpop.f32.mrf.mxu0 }
0x1319   : > { %v4038_v59 = vmul.f32 0.25, %v4021_v27  ;;  %v4062_v31 = vsel %vm1336_vm3, %v4040_v35, -inf }
0x131b   : > { %v4056_v22 = vsel %vm1336_vm3, %v4038_v59, -inf }
0x131c   : > { %4060 = vmax.xlane.f32.xlu0 %v4059_v38  ;;  %4057 = vmax.xlane.f32.xlu1 %v4056_v22  ;;  %v5385_v38 = vld [vmem:[%s9194_s7 + $0x28] sm:$0xff] }
0x1320   : > { %4063 = vmax.xlane.f32.xlu1 %v4062_v31  ;;  %v5426_v31 = vld [vmem:[%s9194_s7 + $0x30] sm:$0xff] }
0x1399   : > { %v4043_v7 = vpop.xlane.xlu0 %4042 }
0x139a   : > { %v4065_v51 = vsub.f32 %v4033_v1, %v4043_v7  ;;  %v5427_v7 = vld [vmem:[%s9194_s7 + $0x38] sm:$0xff] }
0x139c   : > { %v4073_v24 = vmul.f32 1.442695, %v4065_v51  ;;  %v4222_v51 = vpack.c.bf16 %v5427_v7, %v5426_v31 }
0x139d   : > { %v4049_v61 = vpop.xlane.xlu0 %4048  ;;  %v4046_v4 = vpop.xlane.xlu1 %4045 }
0x139e   : > { %6588 = vpow2.f32 %v4073_v24  ;;  %v4067_v50 = vsub.f32 %v4035_v46, %v4049_v61  ;;  %v4066_v18 = vsub.f32 %v4034_v36, %v4046_v4  ;;  %6259 = vmatprep.subr.bf16.mxu0 %v4222_v51 }
0x139f   : > { %6260 = vmatpush3.bf16.msra.mxu0 %v4222_v51 }
0x13a0   : > { %v4077_v9 = vmul.f32 1.442695, %v4067_v50  ;;  %v4075_v0 = vmul.f32 1.442695, %v4066_v18 }
0x13a1   : > { %v4052_v29 = vpop.xlane.xlu1 %4051  ;;  %v4055_v42 = vpop.xlane.xlu0 %4054 }
0x13a2   : > { %6590 = vpow2.f32 %v4077_v9  ;;  %v4068_v15 = vsub.f32 %v4036_v45, %v4052_v29  ;;  %v4069_v2 = vsub.f32 %v4037_v5, %v4055_v42 }
0x13a3   : > { %6592 = vpow2.f32 %v4075_v0 }
0x13a4   : > { %v4079_v58 = vmul.f32 1.442695, %v4068_v15  ;;  %v4081_v13 = vmul.f32 1.442695, %v4069_v2 }
0x13a5   : > { %v4061_v53 = vpop.xlane.xlu0 %4060  ;;  %v4058_v28 = vpop.xlane.xlu1 %4057 }
0x13a6   : > { %6594 = vpow2.f32 %v4079_v58  ;;  %v4071_v14 = vsub.f32 %v4039_v23, %v4061_v53  ;;  %v4070_v10 = vsub.f32 %v4038_v59, %v4058_v28 }
0x13a7   : > { %6596 = vpow2.f32 %v4081_v13 }
0x13a8   : > { %v4085_v49 = vmul.f32 1.442695, %v4071_v14  ;;  %v4083_v54 = vmul.f32 1.442695, %v4070_v10 }
0x13a9   : > { %v4064_v39 = vpop.xlane.xlu1 %4063 }
0x13aa   : > { %6598 = vpow2.f32 %v4085_v49  ;;  %v4072_v1 = vsub.f32 %v4040_v35, %v4064_v39  ;;  %v5384_v35 = vld [vmem:[%s9194_s7 + $0x20] sm:$0xff] }
0x13ab   : > { %v6589_v32 = vpop.eup %6588  ;;  %6600 = vpow2.f32 %v4083_v54  ;;  %v3675_v22 = vpack.c.bf16 %v5385_v38, %v5384_v35 }
0x13ac   : > { %v4087_v46 = vmul.f32 1.442695, %v4072_v1  ;;  %v4089_v34 = vsel %vm1336_vm3, %v6589_v32, 0.0 }
0x13ad   : > { %4090 = vadd.xlane.f32.xlu0 %v4089_v34  ;;  %6269 = vmatprep.subr.bf16.mxu1 %v3675_v22 }
0x13ae   : > { %6602 = vpow2.f32 %v4087_v46 }
0x13af   : > { %v6591_v37 = vpop.eup %6590 }
0x13b0   : > { %v6593_v36 = vpop.eup %6592  ;;  %v4095_v52 = vsel %vm1336_vm3, %v6591_v37, 0.0 }
0x13b1   : > { %4096 = vadd.xlane.f32.xlu0 %v4095_v52  ;;  %v4092_v45 = vsel %vm1336_vm3, %v6593_v36, 0.0 }
0x13b2   : > { %4093 = vadd.xlane.f32.xlu1 %v4092_v45 }
0x13b3   : > { %v6595_v16 = vpop.eup %6594 }
0x13b4   : > { %v6597_v21 = vpop.eup %6596  ;;  %v4098_v47 = vsel %vm1336_vm3, %v6595_v16, 0.0 }
0x13b5   : > { %v4101_v5 = vsel %vm1336_vm3, %v6597_v21, 0.0 }
0x13b6   : > { %4102 = vadd.xlane.f32.xlu0 %v4101_v5  ;;  %4099 = vadd.xlane.f32.xlu1 %v4098_v47 }
0x13b7   : > { %v6599_v20 = vpop.eup %6598 }
0x13b8   : > { %v6601_v23 = vpop.eup %6600  ;;  %v4107_v17 = vsel %vm1336_vm3, %v6599_v20, 0.0 }
0x13b9   : > { %v4104_v25 = vsel %vm1336_vm3, %v6601_v23, 0.0 }
0x13ba   : > { %4108 = vadd.xlane.f32.xlu0 %v4107_v17  ;;  %4105 = vadd.xlane.f32.xlu1 %v4104_v25  ;;  %v5437_v17 = vld [vmem:[%s9191_s4 + $0xe] ss:$0 sm:$0xff] }
0x13bb   : > { %v6603_v27 = vpop.eup %6602 }
0x13bc   : > { %v4110_v59 = vsel %vm1336_vm3, %v6603_v27, 0.0 }
0x13be   : > { %4111 = vadd.xlane.f32.xlu1 %v4110_v59 }
0x1436   : > { %v4091_v24 = vpop.xlane.xlu0 %4090 }
0x1437   : > { %6604 = vrcp.f32 %v4091_v24 }
0x143a   : > { %v4097_v61 = vpop.xlane.xlu0 %4096 }
0x143b   : > { %v4094_v4 = vpop.xlane.xlu1 %4093 }
0x143c   : > { %6606 = vrcp.f32 %v4094_v4 }
0x143d   : > { %6608 = vrcp.f32 %v4097_v61 }
0x143f   : > { %v4103_v50 = vpop.xlane.xlu0 %4102  ;;  %v4100_v18 = vpop.xlane.xlu1 %4099 }
0x1440   : > { %6610 = vrcp.f32 %v4100_v18 }
0x1441   : > { %6612 = vrcp.f32 %v4103_v50 }
0x1443   : > { %v4109_v9 = vpop.xlane.xlu0 %4108  ;;  %v4106_v0 = vpop.xlane.xlu1 %4105 }
0x1444   : > { %6614 = vrcp.f32 %v4106_v0  ;;  %v6605_v29 = vpop.eup %6604 }
0x1445   : > { %6616 = vrcp.f32 %v4109_v9  ;;  %v4121_v2 = vmul.f32 %v6605_v29, %v6589_v32 }
0x1447   : > { %v4112_v42 = vpop.xlane.xlu1 %4111 }
0x1448   : > { %6618 = vrcp.f32 %v4112_v42 }
0x1449   : > { %v6607_v15 = vpop.eup %6606 }
0x144a   : > { %v4122_v58 = vmul.f32 %v6607_v15, %v6593_v36  ;;  %v6609_v13 = vpop.eup %6608 }
0x144b   : > { %v4123_v14 = vmul.f32 %v6609_v13, %v6591_v37 }
0x144c   : > { %v4129_v53 = vpack.c.bf16 %v4122_v58, %v4121_v2 }
0x144d   : > { %v6611_v28 = vpop.eup %6610 }
0x144e   : > { %6251 = vmatprep.mubr.msk.bf16.mxu1 %vm1336_vm3, %v4129_v53  ;;  %v4124_v10 = vmul.f32 %v6611_v28, %v6595_v16  ;;  %v6613_v49 = vpop.eup %6612 }
0x144f   : > { %v4125_v46 = vmul.f32 %v6613_v49, %v6597_v21 }
0x1450   : > { %v4130_v54 = vpack.c.bf16 %v4124_v10, %v4123_v14 }
0x1451   : > { %v6615_v39 = vpop.eup %6614 }
0x1452   : > { %v6617_v1 = vpop.eup %6616  ;;  %6252 = vmatmul.mubr.msk.bf16.vlgmr.msra.gmra.mxu1 %vm1336_vm3, %v4130_v54  ;;  %v4126_v34 = vmul.f32 %v6615_v39, %v6601_v23 }
0x1453   : > { %6270 = vmatpush3.bf16.msra.mxu1 %v3675_v22  ;;  %v4127_v32 = vmul.f32 %v6617_v1, %v6599_v20 }
0x1454   : > { %v4131_v45 = vpack.c.bf16 %v4126_v34, %v4125_v46 }
0x1455   : > { %v6619_v52 = vpop.eup %6618 }
0x1456   : > { %v4128_v36 = vmul.f32 %v6619_v52, %v6603_v27  ;;  %6255 = vmatprep.mubr.msk.bf16.mxu1 %vm1336_vm3, %v4131_v45 }
0x1458   : > { %v4132_v47 = vpack.c.bf16 %v4128_v36, %v4127_v32 }
0x145a   : > { %6256 = vmatmul.mubr.msk.bf16.gmra.mxu1 %vm1336_vm3, %v4132_v47 }
0x145b   : > { %6271 = vmatprep.mubr.msk.bf16.mxu1 %vm1222_vm2, %v3671_v30 }
0x1462   : > { %6272 = vmatmul.mubr.msk.bf16.vlgmr.msra.gmra.mxu1 %vm1222_vm2, %v3672_v63 }
0x1463   : > { %6275 = vmatprep.mubr.msk.bf16.mxu1 %vm1222_vm2, %v3673_v41 }
0x146a   : > { %6276 = vmatmul.mubr.msk.bf16.gmra.mxu1 %vm1222_vm2, %v3674_v6 }
0x1512   : > { %v6253_v37 = vpop.f32.mrf.mxu1 }
0x1514   : > { %v4184_v16 = vpop.f32.mrf.mxu1 }
0x1516   : > { %v6254_v62 = vpop.f32.mrf.mxu1 }
0x1517   : > { %v4219_v21 = vpack.c.bf16 %v6254_v62, %v6253_v37 }
0x1518   : > { %v4187_v40 = vpop.f32.mrf.mxu1 }
0x1519   : > { %v4218_v30 = vpack.c.bf16 %v4187_v40, %v4184_v16 }
0x151a   : > { %v6257_v5 = vpop.f32.mrf.mxu1 }
0x151b   : > { %6261 = vmatprep.mubr.msk.bf16.mxu0 %vm1222_vm2, %v4218_v30 }
0x151c   : > { %v4200_v56 = vpop.f32.mrf.mxu1  ;;  %6262 = vmatmul.mubr.msk.bf16.vlgmr.msra.gmra.mxu0 %vm1222_vm2, %v4219_v21 }
0x151e   : > { %v6258_v3 = vpop.f32.mrf.mxu1 }
0x151f   : > { %v4221_v26 = vpack.c.bf16 %v6258_v3, %v6257_v5 }
0x1520   : > { %v4203_v63 = vpop.f32.mrf.mxu1 }
0x1521   : > { %v4220_v44 = vpack.c.bf16 %v4203_v63, %v4200_v56 }
0x1522   : > { %v6273_v8 = vpop.f32.mrf.mxu1 }
0x1523   : > { %6265 = vmatprep.mubr.msk.bf16.mxu0 %vm1222_vm2, %v4220_v44 }
0x1524   : > { %6266 = vmatmul.mubr.msk.bf16.gmra.mxu0 %vm1222_vm2, %v4221_v26  ;;  %v4346_v60 = vpop.f32.mrf.mxu1 }
0x1526   : > { %v6274_v6 = vpop.f32.mrf.mxu1 }
0x1528   : > { %v4349_v41 = vpop.f32.mrf.mxu1 }
0x152a   : > { %v6277_v25 = vpop.f32.mrf.mxu1 }
0x152c   : > { %v4362_v7 = vpop.f32.mrf.mxu1 }
0x152e   : > { %v6278_v42 = vpop.f32.mrf.mxu1 }
0x1530   : > { %v4365_v49 = vpop.f32.mrf.mxu1 }
0x15dc   : > { %v6263_v20 = vpop.f32.mrf.mxu0 }
0x15dd   : > { %v4355_v23 = vadd.f32 %v6273_v8, %v6263_v20 }
0x15de   : > { %v4269_v27 = vpop.f32.mrf.mxu0 }
0x15df   : > { %v4347_v59 = vadd.f32 %v4346_v60, %v4269_v27  ;;  %v4387_v35 = vadd.f32 %v5437_v17, %v4355_v23 }
0x15e0   : > { %v6264_v38 = vpop.f32.mrf.mxu0 }
0x15e1   : > { %v4385_v22 = vadd.f32 %v5437_v17, %v4347_v59  ;;  %v4358_v31 = vadd.f32 %v6274_v6, %v6264_v38  ;;  %v8855_v4 = vadd.f32 %v4387_v35, %v8189_v55 }
0x15e2   : > { %v4272_v51 = vpop.f32.mrf.mxu0 }
0x15e3   : > { %v8852_v24 = vadd.f32 %v4385_v22, %v8179_v48  ;;  %v4350_v61 = vadd.f32 %v4349_v41, %v4272_v51  ;;  %v4388_v50 = vadd.f32 %v5437_v17, %v4358_v31  ;;  %v4407_v55 = vsel %vm732_vm0, %v8855_v4, 0.0 }
0x15e4   : > { %v6267_v18 = vpop.f32.mrf.mxu0 }
0x15e5   : > { %v4386_v9 = vadd.f32 %v5437_v17, %v4350_v61  ;;  %v4371_v0 = vadd.f32 %v6277_v25, %v6267_v18  ;;  %v4401_v29 = vsel %vm732_vm0, %v8852_v24, 0.0  ;;  %v8863_v48 = vadd.f32 %v4388_v50, %v8194_v12 }
0x15e6   : > { %4402 = vadd.xlane.f32.xlu0 %v4401_v29  ;;  %v4285_v15 = vpop.f32.mrf.mxu0 }
0x15e7   : > { %v8860_v2 = vadd.f32 %v4386_v9, %v8184_v33  ;;  %v4363_v58 = vadd.f32 %v4362_v7, %v4285_v15  ;;  %v4391_v53 = vadd.f32 %v5437_v17, %v4371_v0  ;;  %v4410_v12 = vsel %vm732_vm0, %v8863_v48, 0.0 }
0x15e8   : > { %v6268_v13 = vpop.f32.mrf.mxu0 }
0x15e9   : > { %v4389_v28 = vadd.f32 %v5437_v17, %v4363_v58  ;;  %v4374_v14 = vadd.f32 %v6278_v42, %v6268_v13  ;;  %v4404_v10 = vsel %vm732_vm0, %v8860_v2, 0.0  ;;  %v8875_v1 = vadd.f32 %v4391_v53, %v8209_v19  ;;  %v5444_v13 = vld [vmem:[%s9195_s8 + $0x30] sm:$0xff] }
0x15ea   : > { %4405 = vadd.xlane.f32.xlu1 %v4404_v10  ;;  %4408 = vadd.xlane.f32.xlu0 %v4407_v55  ;;  %v4288_v54 = vpop.f32.mrf.mxu0  ;;  %v5445_v55 = vld [vmem:[%s9195_s8 + $0x38] sm:$0xff] }
0x15eb   : > { %v8870_v33 = vadd.f32 %v4389_v28, %v8199_v11  ;;  %v4366_v39 = vadd.f32 %v4365_v49, %v4288_v54  ;;  %v4392_v46 = vadd.f32 %v5437_v17, %v4374_v14  ;;  %v4419_v19 = vsel %vm732_vm0, %v8875_v1, 0.0  ;;  %v5442_v28 = vld [vmem:[%s9195_s8 + $0x20] sm:$0xff]  ;;  %v5443_v14 = vld [vmem:[%s9195_s8 + $0x28] sm:$0xff] }
0x15ec   : > { %v4547_v53 = vpack.c.bf16 %v5445_v55, %v5444_v13  ;;  %v4546_v10 = vpack.c.bf16 %v5443_v14, %v5442_v28 }
0x15ed   : > { %v4390_v34 = vadd.f32 %v5437_v17, %v4366_v39  ;;  %v4413_v52 = vsel %vm732_vm0, %v8870_v33, 0.0  ;;  %v8883_v11 = vadd.f32 %v4392_v46, %v8214_v57 }
0x15ee   : > { %4411 = vadd.xlane.f32.xlu1 %v4410_v12  ;;  %4414 = vadd.xlane.f32.xlu0 %v4413_v52 }
0x15ef   : > { %v8880_v45 = vadd.f32 %v4390_v34, %v8204_v43  ;;  %v4422_v36 = vsel %vm732_vm0, %v8883_v11, 0.0  ;;  %6279 = vmatprep.subr.bf16.mxu0 %v4547_v53 }
0x15f0   : > { %6280 = vmatpush3.bf16.msra.mxu0 %v4547_v53 }
0x15f1   : > { %v4416_v32 = vsel %vm732_vm0, %v8880_v45, 0.0  ;;  %6281 = vmatprep.subr.bf16.mxu0 %v4546_v10 }
0x15f2   : > { %4417 = vadd.xlane.f32.xlu1 %v4416_v32  ;;  %4420 = vadd.xlane.f32.xlu0 %v4419_v19 }
0x15f4   : > { %6282 = vmatpush3.bf16.msra.mxu0 %v4546_v10 }
0x15f6   : > { %4423 = vadd.xlane.f32.xlu1 %v4422_v36 }
0x166f   : > { %v4403_v47 = vpop.xlane.xlu0 %4402 }
0x1670   : > { %v4425_v37 = vmul.f32 0.03125, %v4403_v47 }
0x1672   : > { %v8892_v43 = vsub.f32 %v8852_v24, %v4425_v37 }
0x1673   : > { %v4406_v16 = vpop.xlane.xlu1 %4405  ;;  %v4409_v57 = vpop.xlane.xlu0 %4408 }
0x1674   : > { %v4426_v62 = vmul.f32 0.03125, %v4406_v16  ;;  %v4427_v40 = vmul.f32 0.03125, %v4409_v57  ;;  %v4441_v30 = vmul.f32 %v8892_v43, %v8892_v43 }
0x1676   : > { %v8897_v21 = vsub.f32 %v8860_v2, %v4426_v62  ;;  %v8900_v5 = vsub.f32 %v8855_v4, %v4427_v40  ;;  %v4449_v56 = vsel %vm732_vm0, %v4441_v30, 0.0 }
0x1677   : > { %v4412_v3 = vpop.xlane.xlu1 %4411  ;;  %4450 = vadd.xlane.f32.xlu0 %v4449_v56  ;;  %v4415_v63 = vpop.xlane.xlu0 %4414 }
0x1678   : > { %v4428_v44 = vmul.f32 0.03125, %v4412_v3  ;;  %v4429_v26 = vmul.f32 0.03125, %v4415_v63  ;;  %v4442_v8 = vmul.f32 %v8897_v21, %v8897_v21  ;;  %v4443_v60 = vmul.f32 %v8900_v5, %v8900_v5 }
0x167a   : > { %v8908_v6 = vsub.f32 %v8863_v48, %v4428_v44  ;;  %v8911_v41 = vsub.f32 %v8870_v33, %v4429_v26  ;;  %v4452_v20 = vsel %vm732_vm0, %v4442_v8, 0.0  ;;  %v4455_v23 = vsel %vm732_vm0, %v4443_v60, 0.0 }
0x167b   : > { %4453 = vadd.xlane.f32.xlu1 %v4452_v20  ;;  %v4418_v17 = vpop.xlane.xlu1 %4417  ;;  %4456 = vadd.xlane.f32.xlu0 %v4455_v23  ;;  %v4421_v25 = vpop.xlane.xlu0 %4420 }
0x167c   : > { %v4430_v27 = vmul.f32 0.03125, %v4418_v17  ;;  %v4431_v59 = vmul.f32 0.03125, %v4421_v25  ;;  %v4444_v35 = vmul.f32 %v8908_v6, %v8908_v6  ;;  %v4445_v38 = vmul.f32 %v8911_v41, %v8911_v41  ;;  %v5439_v17 = vld [vmem:[%s9191_s4 + $0xc] ss:$0 sm:$0xff] }
0x167e   : > { %v8920_v22 = vsub.f32 %v8880_v45, %v4430_v27  ;;  %v8923_v31 = vsub.f32 %v8875_v1, %v4431_v59  ;;  %v4458_v7 = vsel %vm732_vm0, %v4444_v35, 0.0  ;;  %v4461_v51 = vsel %vm732_vm0, %v4445_v38, 0.0  ;;  %v5441_v38 = vld [vmem:[%s9191_s4 + $0xd] ss:$0 sm:$0xff] }
0x167f   : > { %4459 = vadd.xlane.f32.xlu1 %v4458_v7  ;;  %v4424_v61 = vpop.xlane.xlu1 %4423  ;;  %4462 = vadd.xlane.f32.xlu0 %v4461_v51 }
0x1680   : > { %v4432_v50 = vmul.f32 0.03125, %v4424_v61  ;;  %v4446_v18 = vmul.f32 %v8920_v22, %v8920_v22  ;;  %v4447_v9 = vmul.f32 %v8923_v31, %v8923_v31 }
0x1682   : > { %v8932_v0 = vsub.f32 %v8883_v11, %v4432_v50  ;;  %v4464_v29 = vsel %vm732_vm0, %v4446_v18, 0.0  ;;  %v4467_v42 = vsel %vm732_vm0, %v4447_v9, 0.0 }
0x1683   : > { %4465 = vadd.xlane.f32.xlu1 %v4464_v29  ;;  %4468 = vadd.xlane.f32.xlu0 %v4467_v42 }
0x1684   : > { %v4448_v15 = vmul.f32 %v8932_v0, %v8932_v0 }
0x1686   : > { %v4470_v58 = vsel %vm732_vm0, %v4448_v15, 0.0 }
0x1687   : > { %4471 = vadd.xlane.f32.xlu1 %v4470_v58 }
0x1700   : > { %v4451_v49 = vpop.xlane.xlu0 %4450 }
0x1701   : > { %v4473_v54 = vmul.f32 0.03125, %v4451_v49 }
0x1703   : > { %v4481_v39 = vadd.f32 1e-05, %v4473_v54 }
0x1704   : > { %v4454_v12 = vpop.xlane.xlu1 %4453  ;;  %v4457_v46 = vpop.xlane.xlu0 %4456 }
0x1705   : > { %6620 = vrsqrt.f32 %v4481_v39  ;;  %v4474_v34 = vmul.f32 0.03125, %v4454_v12  ;;  %v4475_v52 = vmul.f32 0.03125, %v4457_v46 }
0x1707   : > { %v4482_v32 = vadd.f32 1e-05, %v4474_v34  ;;  %v4483_v19 = vadd.f32 1e-05, %v4475_v52 }
0x1708   : > { %v4460_v36 = vpop.xlane.xlu1 %4459  ;;  %v4463_v47 = vpop.xlane.xlu0 %4462 }
0x1709   : > { %6622 = vrsqrt.f32 %v4482_v32  ;;  %v4476_v37 = vmul.f32 0.03125, %v4460_v36  ;;  %v4477_v16 = vmul.f32 0.03125, %v4463_v47  ;;  %v5456_v36 = vld [vmem:[%s9197_s10 + $0x60] sm:$0xff]  ;;  %v5457_v47 = vld [vmem:[%s9197_s10 + $0x68] sm:$0xff] }
0x170a   : > { %6624 = vrsqrt.f32 %v4483_v19 }
0x170b   : > { %v4484_v57 = vadd.f32 1e-05, %v4476_v37  ;;  %v4485_v62 = vadd.f32 1e-05, %v4477_v16  ;;  %v4720_v37 = vpack.c.bf16 %v5457_v47, %v5456_v36  ;;  %v5454_v16 = vld [vmem:[%s9197_s10 + $0x50] sm:$0xff] }
0x170c   : > { %v4466_v40 = vpop.xlane.xlu1 %4465  ;;  %v4469_v30 = vpop.xlane.xlu0 %4468 }
0x170d   : > { %6626 = vrsqrt.f32 %v4484_v57  ;;  %v4478_v56 = vmul.f32 0.03125, %v4466_v40  ;;  %v4479_v3 = vmul.f32 0.03125, %v4469_v30  ;;  %v5455_v57 = vld [vmem:[%s9197_s10 + $0x58] sm:$0xff]  ;;  %v5452_v40 = vld [vmem:[%s9197_s10 + $0x40] sm:$0xff]  ;;  %v5453_v30 = vld [vmem:[%s9197_s10 + $0x48] sm:$0xff] }
0x170e   : > { %6628 = vrsqrt.f32 %v4485_v62  ;;  %v4719_v62 = vpack.c.bf16 %v5455_v57, %v5454_v16 }
0x170f   : > { %v4486_v63 = vadd.f32 1e-05, %v4478_v56  ;;  %v4487_v44 = vadd.f32 1e-05, %v4479_v3  ;;  %v4718_v56 = vpack.c.bf16 %v5453_v30, %v5452_v40  ;;  %v5447_v3 = vld [vmem:[%s9196_s9 + $0x1] ss:$0 sm:$0xff] }
0x1710   : > { %v4472_v26 = vpop.xlane.xlu1 %4471 }
0x1711   : > { %6630 = vrsqrt.f32 %v4486_v63  ;;  %v4480_v8 = vmul.f32 0.03125, %v4472_v26 }
0x1712   : > { %v6621_v60 = vpop.eup %6620  ;;  %6632 = vrsqrt.f32 %v4487_v44 }
0x1713   : > { %v4488_v20 = vadd.f32 1e-05, %v4480_v8  ;;  %v4497_v23 = vmul.f32 %v6621_v60, %v8892_v43 }
0x1715   : > { %6634 = vrsqrt.f32 %v4488_v20  ;;  %v4513_v35 = vmul.f32 %v5439_v17, %v4497_v23 }
0x1716   : > { %v6623_v25 = vpop.eup %6622 }
0x1717   : > { %v6625_v27 = vpop.eup %6624  ;;  %v4498_v59 = vmul.f32 %v6623_v25, %v8897_v21  ;;  %v4529_v9 = vadd.f32 %v5441_v38, %v4513_v35 }
0x1718   : > { %v4499_v7 = vmul.f32 %v6625_v27, %v8900_v5 }
0x1719   : > { %v4514_v51 = vmul.f32 %v5439_v17, %v4498_v59 }
0x171a   : > { %v6627_v61 = vpop.eup %6626  ;;  %v4515_v43 = vmul.f32 %v5439_v17, %v4499_v7 }
0x171b   : > { %v6629_v50 = vpop.eup %6628  ;;  %v4500_v18 = vmul.f32 %v6627_v61, %v8908_v6  ;;  %v4530_v29 = vadd.f32 %v5441_v38, %v4514_v51 }
0x171c   : > { %v4501_v42 = vmul.f32 %v6629_v50, %v8911_v41  ;;  %v4531_v55 = vadd.f32 %v5441_v38, %v4515_v43 }
0x171d   : > { %v4516_v15 = vmul.f32 %v5439_v17, %v4500_v18  ;;  %v4542_v58 = vpack.c.bf16 %v4530_v29, %v4529_v9 }
0x171e   : > { %v6631_v21 = vpop.eup %6630  ;;  %v4517_v28 = vmul.f32 %v5439_v17, %v4501_v42 }
0x171f   : > { %v6633_v13 = vpop.eup %6632  ;;  %v4532_v53 = vadd.f32 %v5441_v38, %v4516_v15  ;;  %6283 = vmatprep.mubr.msk.bf16.mxu0 %vm732_vm0, %v4542_v58  ;;  %v4502_v5 = vmul.f32 %v6631_v21, %v8920_v22 }
0x1720   : > { %v4503_v14 = vmul.f32 %v6633_v13, %v8923_v31  ;;  %v4533_v41 = vadd.f32 %v5441_v38, %v4517_v28  ;;  %v5458_v31 = vld [vmem:[%s9197_s10 + $0x70] sm:$0xff] }
0x1721   : > { %v4543_v10 = vpack.c.bf16 %v4532_v53, %v4531_v55  ;;  %v4518_v49 = vmul.f32 %v5439_v17, %v4502_v5 }
0x1722   : > { %v6635_v6 = vpop.eup %6634  ;;  %v4519_v12 = vmul.f32 %v5439_v17, %v4503_v14 }
0x1723   : > { %v4504_v54 = vmul.f32 %v6635_v6, %v8932_v0  ;;  %6284 = vmatmul.mubr.msk.bf16.vlgmr.msra.gmra.mxu0 %vm732_vm0, %v4543_v10  ;;  %v4534_v39 = vadd.f32 %v5441_v38, %v4518_v49  ;;  %v5459_v0 = vld [vmem:[%s9197_s10 + $0x78] sm:$0xff] }
0x1724   : > { %v4535_v52 = vadd.f32 %v5441_v38, %v4519_v12  ;;  %v4721_v19 = vpack.c.bf16 %v5459_v0, %v5458_v31 }
0x1725   : > { %v4544_v46 = vpack.c.bf16 %v4534_v39, %v4533_v41  ;;  %v4520_v34 = vmul.f32 %v5439_v17, %v4504_v54 }
0x1726   : > { %6291 = vmatprep.subr.bf16.mxu1 %v4721_v19 }
0x1727   : > { %6287 = vmatprep.mubr.msk.bf16.mxu0 %vm732_vm0, %v4544_v46  ;;  %v4536_v32 = vadd.f32 %v5441_v38, %v4520_v34  ;;  %6292 = vmatpush3.bf16.msra.mxu1 %v4721_v19 }
0x1728   : > { %6293 = vmatprep.subr.bf16.mxu1 %v4720_v37 }
0x1729   : > { %v4545_v22 = vpack.c.bf16 %v4536_v32, %v4535_v52 }
0x172b   : > { %6288 = vmatmul.mubr.msk.bf16.gmra.mxu0 %vm732_vm0, %v4545_v22  ;;  %6294 = vmatpush3.bf16.msra.mxu1 %v4720_v37 }
0x172c   : > { %6295 = vmatprep.subr.bf16.mxu1 %v4719_v62 }
0x172f   : > { %6296 = vmatpush3.bf16.msra.mxu1 %v4719_v62 }
0x1730   : > { %6297 = vmatprep.subr.bf16.mxu1 %v4718_v56 }
0x1733   : > { %6298 = vmatpush3.bf16.msra.mxu1 %v4718_v56 }
0x17e3   : > { %v6285_v63 = vpop.f32.mrf.mxu0 }
0x17e4   : > { %v8996_v44 = vadd.f32 %v6285_v63, %v5447_v3 }
0x17e5   : > { %v4602_v26 = vpop.f32.mrf.mxu0 }
0x17e6   : > { %v4635_v8 = vmul.f32 %v8996_v44, %v8996_v44  ;;  %v9000_v60 = vadd.f32 %v5447_v3, %v4602_v26 }
0x17e7   : > { %v6286_v20 = vpop.f32.mrf.mxu0 }
0x17e8   : > { %v4643_v23 = vmul.f32 %v4635_v8, %v8996_v44  ;;  %v4633_v17 = vmul.f32 %v9000_v60, %v9000_v60  ;;  %v9005_v25 = vadd.f32 %v6286_v20, %v5447_v3 }
0x17e9   : > { %v4605_v27 = vpop.f32.mrf.mxu0 }
0x17ea   : > { %v4651_v59 = vmul.f32 0.044715, %v4643_v23  ;;  %v4641_v35 = vmul.f32 %v4633_v17, %v9000_v60  ;;  %v4636_v38 = vmul.f32 %v9005_v25, %v9005_v25  ;;  %v9010_v7 = vadd.f32 %v5447_v3, %v4605_v27 }
0x17eb   : > { %v6289_v51 = vpop.f32.mrf.mxu0 }
0x17ec   : > { %v4659_v61 = vadd.f32 %v4651_v59, %v8996_v44  ;;  %v4649_v50 = vmul.f32 0.044715, %v4641_v35  ;;  %v4644_v43 = vmul.f32 %v4636_v38, %v9005_v25  ;;  %v4634_v18 = vmul.f32 %v9010_v7, %v9010_v7 }
0x17ed   : > { %v9016_v9 = vadd.f32 %v6289_v51, %v5447_v3  ;;  %v4618_v29 = vpop.f32.mrf.mxu0 }
0x17ee   : > { %v4667_v42 = vmul.f32 0.7978846, %v4659_v61  ;;  %v4657_v15 = vadd.f32 %v4649_v50, %v9000_v60  ;;  %v4652_v58 = vmul.f32 0.044715, %v4644_v43  ;;  %v4642_v21 = vmul.f32 %v4634_v18, %v9010_v7 }
0x17ef   : > { %v4639_v13 = vmul.f32 %v9016_v9, %v9016_v9  ;;  %v9022_v55 = vadd.f32 %v5447_v3, %v4618_v29  ;;  %v6290_v53 = vpop.f32.mrf.mxu0 }
0x17f0   : > { %v4665_v5 = vmul.f32 0.7978846, %v4657_v15  ;;  %v4660_v28 = vadd.f32 %v4652_v58, %v9005_v25  ;;  %v4650_v14 = vmul.f32 0.044715, %v4642_v21  ;;  %6636 = vtanh.f32 %v4667_v42 }
0x17f1   : > { %v4647_v10 = vmul.f32 %v4639_v13, %v9016_v9  ;;  %v4637_v49 = vmul.f32 %v9022_v55, %v9022_v55  ;;  %v4630_v6 = vadd.f32 %v6290_v53, %v5447_v3  ;;  %v4621_v54 = vpop.f32.mrf.mxu0 }
0x17f2   : > { %6638 = vtanh.f32 %v4665_v5  ;;  %v4668_v41 = vmul.f32 0.7978846, %v4660_v28  ;;  %v4658_v39 = vadd.f32 %v4650_v14, %v9010_v7  ;;  %v4622_v12 = vadd.f32 %v5447_v3, %v4621_v54 }
0x17f3   : > { %v4655_v46 = vmul.f32 0.044715, %v4647_v10  ;;  %v4645_v34 = vmul.f32 %v4637_v49, %v9022_v55  ;;  %v4640_v52 = vmul.f32 %v4630_v6, %v4630_v6 }
0x17f4   : > { %6640 = vtanh.f32 %v4668_v41  ;;  %v4666_v32 = vmul.f32 0.7978846, %v4658_v39  ;;  %v4638_v22 = vmul.f32 %v4622_v12, %v4622_v12 }
0x17f5   : > { %v4663_v31 = vadd.f32 %v4655_v46, %v9016_v9  ;;  %v4653_v0 = vmul.f32 0.044715, %v4645_v34  ;;  %v4648_v19 = vmul.f32 %v4640_v52, %v4630_v6 }
0x17f6   : > { %6642 = vtanh.f32 %v4666_v32  ;;  %v4646_v36 = vmul.f32 %v4638_v22, %v4622_v12 }
0x17f7   : > { %v4671_v47 = vmul.f32 0.7978846, %v4663_v31  ;;  %v4661_v37 = vadd.f32 %v4653_v0, %v9022_v55  ;;  %v4656_v16 = vmul.f32 0.044715, %v4648_v19 }
0x17f8   : > { %v4654_v57 = vmul.f32 0.044715, %v4646_v36 }
0x17f9   : > { %6644 = vtanh.f32 %v4671_v47  ;;  %v4669_v62 = vmul.f32 0.7978846, %v4661_v37  ;;  %v4664_v40 = vadd.f32 %v4656_v16, %v4630_v6 }
0x17fa   : > { %v4662_v30 = vadd.f32 %v4654_v57, %v4622_v12 }
0x17fb   : > { %6646 = vtanh.f32 %v4669_v62  ;;  %v4672_v56 = vmul.f32 0.7978846, %v4664_v40 }
0x17fc   : > { %v4670_v3 = vmul.f32 0.7978846, %v4662_v30 }
0x17fd   : > { %6648 = vtanh.f32 %v4672_v56  ;;  %v6637_v63 = vpop.eup %6636 }
0x17fe   : > { %6650 = vtanh.f32 %v4670_v3  ;;  %v4683_v23 = vadd.f32 1.0, %v6637_v63 }
0x17ff   : > { %v6639_v26 = vpop.eup %6638 }
0x1800   : > { %v4681_v8 = vadd.f32 1.0, %v6639_v26  ;;  %v4691_v51 = vmul.f32 0.5, %v4683_v23 }
0x1801   : > { %v6641_v20 = vpop.eup %6640 }
0x1802   : > { %v4684_v17 = vadd.f32 1.0, %v6641_v20  ;;  %v4689_v59 = vmul.f32 0.5, %v4681_v8  ;;  %v4699_v15 = vmul.f32 %v4691_v51, %v8996_v44 }
0x1803   : > { %v6643_v27 = vpop.eup %6642 }
0x1804   : > { %v4692_v35 = vmul.f32 0.5, %v4684_v17  ;;  %v4682_v38 = vadd.f32 1.0, %v6643_v27  ;;  %v4697_v29 = vmul.f32 %v4689_v59, %v9000_v60 }
0x1806   : > { %v6645_v61 = vpop.eup %6644  ;;  %v4690_v50 = vmul.f32 0.5, %v4682_v38  ;;  %v4700_v43 = vmul.f32 %v4692_v35, %v9005_v25 }
0x1807   : > { %v4687_v58 = vadd.f32 1.0, %v6645_v61 }
0x1808   : > { %v6647_v18 = vpop.eup %6646  ;;  %v4698_v42 = vmul.f32 %v4690_v50, %v9010_v7  ;;  %v4715_v28 = vpack.c.bf16 %v4700_v43, %v4699_v15 }
0x1809   : > { %v4685_v21 = vadd.f32 1.0, %v6647_v18  ;;  %v4695_v54 = vmul.f32 0.5, %v4687_v58 }
0x180a   : > { %v6649_v13 = vpop.eup %6648  ;;  %v4714_v53 = vpack.c.bf16 %v4698_v42, %v4697_v29 }
0x180b   : > { %v6651_v5 = vpop.eup %6650  ;;  %v4688_v14 = vadd.f32 1.0, %v6649_v13  ;;  %v4693_v10 = vmul.f32 0.5, %v4685_v21  ;;  %v4703_v39 = vmul.f32 %v4695_v54, %v9016_v9 }
0x180c   : > { %v4686_v49 = vadd.f32 1.0, %v6651_v5  ;;  %6299 = vmatprep.mubr.msk.bf16.mxu1 %vm2740_vm4, %v4714_v53 }
0x180d   : > { %v4696_v25 = vmul.f32 0.5, %v4688_v14  ;;  %6300 = vmatmul.mubr.msk.bf16.vlgmr.msra.gmra.mxu1 %vm2740_vm4, %v4715_v28  ;;  %v4701_v7 = vmul.f32 %v4693_v10, %v9022_v55 }
0x180e   : > { %v4694_v60 = vmul.f32 0.5, %v4686_v49 }
0x180f   : > { %v4704_v41 = vmul.f32 %v4696_v25, %v4630_v6  ;;  %v5465_v6 = vld [vmem:[%s9191_s4 + $0xf] ss:$0 sm:$0xff] }
0x1810   : > { %v4702_v44 = vmul.f32 %v4694_v60, %v4622_v12 }
0x1811   : > { %v4717_v34 = vpack.c.bf16 %v4704_v41, %v4703_v39 }
0x1812   : > { %v4716_v46 = vpack.c.bf16 %v4702_v44, %v4701_v7 }
0x1814   : > { %6303 = vmatprep.mubr.msk.bf16.mxu1 %vm2740_vm4, %v4716_v46 }
0x1815   : > { %6304 = vmatmul.mubr.msk.bf16.gmra.mxu1 %vm2740_vm4, %v4717_v34 }
0x18cd   : > { %v6301_v52 = vpop.f32.mrf.mxu1 }
0x18ce   : > { %v4801_v22 = vadd.f32 %v6301_v52, %v8855_v4 }
0x18cf   : > { %v4768_v32 = vpop.f32.mrf.mxu1 }
0x18d0   : > { %v4799_v31 = vadd.f32 %v4768_v32, %v8852_v24  ;;  %v4817_v19 = vadd.f32 %v5465_v6, %v4801_v22 }
0x18d1   : > { %v6302_v55 = vpop.f32.mrf.mxu1 }
0x18d2   : > { %v4815_v12 = vadd.f32 %v5465_v6, %v4799_v31  ;;  %v4802_v9 = vadd.f32 %v6302_v55, %v8863_v48  ;;  %v4829_v40 = vsel %vm732_vm0, %v4817_v19, 0.0 }
0x18d3   : > { %v4771_v0 = vpop.f32.mrf.mxu1 }
0x18d4   : > { %v4800_v36 = vadd.f32 %v4771_v0, %v8860_v2  ;;  %v4823_v47 = vsel %vm732_vm0, %v4815_v12, 0.0  ;;  %v4818_v4 = vadd.f32 %v5465_v6, %v4802_v9 }
0x18d5   : > { %4824 = vadd.xlane.f32.xlu0 %v4823_v47  ;;  %v6305_v37 = vpop.f32.mrf.mxu1 }
0x18d6   : > { %v4816_v16 = vadd.f32 %v5465_v6, %v4800_v36  ;;  %v4805_v24 = vadd.f32 %v6305_v37, %v8875_v1  ;;  %v4832_v3 = vsel %vm732_vm0, %v4818_v4, 0.0  ;;  %v4962_v36 = vld [vmem:[%s9198_s11 + $0x18] sm:$0xff]  ;;  %v4959_v37 = vld [vmem:[%s9198_s11] sm:$0xff] }
0x18d7   : > { %v4784_v57 = vpop.f32.mrf.mxu1 }
0x18d8   : > { %v4803_v62 = vadd.f32 %v4784_v57, %v8870_v33  ;;  %v4826_v30 = vsel %vm732_vm0, %v4816_v16, 0.0  ;;  %v4821_v63 = vadd.f32 %v5465_v6, %v4805_v24 }
0x18d9   : > { %4830 = vadd.xlane.f32.xlu0 %v4829_v40  ;;  %4827 = vadd.xlane.f32.xlu1 %v4826_v30  ;;  %v6306_v48 = vpop.f32.mrf.mxu1 }
0x18da   : > { %v4819_v56 = vadd.f32 %v5465_v6, %v4803_v62  ;;  %v4806_v26 = vadd.f32 %v6306_v48, %v8883_v11  ;;  %v4841_v23 = vsel %vm732_vm0, %v4821_v63, 0.0 }
0x18db   : > { %v4787_v2 = vpop.f32.mrf.mxu1 }
0x18dc   : > { %v4804_v8 = vadd.f32 %v4787_v2, %v8880_v45  ;;  %v4835_v1 = vsel %vm732_vm0, %v4819_v56, 0.0  ;;  %v4822_v20 = vadd.f32 %v5465_v6, %v4806_v26 }
0x18dd   : > { %4833 = vadd.xlane.f32.xlu1 %v4832_v3  ;;  %4836 = vadd.xlane.f32.xlu0 %v4835_v1 }
0x18de   : > { %v4820_v33 = vadd.f32 %v5465_v6, %v4804_v8  ;;  %v4844_v27 = vsel %vm732_vm0, %v4822_v20, 0.0 }
0x18e0   : > { %v4838_v17 = vsel %vm732_vm0, %v4820_v33, 0.0 }
0x18e1   : > { %4842 = vadd.xlane.f32.xlu0 %v4841_v23  ;;  %4839 = vadd.xlane.f32.xlu1 %v4838_v17 }
0x18e5   : > { %4845 = vadd.xlane.f32.xlu1 %v4844_v27 }
0x195e   : > { %v4825_v59 = vpop.xlane.xlu0 %4824 }
0x195f   : > { %v4847_v35 = vmul.f32 0.03125, %v4825_v59 }
0x1961   : > { %v9061_v11 = vsub.f32 %v4815_v12, %v4847_v35 }
0x1962   : > { %v4828_v45 = vpop.xlane.xlu1 %4827  ;;  %v4831_v38 = vpop.xlane.xlu0 %4830 }
0x1963   : > { %v4848_v51 = vmul.f32 0.03125, %v4828_v45  ;;  %v4849_v61 = vmul.f32 0.03125, %v4831_v38  ;;  %v4863_v50 = vmul.f32 %v9061_v11, %v9061_v11 }
0x1965   : > { %v9065_v43 = vsub.f32 %v4816_v16, %v4848_v51  ;;  %v9067_v18 = vsub.f32 %v4817_v19, %v4849_v61  ;;  %v4871_v29 = vsel %vm732_vm0, %v4863_v50, 0.0  ;;  %v4961_v19 = vld [vmem:[%s9198_s11 + $0x10] sm:$0xff]  ;;  %v4960_v16 = vld [vmem:[%s9198_s11 + $0x8] sm:$0xff] }
0x1966   : > { %v4834_v42 = vpop.xlane.xlu1 %4833  ;;  %4872 = vadd.xlane.f32.xlu0 %v4871_v29  ;;  %v4837_v15 = vpop.xlane.xlu0 %4836  ;;  %v4968_v47 = vpack.c.bf16 %v4962_v36, %v4961_v19 }
0x1967   : > { %v4850_v58 = vmul.f32 0.03125, %v4834_v42  ;;  %v4851_v21 = vmul.f32 0.03125, %v4837_v15  ;;  %v4864_v13 = vmul.f32 %v9065_v43, %v9065_v43  ;;  %v4865_v53 = vmul.f32 %v9067_v18, %v9067_v18  ;;  %v5467_v42 = vld [vmem:[%s9191_s4 + $0x10] ss:$0 sm:$0xff] }
0x1968   : > { %6307 = vmatprep.subr.bf16.mxu0 %v4968_v47 }
0x1969   : > { %v9074_v5 = vsub.f32 %v4818_v4, %v4850_v58  ;;  %v9076_v28 = vsub.f32 %v4819_v56, %v4851_v21  ;;  %v4874_v14 = vsel %vm732_vm0, %v4864_v13, 0.0  ;;  %v4877_v10 = vsel %vm732_vm0, %v4865_v53, 0.0  ;;  %6308 = vmatpush3.bf16.msra.mxu0 %v4968_v47  ;;  %v5469_v53 = vld [vmem:[%s9191_s4 + $0x11] ss:$0 sm:$0xff] }
0x196a   : > { %4875 = vadd.xlane.f32.xlu1 %v4874_v14  ;;  %v4840_v49 = vpop.xlane.xlu1 %4839  ;;  %4878 = vadd.xlane.f32.xlu0 %v4877_v10  ;;  %v4843_v54 = vpop.xlane.xlu0 %4842  ;;  %v4967_v4 = vpack.c.bf16 %v4960_v16, %v4959_v37 }
0x196b   : > { %v4852_v25 = vmul.f32 0.03125, %v4840_v49  ;;  %v4853_v60 = vmul.f32 0.03125, %v4843_v54  ;;  %v4866_v41 = vmul.f32 %v9074_v5, %v9074_v5  ;;  %v4867_v7 = vmul.f32 %v9076_v28, %v9076_v28 }
0x196c   : > { %6309 = vmatprep.subr.bf16.mxu0 %v4967_v4 }
0x196d   : > { %v9084_v44 = vsub.f32 %v4820_v33, %v4852_v25  ;;  %v9086_v39 = vsub.f32 %v4821_v63, %v4853_v60  ;;  %v4880_v46 = vsel %vm732_vm0, %v4866_v41, 0.0  ;;  %v4883_v34 = vsel %vm732_vm0, %v4867_v7, 0.0  ;;  %6310 = vmatpush3.bf16.msra.mxu0 %v4967_v4 }
0x196e   : > { %4881 = vadd.xlane.f32.xlu1 %v4880_v46  ;;  %v4846_v52 = vpop.xlane.xlu1 %4845  ;;  %4884 = vadd.xlane.f32.xlu0 %v4883_v34 }
0x196f   : > { %v4854_v32 = vmul.f32 0.03125, %v4846_v52  ;;  %v4868_v22 = vmul.f32 %v9084_v44, %v9084_v44  ;;  %v4869_v31 = vmul.f32 %v9086_v39, %v9086_v39 }
0x1971   : > { %v9094_v6 = vsub.f32 %v4822_v20, %v4854_v32  ;;  %v4886_v55 = vsel %vm732_vm0, %v4868_v22, 0.0  ;;  %v4889_v12 = vsel %vm732_vm0, %v4869_v31, 0.0 }
0x1972   : > { %4887 = vadd.xlane.f32.xlu1 %v4886_v55  ;;  %4890 = vadd.xlane.f32.xlu0 %v4889_v12 }
0x1973   : > { %v4870_v9 = vmul.f32 %v9094_v6, %v9094_v6 }
0x1975   : > { %v4892_v0 = vsel %vm732_vm0, %v4870_v9, 0.0 }
0x1976   : > { %4893 = vadd.xlane.f32.xlu1 %v4892_v0 }
0x19ef   : > { %v4873_v57 = vpop.xlane.xlu0 %4872 }
0x19f0   : > { %v4895_v24 = vmul.f32 0.03125, %v4873_v57 }
0x19f2   : > { %v4903_v62 = vadd.f32 1e-05, %v4895_v24 }
0x19f3   : > { %v4876_v40 = vpop.xlane.xlu1 %4875  ;;  %v4879_v30 = vpop.xlane.xlu0 %4878 }
0x19f4   : > { %6652 = vrsqrt.f32 %v4903_v62  ;;  %v4896_v48 = vmul.f32 0.03125, %v4876_v40  ;;  %v4897_v56 = vmul.f32 0.03125, %v4879_v30 }
0x19f6   : > { %v4904_v2 = vadd.f32 1e-05, %v4896_v48  ;;  %v4905_v3 = vadd.f32 1e-05, %v4897_v56 }
0x19f7   : > { %v4882_v63 = vpop.xlane.xlu1 %4881  ;;  %v4885_v26 = vpop.xlane.xlu0 %4884 }
0x19f8   : > { %6654 = vrsqrt.f32 %v4904_v2  ;;  %v4898_v8 = vmul.f32 0.03125, %v4882_v63  ;;  %v4899_v1 = vmul.f32 0.03125, %v4885_v26 }
0x19f9   : > { %6656 = vrsqrt.f32 %v4905_v3 }
0x19fa   : > { %v4906_v33 = vadd.f32 1e-05, %v4898_v8  ;;  %v4907_v20 = vadd.f32 1e-05, %v4899_v1 }
0x19fb   : > { %v4888_v23 = vpop.xlane.xlu1 %4887  ;;  %v4891_v17 = vpop.xlane.xlu0 %4890 }
0x19fc   : > { %6658 = vrsqrt.f32 %v4906_v33  ;;  %v4900_v27 = vmul.f32 0.03125, %v4888_v23  ;;  %v4901_v59 = vmul.f32 0.03125, %v4891_v17 }
0x19fd   : > { %6660 = vrsqrt.f32 %v4907_v20 }
0x19fe   : > { %v4908_v35 = vadd.f32 1e-05, %v4900_v27  ;;  %v4909_v45 = vadd.f32 1e-05, %v4901_v59 }
0x19ff   : > { %v4894_v38 = vpop.xlane.xlu1 %4893 }
0x1a00   : > { %6662 = vrsqrt.f32 %v4908_v35  ;;  %v4902_v51 = vmul.f32 0.03125, %v4894_v38 }
0x1a01   : > { %v6653_v61 = vpop.eup %6652  ;;  %6664 = vrsqrt.f32 %v4909_v45 }
0x1a02   : > { %v4910_v50 = vadd.f32 1e-05, %v4902_v51  ;;  %v4919_v29 = vmul.f32 %v6653_v61, %v9061_v11 }
0x1a04   : > { %6666 = vrsqrt.f32 %v4910_v50  ;;  %v4935_v13 = vmul.f32 %v5467_v42, %v4919_v29 }
0x1a05   : > { %v6655_v15 = vpop.eup %6654 }
0x1a06   : > { %v6657_v58 = vpop.eup %6656  ;;  %v4920_v21 = vmul.f32 %v6655_v15, %v9065_v43  ;;  %v4951_v60 = vadd.f32 %v5469_v53, %v4935_v13 }
0x1a07   : > { %v4921_v14 = vmul.f32 %v6657_v58, %v9067_v18 }
0x1a08   : > { %v4936_v10 = vmul.f32 %v5467_v42, %v4920_v21 }
0x1a09   : > { %v6659_v49 = vpop.eup %6658  ;;  %v4937_v11 = vmul.f32 %v5467_v42, %v4921_v14 }
0x1a0a   : > { %v6661_v54 = vpop.eup %6660  ;;  %v4922_v25 = vmul.f32 %v6659_v49, %v9074_v5  ;;  %v4952_v41 = vadd.f32 %v5469_v53, %v4936_v10 }
0x1a0b   : > { %v4923_v7 = vmul.f32 %v6661_v54, %v9076_v28  ;;  %v4953_v32 = vadd.f32 %v5469_v53, %v4937_v11 }
0x1a0c   : > { %v4938_v46 = vmul.f32 %v5467_v42, %v4922_v25  ;;  %v4963_v34 = vpack.c.bf16 %v4952_v41, %v4951_v60 }
0x1a0d   : > { %v6663_v43 = vpop.eup %6662  ;;  %v4939_v31 = vmul.f32 %v5467_v42, %v4923_v7 }
0x1a0e   : > { %v6665_v52 = vpop.eup %6664  ;;  %v4954_v22 = vadd.f32 %v5469_v53, %v4938_v46  ;;  %6311 = vmatprep.mubr.msk.bf16.mxu0 %vm732_vm0, %v4963_v34  ;;  %v4924_v18 = vmul.f32 %v6663_v43, %v9084_v44 }
0x1a0f   : > { %v4925_v55 = vmul.f32 %v6665_v52, %v9086_v39  ;;  %v4955_v28 = vadd.f32 %v5469_v53, %v4939_v31  ;;  %v5470_v39 = vld [vmem:[%s9199_s12] ss:$0 sm:$0xff] }
0x1a10   : > { %v4964_v12 = vpack.c.bf16 %v4954_v22, %v4953_v32  ;;  %v4940_v9 = vmul.f32 %v5467_v42, %v4924_v18 }
0x1a11   : > { %v6667_v5 = vpop.eup %6666  ;;  %v4941_v36 = vmul.f32 %v5467_v42, %v4925_v55 }
0x1a12   : > { %v4926_v0 = vmul.f32 %v6667_v5, %v9094_v6  ;;  %6312 = vmatmul.mubr.msk.bf16.vlgmr.msra.gmra.mxu0 %vm732_vm0, %v4964_v12  ;;  %v4956_v19 = vadd.f32 %v5469_v53, %v4940_v9 }
0x1a13   : > { %v4957_v16 = vadd.f32 %v5469_v53, %v4941_v36 }
0x1a14   : > { %v4965_v47 = vpack.c.bf16 %v4956_v19, %v4955_v28  ;;  %v4942_v37 = vmul.f32 %v5467_v42, %v4926_v0 }
0x1a16   : > { %6315 = vmatprep.mubr.msk.bf16.mxu0 %vm732_vm0, %v4965_v47  ;;  %v4958_v4 = vadd.f32 %v5469_v53, %v4942_v37 }
0x1a18   : > { %v4966_v44 = vpack.c.bf16 %v4958_v4, %v4957_v16 }
0x1a1a   : > { %6316 = vmatmul.mubr.msk.bf16.gmra.mxu0 %vm732_vm0, %v4966_v44 }
0x1ad2   : > { %v6313_v57 = vpop.f32.mrf.mxu0 }
0x1ad3   : > { %v5031_v6 = vadd.f32 %v6313_v57, %v5470_v39 }
0x1ad4   : > { %v5022_v24 = vpop.f32.mrf.mxu0 }
0x1ad5   : > { %v5477_v62 = vmul.f32 -1.442695, %v5031_v6  ;;  %v5023_v40 = vadd.f32 %v5470_v39, %v5022_v24 }
0x1ad6   : > { %v6314_v30 = vpop.f32.mrf.mxu0 }
0x1ad7   : > { %6668 = vpow2.f32 %v5477_v62  ;;  %v5475_v48 = vmul.f32 -1.442695, %v5023_v40  ;;  %v5034_v56 = vadd.f32 %v6314_v30, %v5470_v39 }
0x1ad8   : > { %v5025_v2 = vpop.f32.mrf.mxu0 }
0x1ad9   : > { %6670 = vpow2.f32 %v5475_v48  ;;  %v5478_v3 = vmul.f32 -1.442695, %v5034_v56  ;;  %v5026_v63 = vadd.f32 %v5470_v39, %v5025_v2 }
0x1ada   : > { %v6317_v26 = vpop.f32.mrf.mxu0 }
0x1adb   : > { %6672 = vpow2.f32 %v5478_v3  ;;  %v5476_v8 = vmul.f32 -1.442695, %v5026_v63  ;;  %v5047_v1 = vadd.f32 %v6317_v26, %v5470_v39 }
0x1adc   : > { %v5038_v33 = vpop.f32.mrf.mxu0 }
0x1add   : > { %6674 = vpow2.f32 %v5476_v8  ;;  %v5481_v20 = vmul.f32 -1.442695, %v5047_v1  ;;  %v5039_v23 = vadd.f32 %v5470_v39, %v5038_v33 }
0x1ade   : > { %v6318_v17 = vpop.f32.mrf.mxu0 }
0x1adf   : > { %6676 = vpow2.f32 %v5481_v20  ;;  %v5479_v27 = vmul.f32 -1.442695, %v5039_v23  ;;  %v5050_v59 = vadd.f32 %v6318_v17, %v5470_v39 }
0x1ae0   : > { %v5041_v35 = vpop.f32.mrf.mxu0 }
0x1ae1   : > { %6678 = vpow2.f32 %v5479_v27  ;;  %v5482_v45 = vmul.f32 -1.442695, %v5050_v59  ;;  %v5042_v38 = vadd.f32 %v5470_v39, %v5041_v35 }
0x1ae3   : > { %6680 = vpow2.f32 %v5482_v45  ;;  %v5480_v51 = vmul.f32 -1.442695, %v5042_v38 }
0x1ae4   : > { %v6669_v61 = vpop.eup %6668 }
0x1ae5   : > { %v5079_v50 = vadd.f32 1.0, %v6669_v61  ;;  %6682 = vpow2.f32 %v5480_v51 }
0x1ae6   : > { %v6671_v29 = vpop.eup %6670 }
0x1ae7   : > { %6684 = vrcp.f32 %v5079_v50  ;;  %v5077_v42 = vadd.f32 1.0, %v6671_v29 }
0x1ae8   : > { %v6673_v15 = vpop.eup %6672 }
0x1ae9   : > { %6686 = vrcp.f32 %v5077_v42  ;;  %v5080_v58 = vadd.f32 1.0, %v6673_v15 }
0x1aea   : > { %v6675_v21 = vpop.eup %6674 }
0x1aeb   : > { %6688 = vrcp.f32 %v5080_v58  ;;  %v5078_v13 = vadd.f32 1.0, %v6675_v21 }
0x1aec   : > { %v6677_v53 = vpop.eup %6676 }
0x1aed   : > { %6690 = vrcp.f32 %v5078_v13  ;;  %v5083_v14 = vadd.f32 1.0, %v6677_v53 }
0x1aee   : > { %v6679_v10 = vpop.eup %6678 }
0x1aef   : > { %6692 = vrcp.f32 %v5083_v14  ;;  %v5081_v49 = vadd.f32 1.0, %v6679_v10 }
0x1af0   : > { %v6681_v54 = vpop.eup %6680 }
0x1af1   : > { %6694 = vrcp.f32 %v5081_v49  ;;  %v5084_v11 = vadd.f32 1.0, %v6681_v54 }
0x1af2   : > { %v6683_v25 = vpop.eup %6682 }
0x1af3   : > { %6696 = vrcp.f32 %v5084_v11  ;;  %v5082_v60 = vadd.f32 1.0, %v6683_v25 }
0x1af4   : > { %v6685_v41 = vpop.eup %6684 }
0x1af5   : > { %5103 = vst [vmem:[%s448_s17 + $0x10] sm:$0xff] %v6685_v41  ;;  %6698 = vrcp.f32 %v5082_v60 }
0x1af6   : > { %v6687_v7 = vpop.eup %6686 }
0x1af7   : > { %5101 = vst [vmem:[%s448_s17] sm:$0xff] %v6687_v7 }
0x1af8   : > { %v6689_v46 = vpop.eup %6688 }
0x1af9   : > { %5104 = vst [vmem:[%s448_s17 + $0x18] sm:$0xff] %v6689_v46 }
0x1afa   : > { %v6691_v34 = vpop.eup %6690 }
0x1afb   : > { %5102 = vst [vmem:[%s448_s17 + $0x8] sm:$0xff] %v6691_v34 }
0x1afc   : > { %v6693_v43 = vpop.eup %6692 }
0x1afd   : > { %5107 = vst [vmem:[%s448_s17 + $0x30] sm:$0xff] %v6693_v43 }
0x1afe   : > { %v6695_v52 = vpop.eup %6694 }
0x1aff   : > { %5105 = vst [vmem:[%s448_s17 + $0x20] sm:$0xff] %v6695_v52 }
0x1b00   : > { %v6697_v32 = vpop.eup %6696 }
0x1b01   : > { %5108 = vst [vmem:[%s448_s17 + $0x38] sm:$0xff] %v6697_v32 }
0x1b02   : > { %v6699_v22 = vpop.eup %6698 }
0x1b03   : > { %5106 = vst [vmem:[%s448_s17 + $0x28] sm:$0xff] %v6699_v22 }
0x1b04   : > { %6723 = shalt.err (!%p6720_p3)
}
0x1b05   : > { %s6724_s15 = scalar_lea.hbm %s9141_s24, 1024  ;;  %s6728_s16 = scalar_lea.hbm %s9200_s13, 2048 }
0x1b06   : > { %p6725_p4 = scmp.ne.s32.totalorder %s9141_s24, %s6724_s15  ;;  %p6729_p9 = scmp.lt.s32.totalorder %s9141_s24, %s9200_s13 }
0x1b07   : > { %p6730_p10 = scmp.lt.s32.totalorder %s6728_s16, %s6724_s15 }
0x1b08   : > { %p6726_p7 = pnand %p6725_p4, %p6888_p5 }
0x1b09   : > { %p6731_p11 = por %p6730_p10, %p6729_p9 }
0x1b0a   : > { %p6727_p8 = pneg %p6726_p7 }
0x1b0c   : > { %p6732_p12 = pnand %p6731_p11, %p6727_p8 }
0x1b0e   : > { %6735 = shalt.err (!%p6732_p12)
}
0x1b0f   : > { %s6778_s29 = smov 128   ;;  %s6779_s22 = smov 8  }
0x1b10   : > { %6333 = dma.vmem_to_hbm [thread:$0]  (%p6888_p5), %s9143_s21, 1024, %s9141_s24, %s9147_s30, %s6778_s29, %s6778_s29, %s6779_s22  }
0x1b11 PF: > { %p6339_p13 = scmp.ge.s32.totalorder %s6770_s28, 2  ;;  %s5138_s20 = sand.u32 1, %s6758_s25  }
0x1b12   : > { %s5139_s0 = scalar_lea.sflag [#allocation3], %s5138_s20 }
0x1b13   : > { %p6336_p0 = pnand %p6339_p13, %p6892_p6 }
0x1b15   : > { %p6337_p1 = pneg %p6336_p0 }
0x1b17   : > { %6753 = dma.done.wait (%p6337_p1), %s5139_s0, 1024  }
0x1b18   : > { %6755 = vsyncadd (%p6337_p1), %s5139_s0, 4294966272  ;;  %s9208_s1 = sld [smem:[#allocation5_spill]]  ;;  %p23_p2 = scmp.ge.s32.totalorder %s6875_s14, 4  }
0x1b19   : > { %s9209_s25 = smov %s6762_s26  ;;  %s9210_s26 = smov %s6766_s27 }
0x1b1a   : > { %s9212_s28 = smov %s6875_s14  ;;  %25 = sbr.rel (!%p23_p2) target bundleno = 6 (0x6), region = 160 }
0x1b1e   : > { %s9211_s27 = smov %s9208_s1 }
0x1b1f   :  { %5144 = vsyncpa [#allocation3], 1 }
0x1b20   :  { %5146 = vsyncpa [#allocation3 + $0x1], 1 }

</bundles_post_ra>
